<compile_context>
chip_gen: v5e
topology: v5e:2x2
jax: 0.10.0
libtpu: 0.0.40
codegen_flags: <defaults>
</compile_context>

<pallas_src>
import functools

import jax
import jax.numpy as jnp
from jax.experimental import pallas as pl
from jax.experimental.pallas import tpu as pltpu

NPAD = 128                       # lane-padded width of the fused head outputs
_LOG_WH_MAX = 4.135166556742356  # log(1000/16): clamp for exp() of wh deltas

_PARALLEL = pltpu.CompilerParams(dimension_semantics=("parallel",))


def _row_tile(m, cap=1024):
    """Row-tile size: full array if small, else a VMEM-friendly multiple of 8."""
    return m if m <= cap else cap


def _sigmoid(x):
    return 1.0 / (1.0 + jnp.exp(-x))


# -----------------------------------------------------------------------------
# Pallas kernels
# -----------------------------------------------------------------------------
def _conv3x3_kernel(x_ref, w_ref, b_ref, o_ref, *, H, W, act):
    """3x3 same-conv, im2col fused in-kernel as ONE K=9*Cin matmul.

    x:(1,H+2,W+2,Cin)  w:(9*Cin,Cout)  b:(1,Cout)  o:(H*W,Cout).
    """
    cin = x_ref.shape[-1]
    patches = jnp.concatenate(
        [x_ref[0, kh:kh + H, kw:kw + W, :].reshape(H * W, cin)
         for kh in range(3) for kw in range(3)],
        axis=-1)                                               # (H*W, 9*Cin)
    acc = jnp.dot(patches, w_ref[...], preferred_element_type=jnp.float32)
    acc = acc + b_ref[...]
    if act == "relu":
        acc = jnp.maximum(acc, 0.0)
    o_ref[...] = acc.astype(o_ref.dtype)


def _rpn_fused_kernel(x_ref, wc_ref, bc_ref, wh_ref, bh_ref, ctr_ref, sc_ref,
                      o_ref, *, H, W, A):
    """Fused RPN: 3x3 conv + relu + cls/reg head matmul + anchor decode.

    x:(1,H+2,W+2,C) padded backbone feature for one image.
    ctr:(H*W,8) per-position anchor centers [cx, cy, 0...] (batch-shared).
    sc:(1,A) anchor scales.
    Output columns: [obj(A)][x(A)][y(A)][w(A)][h(A)][zeros...]  (xywh, top-left).
    """
    cin = x_ref.shape[-1]
    patches = jnp.concatenate(
        [x_ref[0, kh:kh + H, kw:kw + W, :].reshape(H * W, cin)
         for kh in range(3) for kw in range(3)],
        axis=-1)                                               # (H*W, 9*C)
    rf = jnp.dot(patches, wc_ref[...], preferred_element_type=jnp.float32)
    rf = jnp.maximum(rf + bc_ref[...], 0.0).astype(jnp.bfloat16)

    t = jnp.dot(rf, wh_ref[...], preferred_element_type=jnp.float32)
    t = t + bh_ref[...]                                        # (H*W, NPAD)

    sc = sc_ref[...]                                           # (1, A)
    cx = ctr_ref[:, 0:1]                                       # (H*W, 1)
    cy = ctr_ref[:, 1:2]

    obj = _sigmoid(t[:, 0:A])                                  # exp on A cols only
    tx = t[:, A:2 * A]
    ty = t[:, 2 * A:3 * A]
    tw = t[:, 3 * A:4 * A]
    th = t[:, 4 * A:5 * A]
    wdec = sc * jnp.exp(jnp.clip(tw, -_LOG_WH_MAX, _LOG_WH_MAX))
    hdec = sc * jnp.exp(jnp.clip(th, -_LOG_WH_MAX, _LOG_WH_MAX))
    bx = cx + tx * sc - 0.5 * wdec
    by = cy + ty * sc - 0.5 * hdec

    pad = jnp.zeros((t.shape[0], NPAD - 5 * A), jnp.float32)
    o_ref[...] = jnp.concatenate([obj, bx, by, wdec, hdec, pad], axis=-1)


def _box_tower_kernel(roi_ref, w1_ref, b1_ref, w2_ref, b2_ref, wh_ref, bh_ref,
                      aux_ref, o_ref, *, nc1):
    """Fused box head: FC1 -> relu -> FC2 -> relu -> cls/reg head, softmax,
    proposal decode and the inverse-affine back-transform, all in one kernel.

    aux:(TM,16) = [cx, cy, w, h, m00, m01, m02, m10, m11, m12, 0...]
    Output columns: [class probs (nc1)][x][y][w][h][zeros...] (image coords).
    """
    h = jnp.dot(roi_ref[...], w1_ref[...], preferred_element_type=jnp.float32)
    h = jnp.maximum(h + b1_ref[...], 0.0).astype(jnp.bfloat16)
    h = jnp.dot(h, w2_ref[...], preferred_element_type=jnp.float32)
    h = jnp.maximum(h + b2_ref[...], 0.0).astype(jnp.bfloat16)
    t = jnp.dot(h, wh_ref[...], preferred_element_type=jnp.float32)
    t = t + bh_ref[...]                                        # (TM, NPAD)

    # softmax on the (num_classes + 1) live class columns only
    logits = t[:, 0:nc1]
    m = jnp.max(logits, axis=-1, keepdims=True)
    e = jnp.exp(logits - m)
    probs = e / jnp.sum(e, axis=-1, keepdims=True)

    aux = aux_ref[...]
    cx, cy = aux[:, 0:1], aux[:, 1:2]
    pw, ph = aux[:, 2:3], aux[:, 3:4]
    m00, m01, m02 = aux[:, 4:5], aux[:, 5:6], aux[:, 6:7]
    m10, m11, m12 = aux[:, 7:8], aux[:, 8:9], aux[:, 9:10]

    tx = t[:, nc1:nc1 + 1]
    ty = t[:, nc1 + 1:nc1 + 2]
    tw = t[:, nc1 + 2:nc1 + 3]
    th = t[:, nc1 + 3:nc1 + 4]
    wdec = pw * jnp.exp(jnp.clip(tw, -_LOG_WH_MAX, _LOG_WH_MAX))
    hdec = ph * jnp.exp(jnp.clip(th, -_LOG_WH_MAX, _LOG_WH_MAX))
    bx = cx + tx * pw - 0.5 * wdec
    by = cy + ty * ph - 0.5 * hdec

    # fused inverse-affine (transform_xywh_with_img_id), scale/translation form
    ox = m00 * bx + m01 * by + m02
    oy = m10 * bx + m11 * by + m12
    ow = m00 * wdec + m01 * hdec
    oh = m10 * wdec + m11 * hdec

    pad = jnp.zeros((t.shape[0], NPAD - nc1 - 4), jnp.float32)
    o_ref[...] = jnp.concatenate([probs, ox, oy, ow, oh, pad], axis=-1)


# -----------------------------------------------------------------------------
# Pallas wrappers
# -----------------------------------------------------------------------------
def conv3x3(x, w, b, act="relu", out_dtype=jnp.bfloat16):
    """3x3 same-conv.  x:(B,H,W,Cin) NHWC, w:(9*Cin,Cout), b:(1,Cout)."""
    # TODO(synk): spatial row-block grid axis with halo (mandatory for v7x 64MiB
    # VMEM at real image sizes, also gives 2-TC parallelism); full-plane tiles
    # are fine at these toy sizes.
    B, H, W, Cin = x.shape
    Cout = w.shape[-1]
    Wp = ((W + 7) // 8) * 8          # keep in-kernel (H*W, C) flatten tile-aligned
    xp = jnp.pad(x, ((0, 0), (1, 1), (1, 1 + (Wp - W)), (0, 0)))
    kern = functools.partial(_conv3x3_kernel, H=H, W=Wp, act=act)
    out = pl.pallas_call(
        kern,
        out_shape=jax.ShapeDtypeStruct((B * H * Wp, Cout), out_dtype),
        grid=(B,),
        in_specs=[
            pl.BlockSpec((1, H + 2, Wp + 2, Cin), lambda i: (i, 0, 0, 0)),
            pl.BlockSpec((9 * Cin, Cout), lambda i: (0, 0)),
            pl.BlockSpec((1, Cout), lambda i: (0, 0)),
        ],
        out_specs=pl.BlockSpec((H * Wp, Cout), lambda i: (i, 0)),
        compiler_params=_PARALLEL,
    )(xp, w, b)
    out = out.reshape(B, H, Wp, Cout)
    return out[:, :, :W, :] if Wp != W else out


def pallas_rpn_fused(xp, wc, bc, wh, bh, ctr, scales, A, H, W):
    """Fused RPN conv + head.  xp:(B,H+2,W+2,C) padded feature, ctr:(H*W,8)."""
    B, _, _, Cin = xp.shape
    C = wc.shape[-1]
    kern = functools.partial(_rpn_fused_kernel, H=H, W=W, A=A)
    return pl.pallas_call(
        kern,
        out_shape=jax.ShapeDtypeStruct((B * H * W, NPAD), jnp.float32),
        grid=(B,),
        in_specs=[
            pl.BlockSpec((1, H + 2, W + 2, Cin), lambda i: (i, 0, 0, 0)),
            pl.BlockSpec((9 * Cin, C), lambda i: (0, 0)),
            pl.BlockSpec((1, C), lambda i: (0, 0)),
            pl.BlockSpec((C, NPAD), lambda i: (0, 0)),
            pl.BlockSpec((1, NPAD), lambda i: (0, 0)),
            pl.BlockSpec((H * W, 8), lambda i: (0, 0)),     # batch-shared centers
            pl.BlockSpec((1, A), lambda i: (0, 0)),         # anchor scales
        ],
        out_specs=pl.BlockSpec((H * W, NPAD), lambda i: (i, 0)),
        compiler_params=_PARALLEL,
    )(xp, wc, bc, wh, bh, ctr, scales)


def pallas_box_tower(roi, w1, b1, w2, b2, wh, bh, aux, nc1):
    """Fused FC1->FC2->head->decode box tower, M-tiled over row blocks."""
    M, Kin = roi.shape
    hid = w1.shape[1]
    TM = _row_tile(M)
    kern = functools.partial(_box_tower_kernel, nc1=nc1)
    return pl.pallas_call(
        kern,
        out_shape=jax.ShapeDtypeStruct((M, NPAD), jnp.float32),
        grid=(pl.cdiv(M, TM),),
        in_specs=[
            pl.BlockSpec((TM, Kin), lambda i: (i, 0)),
            pl.BlockSpec((Kin, hid), lambda i: (0, 0)),
            pl.BlockSpec((1, hid), lambda i: (0, 0)),
            pl.BlockSpec((hid, hid), lambda i: (0, 0)),
            pl.BlockSpec((1, hid), lambda i: (0, 0)),
            pl.BlockSpec((hid, NPAD), lambda i: (0, 0)),
            pl.BlockSpec((1, NPAD), lambda i: (0, 0)),
            pl.BlockSpec((TM, 16), lambda i: (i, 0)),
        ],
        out_specs=pl.BlockSpec((TM, NPAD), lambda i: (i, 0)),
        compiler_params=_PARALLEL,
    )(roi, w1, b1, w2, b2, wh, bh, aux)


# -----------------------------------------------------------------------------
# Glue (plain JAX): top-k proposal selection, ROI crop gather
# -----------------------------------------------------------------------------
def roi_crop_nearest(feat, boxes_xywh, img_ids, stride, pf):
    """Nearest-neighbour PfxPf ROI crop.  feat:(B,Hf,Wf,C) boxes:(N,4)."""
    # TODO(synk): DMA-gather ROI Align kernel (PrefetchScalarGridSpec +
    # make_async_copy) fused with box-head FC1; plain-JAX gather at toy sizes.
    Hf, Wf = feat.shape[1], feat.shape[2]
    x, y, w, h = boxes_xywh[:, 0], boxes_xywh[:, 1], boxes_xywh[:, 2], boxes_xywh[:, 3]
    ts = (jnp.arange(pf, dtype=jnp.float32) + 0.5) / pf
    sx = (x[:, None] + w[:, None] * ts[None, :]) / stride
    sy = (y[:, None] + h[:, None] * ts[None, :]) / stride
    ix = jnp.clip(jnp.round(sx - 0.5).astype(jnp.int32), 0, Wf - 1)
    iy = jnp.clip(jnp.round(sy - 0.5).astype(jnp.int32), 0, Hf - 1)
    crops = feat[img_ids[:, None, None], iy[:, :, None], ix[:, None, :], :]
    return crops.reshape(boxes_xywh.shape[0], -1)


# -----------------------------------------------------------------------------
# Parameter init helpers (bf16 matmul weights, f32 biases)
# -----------------------------------------------------------------------------
def _init_linear(key, k_in, k_out, scale=0.1, dtype=jnp.bfloat16):
    w = (scale * jax.random.normal(key, (k_in, k_out), jnp.float32)).astype(dtype)
    b = jnp.zeros((1, k_out), jnp.float32)
    return w, b


def _init_conv3x3(key, c_in, c_out, scale=0.1, dtype=jnp.bfloat16):
    w = (scale * jax.random.normal(key, (9 * c_in, c_out), jnp.float32)).astype(dtype)
    b = jnp.zeros((1, c_out), jnp.float32)
    return w, b


def _pad_head(w, b, npad=NPAD):
    k_in, n = w.shape
    wp = jnp.zeros((k_in, npad), w.dtype).at[:, :n].set(w)
    bp = jnp.zeros((1, npad), jnp.float32).at[:, :n].set(b[0])
    return wp, bp


# -----------------------------------------------------------------------------
# Model (mirrors BaseModel.__init__/_build_* / forward structure)
# -----------------------------------------------------------------------------
class BaseModelPallas:
    def __init__(self, conf_model, key):
        self.conf_backbone = conf_model["backbone"]
        self.conf_RPN = conf_model["RPN"]
        self.conf_box = conf_model["box_head"]
        keys = jax.random.split(key, 16)

        # ---- backbone ('FPN' not in conf -> plain BackBone) ----
        c_in, c1, c2 = self.conf_backbone["channels"]
        self.bb_w1, self.bb_b1 = _init_conv3x3(keys[0], c_in, c1)
        self.bb_w2, self.bb_b2 = _init_conv3x3(keys[1], c1, c2)
        self.feat_channel = c2
        self.feat_stride = 4  # two 2x sub-samplings

        # ---- RPN (3x3 conv + fused cls/reg head, 128-lane padded) ----
        self.num_anchors = self.conf_RPN["num_anchors"]
        self.anchor_scales = jnp.asarray(self.conf_RPN["anchor_scales"], jnp.float32)
        self.topk = self.conf_RPN["pre_nms_topk"]
        self.rpn_wc, self.rpn_bc = _init_conv3x3(keys[2], c2, c2)
        w_rh, b_rh = _init_linear(keys[3], c2, 5 * self.num_anchors)  # [obj|tx|ty|tw|th]
        self.rpn_w_head, self.rpn_b_head = _pad_head(w_rh, b_rh)

        # ---- box head (two FCs + fused cls/reg head, 128-lane padded) ----
        self.pool = self.conf_box["pool_size"]
        hid = self.conf_box["hidden"]
        self.ncls = self.conf_box["num_classes"]
        self.bh_w1, self.bh_b1 = _init_linear(keys[5], self.pool * self.pool * c2, hid)
        self.bh_w2, self.bh_b2 = _init_linear(keys[6], hid, hid)
        w_bh, b_bh = _init_linear(keys[7], hid, self.ncls + 1 + 4)    # [cls|tx ty tw th]
        self.bh_w_head, self.bh_b_head = _pad_head(w_bh, b_bh)

    # ---------------- backbone ----------------
    def backbone(self, img_nchw):
        x = jnp.transpose(img_nchw, (0, 2, 3, 1)).astype(jnp.bfloat16)  # NCHW -> NHWC
        x = conv3x3(x, self.bb_w1, self.bb_b1, act="relu")
        # TODO(synk): fold the stride-2 subsampling into the conv kernel
        # (4x less writeback); strided sublane access on bf16 is risky, kept in glue.
        x = x[:, ::2, ::2, :]
        x = conv3x3(x, self.bb_w2, self.bb_b2, act="relu")
        x = x[:, ::2, ::2, :]
        return x  # (B, Hf, Wf, C) bf16

    # ---------------- RPN ----------------
    def _rpn_centers(self, Hf, Wp):
        """Compact per-position anchor centers (shared across the batch)."""
        ys = (jnp.arange(Hf, dtype=jnp.float32) + 0.5) * self.feat_stride
        xs = (jnp.arange(Wp, dtype=jnp.float32) + 0.5) * self.feat_stride
        cy, cx = jnp.meshgrid(ys, xs, indexing="ij")
        ctr = jnp.zeros((Hf * Wp, 8), jnp.float32)
        ctr = ctr.at[:, 0].set(cx.reshape(-1)).at[:, 1].set(cy.reshape(-1))
        return ctr

    def rpn(self, feat, data, mode):
        B, Hf, Wf, C = feat.shape
        A = self.num_anchors
        Wp = ((Wf + 7) // 8) * 8
        xp = jnp.pad(feat, ((0, 0), (1, 1), (1, 1 + (Wp - Wf)), (0, 0)))
        ctr = self._rpn_centers(Hf, Wp)
        scales = self.anchor_scales.reshape(1, A)

        head = pallas_rpn_fused(xp, self.rpn_wc, self.rpn_bc,
                                self.rpn_w_head, self.rpn_b_head,
                                ctr, scales, A, Hf, Wp)           # (B*Hf*Wp, 128)
        head = head.reshape(B, Hf, Wp, NPAD)[:, :, :Wf, :].reshape(B, Hf * Wf, NPAD)

        obj = head[..., :A].reshape(B, Hf * Wf * A)               # sigmoid objectness
        props = jnp.stack(
            [head[..., A:2 * A], head[..., 2 * A:3 * A],
             head[..., 3 * A:4 * A], head[..., 4 * A:5 * A]], axis=-1)
        props = props.reshape(B, Hf * Wf * A, 4)                  # xywh

        # TODO(synk): NMS has no clean Pallas equivalent; plain top-k selection.
        _, idx = jax.lax.top_k(obj, self.topk)                    # (B, K)
        props_k = jnp.take_along_axis(props, idx[:, :, None], axis=1)

        rpn_losses = {}
        # TODO(synk): train-mode RPN loss (anchor-GT matching, sampling) omitted.
        return props_k, rpn_losses

    # ---------------- box head ----------------
    def _box_aux(self, boxes, inv_trans, img_id_map):
        n = boxes.shape[0]
        cx = boxes[:, 0] + 0.5 * boxes[:, 2]
        cy = boxes[:, 1] + 0.5 * boxes[:, 3]
        a6 = inv_trans.reshape(inv_trans.shape[0], 6).astype(jnp.float32)[img_id_map]
        aux = jnp.zeros((n, 16), jnp.float32)
        aux = aux.at[:, 0].set(cx).at[:, 1].set(cy)
        aux = aux.at[:, 2].set(boxes[:, 2]).at[:, 3].set(boxes[:, 3])
        aux = aux.at[:, 4:10].set(a6)
        return aux

    def box_head(self, feat, proposals, data, mode):
        if mode == "train":
            # TODO(synk): train-mode box-head losses (proposal-GT matching) omitted.
            return {}
        B, K = proposals.shape[0], proposals.shape[1]
        boxes = proposals.reshape(B * K, 4)
        img_id_map = jnp.repeat(jnp.arange(B, dtype=jnp.int32), K)

        roi = roi_crop_nearest(feat, boxes, img_id_map, self.feat_stride, self.pool)
        nc1 = self.ncls + 1
        aux = self._box_aux(boxes, data["inv_trans"], img_id_map)
        out = pallas_box_tower(roi, self.bh_w1, self.bh_b1, self.bh_w2, self.bh_b2,
                               self.bh_w_head, self.bh_b_head, aux, nc1)

        probs = out[:, :nc1]
        bboxes = out[:, nc1:nc1 + 4]                              # already in image coords
        scores = jnp.max(probs[:, 1:], axis=-1)                   # best fg class
        return bboxes, scores, img_id_map

    # ---------------- full forward ----------------
    def forward(self, data, mode):
        feature_map = self.backbone(data["img"])
        proposals, rpn_losses = self.rpn(feature_map, data, mode)
        if mode == "train":
            losses = dict()
            losses.update(rpn_losses)
            losses.update(self.box_head(feature_map, proposals, data, mode))
            return losses
        # NOTE: transform_xywh_with_img_id (per-box inverse-affine back to the
        # original image) is fused into the box-head kernel epilogue.
        bboxes, scores, img_id_map = self.box_head(feature_map, proposals, data, mode)
        return bboxes, scores, img_id_map


# -----------------------------------------------------------------------------
# main
# -----------------------------------------------------------------------------
if __name__ == "__main__":
    conf_model = {
        "backbone": {"input_size": 16, "channels": [3, 16, 16]},  # no 'FPN' key
        "RPN": {"num_anchors": 3, "anchor_scales": [4.0, 8.0, 12.0], "pre_nms_topk": 8},
        "box_head": {"pool_size": 2, "hidden": 32, "num_classes": 3},
    }

    key = jax.random.PRNGKey(0)
    k_img, k_params, k_aff = jax.random.split(key, 3)

    B = 2
    img = jax.random.normal(k_img, (B, 3, 16, 16), jnp.float32)  # NCHW (PyTorch conv layout)
    inv_trans = jnp.stack(
        [jnp.array([[2.0, 0.0, 5.0], [0.0, 2.0, 7.0]], jnp.float32)] * B, axis=0
    ) + 0.01 * jax.random.normal(k_aff, (B, 2, 3), jnp.float32)
    data = {
        "img": img,
        "inv_trans": inv_trans,
        "img_id": jnp.array([7, 13], jnp.int32),
    }

    model = BaseModelPallas(conf_model, jax.random.PRNGKey(42))
    bboxes, scores, img_id_map = model.forward(data, mode="eval")
    jax.block_until_ready((bboxes, scores, img_id_map))

    K = conf_model["RPN"]["pre_nms_topk"]
    assert bboxes.shape == (B * K, 4)
    assert scores.shape == (B * K,)
    assert img_id_map.shape == (B * K,)
    assert bool(jnp.all(jnp.isfinite(bboxes))) and bool(jnp.all(jnp.isfinite(scores)))
    print("KERNEL_OK")
</pallas_src>

<mosaic_0001>
module attributes {stable_mosaic.version = 11 : i64} {
  func.func @_conv3x3_kernel(%arg0: i32, %arg1: memref<1x18x18x3xbf16, #tpu.memory_space<vmem>>, %arg2: memref<27x16xbf16, #tpu.memory_space<vmem>>, %arg3: memref<1x16xf32, #tpu.memory_space<vmem>>, %arg4: memref<256x16xbf16, #tpu.memory_space<vmem>>) attributes {dimension_semantics = [#tpu.dimension_semantics<parallel>], iteration_bounds = array<i64: 2>, scalar_prefetch = 0 : i64, scratch_operands = 0 : i64, tpu.core_type = #tpu.core_type<tc>, window_params = [{transform_indices = @transform_0, window_bounds = array<i64: 1, 18, 18, 3>}, {pipeline_mode = #tpu.pipeline_mode<synchronous>, transform_indices = @transform_1, window_bounds = array<i64: 27, 16>}, {pipeline_mode = #tpu.pipeline_mode<synchronous>, transform_indices = @transform_2, window_bounds = array<i64: 1, 16>}, {transform_indices = @transform_3, window_bounds = array<i64: 256, 16>}]} {
    %c0 = arith.constant 0 : index
    %c0_0 = arith.constant 0 : index
    %c0_1 = arith.constant 0 : index
    %c0_2 = arith.constant 0 : index
    %0 = vector.load %arg1[%c0, %c0_0, %c0_1, %c0_2] : memref<1x18x18x3xbf16, #tpu.memory_space<vmem>>, vector<1x16x16x3xbf16>
    %1 = vector.shape_cast %0 : vector<1x16x16x3xbf16> to vector<16x16x3xbf16>
    %2 = vector.shape_cast %1 : vector<16x16x3xbf16> to vector<256x3xbf16>
    %c0_3 = arith.constant 0 : index
    %c0_4 = arith.constant 0 : index
    %c1 = arith.constant 1 : index
    %c0_5 = arith.constant 0 : index
    %3 = vector.load %arg1[%c0_3, %c0_4, %c1, %c0_5] : memref<1x18x18x3xbf16, #tpu.memory_space<vmem>>, vector<1x16x16x3xbf16>
    %4 = vector.shape_cast %3 : vector<1x16x16x3xbf16> to vector<16x16x3xbf16>
    %5 = vector.shape_cast %4 : vector<16x16x3xbf16> to vector<256x3xbf16>
    %c0_6 = arith.constant 0 : index
    %c0_7 = arith.constant 0 : index
    %c2 = arith.constant 2 : index
    %c0_8 = arith.constant 0 : index
    %6 = vector.load %arg1[%c0_6, %c0_7, %c2, %c0_8] : memref<1x18x18x3xbf16, #tpu.memory_space<vmem>>, vector<1x16x16x3xbf16>
    %7 = vector.shape_cast %6 : vector<1x16x16x3xbf16> to vector<16x16x3xbf16>
    %8 = vector.shape_cast %7 : vector<16x16x3xbf16> to vector<256x3xbf16>
    %c0_9 = arith.constant 0 : index
    %c1_10 = arith.constant 1 : index
    %c0_11 = arith.constant 0 : index
    %c0_12 = arith.constant 0 : index
    %9 = vector.load %arg1[%c0_9, %c1_10, %c0_11, %c0_12] : memref<1x18x18x3xbf16, #tpu.memory_space<vmem>>, vector<1x16x16x3xbf16>
    %10 = vector.shape_cast %9 : vector<1x16x16x3xbf16> to vector<16x16x3xbf16>
    %11 = vector.shape_cast %10 : vector<16x16x3xbf16> to vector<256x3xbf16>
    %c0_13 = arith.constant 0 : index
    %c1_14 = arith.constant 1 : index
    %c1_15 = arith.constant 1 : index
    %c0_16 = arith.constant 0 : index
    %12 = vector.load %arg1[%c0_13, %c1_14, %c1_15, %c0_16] : memref<1x18x18x3xbf16, #tpu.memory_space<vmem>>, vector<1x16x16x3xbf16>
    %13 = vector.shape_cast %12 : vector<1x16x16x3xbf16> to vector<16x16x3xbf16>
    %14 = vector.shape_cast %13 : vector<16x16x3xbf16> to vector<256x3xbf16>
    %c0_17 = arith.constant 0 : index
    %c1_18 = arith.constant 1 : index
    %c2_19 = arith.constant 2 : index
    %c0_20 = arith.constant 0 : index
    %15 = vector.load %arg1[%c0_17, %c1_18, %c2_19, %c0_20] : memref<1x18x18x3xbf16, #tpu.memory_space<vmem>>, vector<1x16x16x3xbf16>
    %16 = vector.shape_cast %15 : vector<1x16x16x3xbf16> to vector<16x16x3xbf16>
    %17 = vector.shape_cast %16 : vector<16x16x3xbf16> to vector<256x3xbf16>
    %c0_21 = arith.constant 0 : index
    %c2_22 = arith.constant 2 : index
    %c0_23 = arith.constant 0 : index
    %c0_24 = arith.constant 0 : index
    %18 = vector.load %arg1[%c0_21, %c2_22, %c0_23, %c0_24] : memref<1x18x18x3xbf16, #tpu.memory_space<vmem>>, vector<1x16x16x3xbf16>
    %19 = vector.shape_cast %18 : vector<1x16x16x3xbf16> to vector<16x16x3xbf16>
    %20 = vector.shape_cast %19 : vector<16x16x3xbf16> to vector<256x3xbf16>
    %c0_25 = arith.constant 0 : index
    %c2_26 = arith.constant 2 : index
    %c1_27 = arith.constant 1 : index
    %c0_28 = arith.constant 0 : index
    %21 = vector.load %arg1[%c0_25, %c2_26, %c1_27, %c0_28] : memref<1x18x18x3xbf16, #tpu.memory_space<vmem>>, vector<1x16x16x3xbf16>
    %22 = vector.shape_cast %21 : vector<1x16x16x3xbf16> to vector<16x16x3xbf16>
    %23 = vector.shape_cast %22 : vector<16x16x3xbf16> to vector<256x3xbf16>
    %c0_29 = arith.constant 0 : index
    %c2_30 = arith.constant 2 : index
    %c2_31 = arith.constant 2 : index
    %c0_32 = arith.constant 0 : index
    %24 = vector.load %arg1[%c0_29, %c2_30, %c2_31, %c0_32] : memref<1x18x18x3xbf16, #tpu.memory_space<vmem>>, vector<1x16x16x3xbf16>
    %25 = vector.shape_cast %24 : vector<1x16x16x3xbf16> to vector<16x16x3xbf16>
    %26 = vector.shape_cast %25 : vector<16x16x3xbf16> to vector<256x3xbf16>
    %27 = tpu.concatenate %2, %5, %8, %11, %14, %17, %20, %23, %26 in 1 : vector<256x3xbf16>, vector<256x3xbf16>, vector<256x3xbf16>, vector<256x3xbf16>, vector<256x3xbf16>, vector<256x3xbf16>, vector<256x3xbf16>, vector<256x3xbf16>, vector<256x3xbf16> -> vector<256x27xbf16>
    %c0_33 = arith.constant 0 : index
    %c0_34 = arith.constant 0 : index
    %28 = vector.load %arg2[%c0_33, %c0_34] : memref<27x16xbf16, #tpu.memory_space<vmem>>, vector<27x16xbf16>
    %cst = arith.constant dense<0.000000e+00> : vector<256x16xf32>
    %29 = tpu.matmul %27, %28, %cst {dimension_numbers = #tpu.dot_dimension_numbers<[1], [0], [0], [1], [0, 0, 1, 1], [], []>} : vector<256x27xbf16>, vector<27x16xbf16>, vector<256x16xf32> -> vector<256x16xf32>
    %c0_35 = arith.constant 0 : index
    %c0_36 = arith.constant 0 : index
    %30 = vector.load %arg3[%c0_35, %c0_36] : memref<1x16xf32, #tpu.memory_space<vmem>>, vector<1x16xf32>
    %31 = vector.broadcast %30 : vector<1x16xf32> to vector<256x16xf32>
    %32 = arith.addf %29, %31 : vector<256x16xf32>
    %cst_37 = arith.constant 0.000000e+00 : f32
    %33 = vector.broadcast %cst_37 : f32 to vector<256x16xf32>
    %34 = arith.maximumf %32, %33 : vector<256x16xf32>
    %35 = arith.truncf %34 : vector<256x16xf32> to vector<256x16xbf16>
    %c0_38 = arith.constant 0 : index
    %c0_39 = arith.constant 0 : index
    %36 = vector.load %arg4[%c0_38, %c0_39] : memref<256x16xbf16, #tpu.memory_space<vmem>>, vector<256x16xbf16>
    tpu.vector_store %arg4[%c0_38, %c0_39], %35 {strides = array<i32>} : memref<256x16xbf16, #tpu.memory_space<vmem>>, vector<256x16xbf16>,
    return
  }
  func.func @transform_0(%arg0: i32) -> (i32, i32, i32, i32) {
    %c0_i32 = arith.constant 0 : i32
    %c0_i32_0 = arith.constant 0 : i32
    %c0_i32_1 = arith.constant 0 : i32
    %c0_i32_2 = arith.constant 0 : i32
    return %arg0, %c0_i32, %c0_i32_0, %c0_i32_1 : i32, i32, i32, i32
  }
  func.func @transform_1(%arg0: i32) -> (i32, i32) {
    %c0_i32 = arith.constant 0 : i32
    %c0_i32_0 = arith.constant 0 : i32
    %c0_i32_1 = arith.constant 0 : i32
    return %c0_i32, %c0_i32_0 : i32, i32
  }
  func.func @transform_2(%arg0: i32) -> (i32, i32) {
    %c0_i32 = arith.constant 0 : i32
    %c0_i32_0 = arith.constant 0 : i32
    %c0_i32_1 = arith.constant 0 : i32
    return %c0_i32, %c0_i32_0 : i32, i32
  }
  func.func @transform_3(%arg0: i32) -> (i32, i32) {
    %c0_i32 = arith.constant 0 : i32
    %c0_i32_0 = arith.constant 0 : i32
    return %arg0, %c0_i32 : i32, i32
  }
}

</mosaic_0001>

<bundles_post_ra>
// kernel: tpu_custom_call.1
= control target key start
LH: loop header
LB: loop body
LE: loop exit
PB: predicated region body
PF: predicated region fallthrough
CT: control target
= control target key end

     0   :  { %s3836_s12 = smov 0   ;;  %s5666_s0 = inlined_call_operand.vmem [shape: bf16[2,18,18,3], index: 0, kind: input, shape index: {}]   ;;  %s5667_s1 = inlined_call_operand.vmem [shape: bf16[27,16], index: 1, kind: input, shape index: {}]   ;;  %s5668_s2 = inlined_call_operand.vmem [shape: f32[1,16], index: 2, kind: input, shape index: {}]   ;;  %s5669_s3 = inlined_call_operand.vmem [shape: bf16[512,16], index: 3, kind: output, shape index: {}]  }
   0x1 LB: > { %s3842_s13 = sadd.s32 4294967295, %s3805_s12   ;;  %p3326_p0 = scmp.ge.s32.totalorder %s3805_s12, 1  ;;  %s3805_s12 = sphi %s3836_s12, %s13_s12  }
   0x2   : > { %p137_p1 = scmp.lt.s32.totalorder %s3805_s12, 3 }
   0x4   : > { %p138_p2 = pnand %p3326_p0, %p137_p1 }
   0x5   : > { %p161_p3 = scmp.lt.s32.totalorder (!%p138_p2), %s3842_s13, 1  ;;  %s3807_s19 = smov (!%p138_p2), 3  }
   0x6   : > { %141 = sbr.rel (%p138_p2) target bundleno = 661 (0x295), region = 32  ;;  %s3808_s20 = smov (!%p138_p2), 6  }
   0x7   : > { %s3809_s21 = smov (!%p138_p2), 9   ;;  %s3810_s22 = smov (!%p138_p2), 12  }
   0x8   : > { %s3811_s23 = smov (!%p138_p2), 18   ;;  %s3812_s24 = smov (!%p138_p2), 15  }
   0x9   : > { %s3813_s25 = smov (!%p138_p2), 21   ;;  %s3814_s26 = smov (!%p138_p2), 24  }
   0xa   : > { %s3328_s6 = sshll.u32 (!%p138_p2), %s3842_s13, 5 }
   0xb   : > { %s162_s14 = scalar_select %p161_p3, %s3842_s13, 1  ;;  %vm221_vm0 = vsmask.f32 3328  ;;  %vm222_vm1 = vsmask.f32 7440  ;;  %vm672_vm3 = vcmask 1042432  }
   0xc   : > { %vm3879_vm2 = vmor %vm221_vm0, %vm222_vm1  ;;  %vm673_vm4 = vcmask 1046532   ;;  %vm2741_vm6 = vcmask 23552   ;;  %vm2790_vm7 = vcmask 48128   ;;  %vm2823_vm8 = vcmask 72704   ;;  %p167_p4 = scmp.lt.s32.totalorder %s3328_s6, 63 }
   0xd   : > { %s3780_s15 = smul.u32 216, %s162_s14  ;;  %vm4081_vm5 = vmor %vm672_vm3, %vm673_vm4  ;;  %vm2856_vm9 = vcmask 97280   ;;  %vm2889_vm10 = vcmask 121856   ;;  %vm3073_vm11 = vcmask 1044480   ;;  %vm2922_vm12 = vcmask 146432  }
   0xe   : > { %vm3074_vm13 = vcmask 1045504   ;;  %vm2955_vm14 = vcmask 171008   ;;  %vm2988_vm15 = vcmask 195584   ;;  %vm3040_vm0 = vcmask 220160   ;;  %s5675_s6 = smov (!%p167_p4, %s3328_s6), 63 }
   0xf   : > { %s3851_s18 = scalar_lea.vmem %s5666_s0, %s3780_s15  ;;  %s3329_s9 = sshll.u32 %s5675_s6, 2  ;;  %vm3233_vm1 = vcmask 125952  }
  0x10   : > { %v181_v0 = vld [vmem:[%s3851_s18 + $0x30] sm:$0xf]  ;;  %v3855_v1 = vld [vmem:[%s3851_s18 + $0x34] sm:$0xf]  ;;  %v3858_v2 = vld [vmem:[%s3851_s18 + $0x38] sm:$0x1]  ;;  %s5538_s13 = scalar_lea.vmem %s5669_s3, %s3329_s9 }
  0x11   : > { %v321_v3 = vshrl.u32 %v181_v0, 16  ;;  %v324_v4 = vshll.u32 %v181_v0, 16  ;;  %v330_v5 = vshll.u32 %v3855_v1, 16  ;;  %v334_v6 = vshrl.u32 %v3855_v1, 16  ;;  %v177_v7 = vld [vmem:[%s3851_s18 + $0x18] sm:$0xf] }
  0x12   : > { %v340_v8 = vshll.u32 %v3858_v2, 16  ;;  %v3865_v9 = vld [vmem:[%s3851_s18 + $0x1c] sm:$0xf]  ;;  %v3868_v10 = vld [vmem:[%s3851_s18 + $0x20] sm:$0x1]  ;;  %v273_v11 = vshrl.u32 %v177_v7, 16 }
  0x13   : > { %v323_v12 = vrot.slane %v321_v3, 4  ;;  %v326_v13 = vrot.slane %v324_v4, 5  ;;  %v332_v14 = vrot.slane %v330_v5, 5  ;;  %v336_v15 = vrot.slane %v334_v6, 4  ;;  %v173_v16 = vld [vmem:[%s3851_s18] sm:$0xf] }
  0x14   : > { %v342_v17 = vrot.slane %v340_v8, 5  ;;  %v275_v18 = vrot.slane %v273_v11, 4  ;;  %v276_v19 = vshll.u32 %v177_v7, 16  ;;  %v282_v20 = vshll.u32 %v3865_v9, 16  ;;  %v3875_v25 = vld [vmem:[%s3851_s18 + $0x4] sm:$0xf] }
  0x15   : > { %v327_v21 = vor.u32 %v326_v13, %v323_v12  ;;  %v337_v22 = vor.u32 %v336_v15, %v332_v14  ;;  %v286_v23 = vshrl.u32 %v3865_v9, 16  ;;  %v292_v24 = vshll.u32 %v3868_v10, 16  ;;  %v3884_v36 = vld [vmem:[%s3851_s18 + $0x8] sm:$0x1]  ;;  %v183_v44 = vld [vmem:[%s3851_s18 + $0x3c] sm:$0xf] }
  0x16   : > { %v278_v27 = vrot.slane %v276_v19, 5  ;;  %v284_v28 = vrot.slane %v282_v20, 5  ;;  %v225_v29 = vshrl.u32 %v173_v16, 16  ;;  %v228_v30 = vshll.u32 %v173_v16, 16  ;;  %v3897_v56 = vld [vmem:[%s3851_s18 + $0x40] sm:$0xf] }
  0x17   : > { %v328_v31 = vrot.slane %v327_v21, 4  ;;  %v338_v32 = vrot.slane %v337_v22, 4  ;;  %v288_v33 = vrot.slane %v286_v23, 4  ;;  %v294_v34 = vrot.slane %v292_v24, 5  ;;  %v3902_v62 = vld [vmem:[%s3851_s18 + $0x44] sm:$0x1] }
  0x18   : > { %v279_v35 = vor.u32 %v278_v27, %v275_v18  ;;  %v227_v37 = vrot.slane %v225_v29, 4  ;;  %v230_v38 = vrot.slane %v228_v30, 5  ;;  %v234_v39 = vshll.u32 %v3875_v25, 16  ;;  %v179_v63 = vld [vmem:[%s3851_s18 + $0x24] sm:$0xf] }
  0x19   : > { %v333_v40 = vsel %vm3879_vm2, %v328_v31, %v332_v14  ;;  %v343_v41 = vsel %vm3879_vm2, %v338_v32, %v342_v17  ;;  %v289_v42 = vor.u32 %v288_v33, %v284_v28  ;;  %v238_v43 = vshrl.u32 %v3875_v25, 16  ;;  %v3911_v12 = vld [vmem:[%s3851_s18 + $0x28] sm:$0xf]  ;;  %v3915_v16 = vld [vmem:[%s3851_s18 + $0x2c] sm:$0x1] }
  0x1a   : > { %v2077_v45 = vunpack.c.l.b16 %v333_v40  ;;  %v2078_v46 = vunpack.c.l.b16 %v343_v41  ;;  %v280_v47 = vrot.slane %v279_v35, 4  ;;  %v231_v48 = vor.u32 %v230_v38, %v227_v37  ;;  %v175_v22 = vld [vmem:[%s3851_s18 + $0xc] sm:$0xf]  ;;  %v3925_v37 = vld [vmem:[%s3851_s18 + $0x10] sm:$0xf] }
  0x1b   : > { %v290_v49 = vrot.slane %v289_v42, 4  ;;  %v236_v50 = vrot.slane %v234_v39, 5  ;;  %v240_v51 = vrot.slane %v238_v43, 4  ;;  %v244_v52 = vshll.u32 %v3884_v36, 16  ;;  %v3928_v43 = vld [vmem:[%s3851_s18 + $0x14] sm:$0x1] }
  0x1c   : > { %v2105_v53 = vpack.c.b16 %v2078_v46, %v2077_v45  ;;  %v285_v54 = vsel %vm3879_vm2, %v280_v47, %v284_v28  ;;  %v232_v55 = vrot.slane %v231_v48, 4  ;;  %v345_v57 = vshrl.u32 %v183_v44, 16  ;;  %v189_v48 = vld [vmem:[%s3851_s18 + $0x60] sm:$0xf] }
  0x1d   : > { %v295_v58 = vsel %vm3879_vm2, %v290_v49, %v294_v34  ;;  %v2073_v59 = vunpack.c.l.b16 %v285_v54  ;;  %v241_v60 = vor.u32 %v240_v51, %v236_v50  ;;  %v246_v61 = vrot.slane %v244_v52, 5 }
  0x1e   : > { %2125 = vrot.lane.b32.xlu2 %v2105_v53, %s3807_s19  ;;  %v2074_v0 = vunpack.c.l.b16 %v295_v58  ;;  %v237_v3 = vsel %vm3879_vm2, %v232_v55, %v236_v50  ;;  %v347_v4 = vrot.slane %v345_v57, 4  ;;  %v348_v5 = vshll.u32 %v183_v44, 16 }
  0x1f   : > { %v242_v6 = vrot.slane %v241_v60, 4  ;;  %v2069_v7 = vunpack.c.l.b16 %v237_v3  ;;  %v354_v8 = vshll.u32 %v3897_v56, 16  ;;  %v358_v11 = vshrl.u32 %v3897_v56, 16 }
  0x20   : > { %v2103_v13 = vpack.c.b16 %v2074_v0, %v2073_v59  ;;  %v350_v14 = vrot.slane %v348_v5, 5  ;;  %v364_v15 = vshll.u32 %v3902_v62, 16  ;;  %v297_v17 = vshrl.u32 %v179_v63, 16 }
  0x21   : > { %v247_v18 = vsel %vm3879_vm2, %v242_v6, %v246_v61  ;;  %v356_v19 = vrot.slane %v354_v8, 5  ;;  %v360_v20 = vrot.slane %v358_v11, 4  ;;  %v300_v21 = vshll.u32 %v179_v63, 16  ;;  %v3942_v61 = vld [vmem:[%s3851_s18 + $0x64] sm:$0xf] }
  0x22   : > { %2121 = vrot.lane.b32.xlu1 %v2103_v13, %s3807_s19  ;;  %v2070_v23 = vunpack.c.l.b16 %v247_v18  ;;  %v351_v24 = vor.u32 %v350_v14, %v347_v4  ;;  %v366_v27 = vrot.slane %v364_v15, 5  ;;  %v299_v28 = vrot.slane %v297_v17, 4  ;;  %v3945_v6 = vld [vmem:[%s3851_s18 + $0x68] sm:$0x1] }
  0x23   : > { %v361_v29 = vor.u32 %v360_v20, %v356_v19  ;;  %v302_v30 = vrot.slane %v300_v21, 5  ;;  %v306_v31 = vshll.u32 %v3911_v12, 16  ;;  %v310_v32 = vshrl.u32 %v3911_v12, 16 }
  0x24   : > { %v2101_v33 = vpack.c.b16 %v2070_v23, %v2069_v7  ;;  %v352_v34 = vrot.slane %v351_v24, 4  ;;  %v316_v35 = vshll.u32 %v3915_v16, 16  ;;  %v249_v38 = vshrl.u32 %v175_v22, 16  ;;  %v187_v7 = vld [vmem:[%s3851_s18 + $0x54] sm:$0xf] }
  0x25   : > { %v362_v39 = vrot.slane %v361_v29, 4  ;;  %v303_v40 = vor.u32 %v302_v30, %v299_v28  ;;  %v308_v41 = vrot.slane %v306_v31, 5  ;;  %v312_v42 = vrot.slane %v310_v32, 4  ;;  %v3955_v23 = vld [vmem:[%s3851_s18 + $0x58] sm:$0xf] }
  0x26   : > { %2117 = vrot.lane.b32.xlu0 %v2101_v33, %s3807_s19  ;;  %v357_v44 = vsel %vm3879_vm2, %v352_v34, %v356_v19  ;;  %v318_v45 = vrot.slane %v316_v35, 5  ;;  %v251_v46 = vrot.slane %v249_v38, 4  ;;  %v252_v47 = vshll.u32 %v175_v22, 16  ;;  %v3960_v31 = vld [vmem:[%s3851_s18 + $0x5c] sm:$0x1] }
  0x27   : > { %v367_v49 = vsel %vm3879_vm2, %v362_v39, %v366_v27  ;;  %v2079_v50 = vunpack.c.l.b16 %v357_v44  ;;  %v304_v51 = vrot.slane %v303_v40, 4  ;;  %v313_v52 = vor.u32 %v312_v42, %v308_v41  ;;  %v185_v42 = vld [vmem:[%s3851_s18 + $0x48] sm:$0xf] }
  0x28   : > { %v2080_v53 = vunpack.c.l.b16 %v367_v49  ;;  %v254_v54 = vrot.slane %v252_v47, 5  ;;  %v258_v55 = vshll.u32 %v3925_v37, 16  ;;  %v262_v57 = vshrl.u32 %v3925_v37, 16 }
  0x29   : > { %v309_v58 = vsel %vm3879_vm2, %v304_v51, %v308_v41  ;;  %v314_v59 = vrot.slane %v313_v52, 4  ;;  %v268_v60 = vshll.u32 %v3928_v43, 16  ;;  %v417_v63 = vshrl.u32 %v189_v48, 16 }
  0x2a   : > { %v2106_v0 = vpack.c.b16 %v2080_v53, %v2079_v50  ;;  %v2075_v3 = vunpack.c.l.b16 %v309_v58  ;;  %v255_v4 = vor.u32 %v254_v54, %v251_v46  ;;  %v260_v5 = vrot.slane %v258_v55, 5  ;;  %v3970_v55 = vld [vmem:[%s3851_s18 + $0x4c] sm:$0xf] }
  0x2b   : > { %v319_v8 = vsel %vm3879_vm2, %v314_v59, %v318_v45  ;;  %v264_v11 = vrot.slane %v262_v57, 4  ;;  %v270_v13 = vrot.slane %v268_v60, 5  ;;  %v419_v14 = vrot.slane %v417_v63, 4  ;;  %v3975_v63 = vld [vmem:[%s3851_s18 + $0x50] sm:$0x1] }
  0x2c   : > { %2127 = vrot.lane.b32.xlu2 %v2106_v0, %s3807_s19  ;;  %v2076_v15 = vunpack.c.l.b16 %v319_v8  ;;  %v256_v17 = vrot.slane %v255_v4, 4  ;;  %v420_v18 = vshll.u32 %v189_v48, 16  ;;  %v426_v19 = vshll.u32 %v3942_v61, 16 }
  0x2d   : > { %v265_v20 = vor.u32 %v264_v11, %v260_v5  ;;  %v430_v21 = vshrl.u32 %v3942_v61, 16  ;;  %v436_v22 = vshll.u32 %v3945_v6, 16  ;;  %v393_v24 = vshrl.u32 %v187_v7, 16 }
  0x2e   : > { %v2104_v27 = vpack.c.b16 %v2076_v15, %v2075_v3  ;;  %v261_v28 = vsel %vm3879_vm2, %v256_v17, %v260_v5  ;;  %v422_v29 = vrot.slane %v420_v18, 5  ;;  %v428_v30 = vrot.slane %v426_v19, 5  ;;  %v195_v3 = vld [vmem:[%s3851_s18 + $0x84] sm:$0xf] }
  0x2f   : > { %v266_v32 = vrot.slane %v265_v20, 4  ;;  %v2071_v33 = vunpack.c.l.b16 %v261_v28  ;;  %v432_v34 = vrot.slane %v430_v21, 4  ;;  %v438_v35 = vrot.slane %v436_v22, 5  ;;  %v3987_v28 = vld [vmem:[%s3851_s18 + $0x88] sm:$0xf] }
  0x30   : > { %2123 = vrot.lane.b32.xlu1 %v2104_v27, %s3807_s19  ;;  %v423_v38 = vor.u32 %v422_v29, %v419_v14  ;;  %v395_v39 = vrot.slane %v393_v24, 4  ;;  %v396_v40 = vshll.u32 %v187_v7, 16  ;;  %v402_v41 = vshll.u32 %v3955_v23, 16  ;;  %v3990_v29 = vld [vmem:[%s3851_s18 + $0x8c] sm:$0x1] }
  0x31   : > { %v271_v44 = vsel %vm3879_vm2, %v266_v32, %v270_v13  ;;  %v433_v45 = vor.u32 %v432_v34, %v428_v30  ;;  %v406_v46 = vshrl.u32 %v3955_v23, 16  ;;  %v412_v47 = vshll.u32 %v3960_v31, 16 }
  0x32   : > { %v2072_v48 = vunpack.c.l.b16 %v271_v44  ;;  %v424_v49 = vrot.slane %v423_v38, 4  ;;  %v398_v50 = vrot.slane %v396_v40, 5  ;;  %v404_v51 = vrot.slane %v402_v41, 5 }
  0x33   : > { %v434_v52 = vrot.slane %v433_v45, 4  ;;  %v408_v53 = vrot.slane %v406_v46, 4  ;;  %v414_v54 = vrot.slane %v412_v47, 5  ;;  %v369_v57 = vshrl.u32 %v185_v42, 16 }
  0x34   : > { %v2102_v58 = vpack.c.b16 %v2072_v48, %v2071_v33  ;;  %v429_v59 = vsel %vm3879_vm2, %v424_v49, %v428_v30  ;;  %v399_v60 = vor.u32 %v398_v50, %v395_v39  ;;  %v372_v0 = vshll.u32 %v185_v42, 16  ;;  %v4002_v50 = vld [vmem:[%s3851_s18 + $0x7c] sm:$0xf] }
  0x35   : > { %v439_v4 = vsel %vm3879_vm2, %v434_v52, %v438_v35  ;;  %v2085_v5 = vunpack.c.l.b16 %v429_v59  ;;  %v409_v7 = vor.u32 %v408_v53, %v404_v51  ;;  %v371_v8 = vrot.slane %v369_v57, 4  ;;  %v193_v35 = vld [vmem:[%s3851_s18 + $0x78] sm:$0xf] }
  0x36   : > { %2119 = vrot.lane.b32.xlu0 %v2102_v58, %s3807_s19  ;;  %v2086_v11 = vunpack.c.l.b16 %v439_v4  ;;  %v400_v13 = vrot.slane %v399_v60, 4  ;;  %v374_v14 = vrot.slane %v372_v0, 5  ;;  %v378_v15 = vshll.u32 %v3970_v55, 16  ;;  %v4005_v58 = vld [vmem:[%s3851_s18 + $0x80] sm:$0x1] }
  0x37   : > { %v410_v17 = vrot.slane %v409_v7, 4  ;;  %v382_v18 = vshrl.u32 %v3970_v55, 16  ;;  %v388_v19 = vshll.u32 %v3975_v63, 16  ;;  %v489_v20 = vshrl.u32 %v195_v3, 16  ;;  %v191_v4 = vld [vmem:[%s3851_s18 + $0x6c] sm:$0xf] }
  0x38   : > { %v2109_v21 = vpack.c.b16 %v2086_v11, %v2085_v5  ;;  %v405_v22 = vsel %vm3879_vm2, %v400_v13, %v404_v51  ;;  %v375_v24 = vor.u32 %v374_v14, %v371_v8  ;;  %v380_v27 = vrot.slane %v378_v15, 5 }
  0x39   : > { %v415_v30 = vsel %vm3879_vm2, %v410_v17, %v414_v54  ;;  %v2083_v32 = vunpack.c.l.b16 %v405_v22  ;;  %v384_v33 = vrot.slane %v382_v18, 4  ;;  %v390_v34 = vrot.slane %v388_v19, 5 }
  0x3a   : > { %2133 = vrot.lane.b32.xlu2 %v2109_v21, %s3807_s19  ;;  %v2084_v38 = vunpack.c.l.b16 %v415_v30  ;;  %v376_v39 = vrot.slane %v375_v24, 4  ;;  %v491_v40 = vrot.slane %v489_v20, 4  ;;  %v492_v41 = vshll.u32 %v195_v3, 16  ;;  %v4015_v21 = vld [vmem:[%s3851_s18 + $0x70] sm:$0xf] }
  0x3b   : > { %v385_v42 = vor.u32 %v384_v33, %v380_v27  ;;  %v498_v44 = vshll.u32 %v3987_v28, 16  ;;  %v502_v45 = vshrl.u32 %v3987_v28, 16  ;;  %v508_v46 = vshll.u32 %v3990_v29, 16  ;;  %v4020_v33 = vld [vmem:[%s3851_s18 + $0x74] sm:$0x1] }
  0x3c   : > { %v2108_v47 = vpack.c.b16 %v2084_v38, %v2083_v32  ;;  %v381_v48 = vsel %vm3879_vm2, %v376_v39, %v380_v27  ;;  %v494_v49 = vrot.slane %v492_v41, 5  ;;  %v465_v51 = vshrl.u32 %v193_v35, 16 }
  0x3d   : > { %v386_v52 = vrot.slane %v385_v42, 4  ;;  %v2081_v53 = vunpack.c.l.b16 %v381_v48  ;;  %v500_v54 = vrot.slane %v498_v44, 5  ;;  %v504_v57 = vrot.slane %v502_v45, 4 }
  0x3e   : > { %2131 = vrot.lane.b32.xlu1 %v2108_v47, %s3807_s19  ;;  %v495_v59 = vor.u32 %v494_v49, %v491_v40  ;;  %v510_v60 = vrot.slane %v508_v46, 5  ;;  %v467_v0 = vrot.slane %v465_v51, 4  ;;  %v468_v3 = vshll.u32 %v193_v35, 16 }
  0x3f   : > { %v391_v5 = vsel %vm3879_vm2, %v386_v52, %v390_v34  ;;  %v505_v7 = vor.u32 %v504_v57, %v500_v54  ;;  %v474_v8 = vshll.u32 %v4002_v50, 16  ;;  %v478_v11 = vshrl.u32 %v4002_v50, 16  ;;  %v201_v34 = vld [vmem:[%s3851_s18 + $0xa8] sm:$0xf]  ;;  %v4032_v57 = vld [vmem:[%s3851_s18 + $0xac] sm:$0xf] }
  0x40   : > { %v2082_v13 = vunpack.c.l.b16 %v391_v5  ;;  %v496_v14 = vrot.slane %v495_v59, 4  ;;  %v470_v15 = vrot.slane %v468_v3, 5  ;;  %v484_v17 = vshll.u32 %v4005_v58, 16  ;;  %v4035_v59 = vld [vmem:[%s3851_s18 + $0xb0] sm:$0x1] }
  0x41   : > { %v506_v18 = vrot.slane %v505_v7, 4  ;;  %v476_v19 = vrot.slane %v474_v8, 5  ;;  %v480_v20 = vrot.slane %v478_v11, 4  ;;  %v441_v22 = vshrl.u32 %v191_v4, 16  ;;  %v199_v5 = vld [vmem:[%s3851_s18 + $0x9c] sm:$0xf] }
  0x42   : > { %v2107_v24 = vpack.c.b16 %v2082_v13, %v2081_v53  ;;  %v501_v27 = vsel %vm3879_vm2, %v496_v14, %v500_v54  ;;  %v471_v30 = vor.u32 %v470_v15, %v467_v0  ;;  %v486_v32 = vrot.slane %v484_v17, 5 }
  0x43   : > { %v511_v35 = vsel %vm3879_vm2, %v506_v18, %v510_v60  ;;  %v2091_v38 = vunpack.c.l.b16 %v501_v27  ;;  %v481_v39 = vor.u32 %v480_v20, %v476_v19  ;;  %v443_v40 = vrot.slane %v441_v22, 4 }
  0x44   : > { %2129 = vrot.lane.b32.xlu0 %v2107_v24, %s3807_s19  ;;  %v2092_v41 = vunpack.c.l.b16 %v511_v35  ;;  %v472_v42 = vrot.slane %v471_v30, 4  ;;  %v444_v44 = vshll.u32 %v191_v4, 16  ;;  %v450_v45 = vshll.u32 %v4015_v21, 16  ;;  %v4045_v24 = vld [vmem:[%s3851_s18 + $0xa0] sm:$0xf] }
  0x45   : > { %v482_v46 = vrot.slane %v481_v39, 4  ;;  %v454_v47 = vshrl.u32 %v4015_v21, 16  ;;  %v460_v48 = vshll.u32 %v4020_v33, 16  ;;  %v561_v49 = vshrl.u32 %v201_v34, 16 }
  0x46   : > { %v2112_v51 = vpack.c.b16 %v2092_v41, %v2091_v38  ;;  %v477_v52 = vsel %vm3879_vm2, %v472_v42, %v476_v19  ;;  %v446_v53 = vrot.slane %v444_v44, 5  ;;  %v452_v54 = vrot.slane %v450_v45, 5  ;;  %v197_v44 = vld [vmem:[%s3851_s18 + $0x90] sm:$0xf] }
  0x47   : > { %v487_v60 = vsel %vm3879_vm2, %v482_v46, %v486_v32  ;;  %v2089_v0 = vunpack.c.l.b16 %v477_v52  ;;  %v456_v3 = vrot.slane %v454_v47, 4  ;;  %v462_v4 = vrot.slane %v460_v48, 5 }
  0x48   : > { %2139 = vrot.lane.b32.xlu2 %v2112_v51, %s3807_s19  ;;  %v2090_v7 = vunpack.c.l.b16 %v487_v60  ;;  %v447_v8 = vor.u32 %v446_v53, %v443_v40  ;;  %v563_v11 = vrot.slane %v561_v49, 4  ;;  %v564_v13 = vshll.u32 %v201_v34, 16  ;;  %v4051_v40 = vld [vmem:[%s3851_s18 + $0xa4] sm:$0x1] }
  0x49   : > { %v457_v14 = vor.u32 %v456_v3, %v452_v54  ;;  %v570_v15 = vshll.u32 %v4032_v57, 16  ;;  %v574_v17 = vshrl.u32 %v4032_v57, 16  ;;  %v580_v18 = vshll.u32 %v4035_v59, 16 }
  0x4a   : > { %v2111_v19 = vpack.c.b16 %v2090_v7, %v2089_v0  ;;  %v448_v20 = vrot.slane %v447_v8, 4  ;;  %v566_v22 = vrot.slane %v564_v13, 5  ;;  %v537_v27 = vshrl.u32 %v199_v5, 16  ;;  %v4065_v13 = vld [vmem:[%s3851_s18 + $0x98] sm:$0x1] }
  0x4b   : > { %v458_v30 = vrot.slane %v457_v14, 4  ;;  %v572_v32 = vrot.slane %v570_v15, 5  ;;  %v576_v35 = vrot.slane %v574_v17, 4  ;;  %v582_v38 = vrot.slane %v580_v18, 5 }
  0x4c   : > { %2137 = vrot.lane.b32.xlu1 %v2111_v19, %s3807_s19  ;;  %v453_v34 = vsel %vm3879_vm2, %v448_v20, %v452_v54  ;;  %v567_v39 = vor.u32 %v566_v22, %v563_v11  ;;  %v539_v41 = vrot.slane %v537_v27, 4  ;;  %v540_v42 = vshll.u32 %v199_v5, 16  ;;  %v4062_v11 = vld [vmem:[%s3851_s18 + $0x94] sm:$0xf] }
  0x4d   : > { %v463_v45 = vsel %vm3879_vm2, %v458_v30, %v462_v4  ;;  %v2087_v46 = vunpack.c.l.b16 %v453_v34  ;;  %v577_v47 = vor.u32 %v576_v35, %v572_v32  ;;  %v546_v48 = vshll.u32 %v4045_v24, 16  ;;  %v609_v34 = vld [vmem:[%s3851_s18 + $0xc] sm:$0xe] }
  0x4e   : > { %v2088_v49 = vunpack.c.l.b16 %v463_v45  ;;  %v568_v51 = vrot.slane %v567_v39, 4  ;;  %v542_v52 = vrot.slane %v540_v42, 5  ;;  %v550_v53 = vshrl.u32 %v4045_v24, 16 }
  0x4f   : > { %v578_v54 = vrot.slane %v577_v47, 4  ;;  %v548_v60 = vrot.slane %v546_v48, 5  ;;  %v556_v0 = vshll.u32 %v4051_v40, 16  ;;  %v513_v3 = vshrl.u32 %v197_v44, 16 }
  0x50   : > { %v2110_v5 = vpack.c.b16 %v2088_v49, %v2087_v46  ;;  %v573_v4 = vsel %vm3879_vm2, %v568_v51, %v572_v32  ;;  %v543_v7 = vor.u32 %v542_v52, %v539_v41  ;;  %v552_v8 = vrot.slane %v550_v53, 4  ;;  %v608_v49 = vld [vmem:[%s3851_s18] sm:$0xe] }
  0x51   : > { %v583_v14 = vsel %vm3879_vm2, %v578_v54, %v582_v38  ;;  %v2097_v15 = vunpack.c.l.b16 %v573_v4  ;;  %v558_v17 = vrot.slane %v556_v0, 5  ;;  %v515_v18 = vrot.slane %v513_v3, 4 }
  0x52   : > { %2135 = vrot.lane.b32.xlu0 %v2110_v5, %s3807_s19  ;;  %v2098_v19 = vunpack.c.l.b16 %v583_v14  ;;  %v544_v20 = vrot.slane %v543_v7, 4  ;;  %v553_v22 = vor.u32 %v552_v8, %v548_v60  ;;  %v516_v27 = vshll.u32 %v197_v44, 16 }
  0x53   : > { %v522_v30 = vshll.u32 %v4062_v11, 16  ;;  %v526_v32 = vshrl.u32 %v4062_v11, 16  ;;  %v532_v35 = vshll.u32 %v4065_v13, 16  ;;  %v3331_v52 = vrot.slane %v609_v34, 9 }
  0x54   : > { %v2115_v39 = vpack.c.b16 %v2098_v19, %v2097_v15  ;;  %v549_v38 = vsel %vm3879_vm2, %v544_v20, %v548_v60  ;;  %v554_v41 = vrot.slane %v553_v22, 4  ;;  %v518_v42 = vrot.slane %v516_v27, 5  ;;  %v203_v19 = vld [vmem:[%s3851_s18 + $0xb4] sm:$0xf] }
  0x55   : > { %v2095_v45 = vunpack.c.l.b16 %v549_v38  ;;  %v524_v46 = vrot.slane %v522_v30, 5  ;;  %v528_v47 = vrot.slane %v526_v32, 4  ;;  %v534_v48 = vrot.slane %v532_v35, 5  ;;  %v4105_v35 = vld [vmem:[%s3851_s18 + $0xbc] sm:$0x1] }
  0x56   : > { %2145 = vrot.lane.b32.xlu2 %v2115_v39, %s3807_s19  ;;  %v559_v44 = vsel %vm3879_vm2, %v554_v41, %v558_v17  ;;  %v519_v51 = vor.u32 %v518_v42, %v515_v18  ;;  %v684_v0 = vrot.slane %v3925_v37, 5  ;;  %v687_v3 = vrot.slane %v3928_v43, 5 }
  0x57   : > { %v2096_v53 = vunpack.c.l.b16 %v559_v44  ;;  %v529_v54 = vor.u32 %v528_v47, %v524_v46  ;;  %v3330_v4 = vrot.slane %v608_v49, 9  ;;  %v677_v7 = vrot.slane %v3875_v25, 5  ;;  %v4097_v25 = vld [vmem:[%s3851_s18 + $0xb8] sm:$0xf] }
  0x58   : > { %v520_v5 = vrot.slane %v519_v51, 4  ;;  %v680_v8 = vrot.slane %v3884_v36, 5  ;;  %v685_v17 = vsel %vm4081_vm5, %v3331_v52, %v684_v0  ;;  %v686_v18 = vrot.slane %v684_v0, 4 }
  0x59   : > { %v2114_v14 = vpack.c.b16 %v2096_v53, %v2095_v45  ;;  %v530_v15 = vrot.slane %v529_v54, 4  ;;  %v2151_v37 = vunpack.c.l.b16 %v685_v17  ;;  %v678_v43 = vsel %vm4081_vm5, %v3330_v4, %v677_v7  ;;  %v611_v53 = vld [vmem:[%s3851_s18 + $0x24] sm:$0xe]  ;;  %v610_v4 = vld [vmem:[%s3851_s18 + $0x18] sm:$0xe] }
  0x5a   : > { %v525_v20 = vsel %vm3879_vm2, %v520_v5, %v524_v46  ;;  %v679_v22 = vrot.slane %v677_v7, 4  ;;  %v688_v30 = vsel %vm4081_vm5, %v686_v18, %v687_v3  ;;  %v2149_v32 = vunpack.c.l.b16 %v678_v43 }
  0x5b   : > { %2143 = vrot.lane.b32.xlu1 %v2114_v14, %s3807_s19  ;;  %v535_v36 = vsel %vm3879_vm2, %v530_v15, %v534_v48  ;;  %v2093_v27 = vunpack.c.l.b16 %v525_v20  ;;  %v2152_v39 = vunpack.c.l.b16 %v688_v30  ;;  %v585_v41 = vshrl.u32 %v203_v19, 16  ;;  %v612_v48 = vld [vmem:[%s3851_s18 + $0x30] sm:$0xe] }
  0x5c   : > { %v2094_v34 = vunpack.c.l.b16 %v535_v36  ;;  %v681_v38 = vsel %vm4081_vm5, %v679_v22, %v680_v8  ;;  %v588_v45 = vshll.u32 %v203_v19, 16  ;;  %v594_v46 = vshll.u32 %v4097_v25, 16 }
  0x5d   : > { %v2150_v42 = vunpack.c.l.b16 %v681_v38  ;;  %v598_v47 = vshrl.u32 %v4097_v25, 16  ;;  %v2182_v44 = vpack.c.b16 %v2152_v39, %v2151_v37  ;;  %v587_v51 = vrot.slane %v585_v41, 4 }
  0x5e   : > { %v2113_v49 = vpack.c.b16 %v2094_v34, %v2093_v27  ;;  %v604_v52 = vshll.u32 %v4105_v35, 16  ;;  %v590_v0 = vrot.slane %v588_v45, 5  ;;  %v596_v3 = vrot.slane %v594_v46, 5  ;;  %v615_v45 = vld [vmem:[%s3851_s18 + $0x54] sm:$0xe] }
  0x5f   : > { %v2181_v54 = vpack.c.b16 %v2150_v42, %v2149_v32  ;;  %v600_v5 = vrot.slane %v598_v47, 4  ;;  %2199 = vrot.lane.b32.xlu2 %v2182_v44, %s3808_s20  ;;  %v3334_v8 = vrot.slane %v612_v48, 9  ;;  %v705_v14 = vrot.slane %v3855_v1, 5 }
  0x60   : > { %2141 = vrot.lane.b32.xlu0 %v2113_v49, %s3807_s19  ;;  %v606_v7 = vrot.slane %v604_v52, 5  ;;  %v708_v15 = vrot.slane %v3858_v2, 5  ;;  %v591_v17 = vor.u32 %v590_v0, %v587_v51  ;;  %v3333_v19 = vrot.slane %v611_v53, 9 }
  0x61   : > { %v601_v18 = vor.u32 %v600_v5, %v596_v3  ;;  %v698_v20 = vrot.slane %v3911_v12, 5  ;;  %v706_v37 = vsel %vm4081_vm5, %v3334_v8, %v705_v14  ;;  %v707_v43 = vrot.slane %v705_v14, 4  ;;  %v613_v5 = vld [vmem:[%s3851_s18 + $0x3c] sm:$0xe] }
  0x62   : > { %v701_v22 = vrot.slane %v3915_v16, 5  ;;  %v3332_v36 = vrot.slane %v610_v4, 9  ;;  %v592_v27 = vrot.slane %v591_v17, 4  ;;  %v2157_v1 = vunpack.c.l.b16 %v706_v37 }
  0x63   : > { %2197 = vrot.lane.b32.xlu1 %v2181_v54, %s3808_s20  ;;  %v602_v30 = vrot.slane %v601_v18, 4  ;;  %v699_v2 = vsel %vm4081_vm5, %v3333_v19, %v698_v20  ;;  %v709_v12 = vsel %vm4081_vm5, %v707_v43, %v708_v15  ;;  %v700_v32 = vrot.slane %v698_v20, 4  ;;  %v618_v18 = vld [vmem:[%s3851_s18 + $0x78] sm:$0xe] }
  0x64   : > { %v2155_v34 = vunpack.c.l.b16 %v699_v2  ;;  %v691_v39 = vrot.slane %v3865_v9, 5  ;;  %v597_v16 = vsel %vm3879_vm2, %v592_v27, %v596_v3  ;;  %v2158_v41 = vunpack.c.l.b16 %v709_v12  ;;  %v614_v9 = vld [vmem:[%s3851_s18 + $0x48] sm:$0xe] }
  0x65   : > { %v607_v38 = vsel %vm3879_vm2, %v602_v30, %v606_v7  ;;  %v694_v42 = vrot.slane %v3868_v10, 5  ;;  %v2099_v46 = vunpack.c.l.b16 %v597_v16  ;;  %v702_v48 = vsel %vm4081_vm5, %v700_v32, %v701_v22  ;;  %v617_v30 = vld [vmem:[%s3851_s18 + $0x6c] sm:$0xe] }
  0x66   : > { %v2100_v47 = vunpack.c.l.b16 %v607_v38  ;;  %v692_v49 = vsel %vm4081_vm5, %v3332_v36, %v691_v39  ;;  %v2185_v44 = vpack.c.b16 %v2158_v41, %v2157_v1  ;;  %v2156_v51 = vunpack.c.l.b16 %v702_v48 }
  0x67   : > { %v693_v52 = vrot.slane %v691_v39, 4  ;;  %v2153_v53 = vunpack.c.l.b16 %v692_v49  ;;  %v3337_v0 = vrot.slane %v615_v45, 9  ;;  %v726_v3 = vrot.slane %v3955_v23, 5 }
  0x68   : > { %v2116_v54 = vpack.c.b16 %v2100_v47, %v2099_v46  ;;  %v729_v10 = vrot.slane %v3960_v31, 5  ;;  %2205 = vrot.lane.b32.xlu2 %v2185_v44, %s3808_s20  ;;  %v2184_v4 = vpack.c.b16 %v2156_v51, %v2155_v34  ;;  %v3336_v8 = vrot.slane %v614_v9, 9 }
  0x69   : > { %v695_v7 = vsel %vm4081_vm5, %v693_v52, %v694_v42  ;;  %v719_v14 = vrot.slane %v3970_v55, 5  ;;  %v727_v17 = vsel %vm4081_vm5, %v3337_v0, %v726_v3  ;;  %v728_v23 = vrot.slane %v726_v3, 4  ;;  %v616_v42 = vld [vmem:[%s3851_s18 + $0x60] sm:$0xe]  ;;  %v620_v3 = vld [vmem:[%s3851_s18 + $0x90] sm:$0xe] }
  0x6a   : > { %2147 = vrot.lane.b32.xlu0 %v2116_v54, %s3807_s19  ;;  %v2154_v15 = vunpack.c.l.b16 %v695_v7  ;;  %v722_v31 = vrot.slane %v3975_v63, 5  ;;  %v2163_v19 = vunpack.c.l.b16 %v727_v17  ;;  %v3335_v43 = vrot.slane %v613_v5, 9 }
  0x6b   : > { %2203 = vrot.lane.b32.xlu1 %v2184_v4, %s3808_s20  ;;  %v720_v20 = vsel %vm4081_vm5, %v3336_v8, %v719_v14  ;;  %v721_v37 = vrot.slane %v719_v14, 4  ;;  %v730_v22 = vsel %vm4081_vm5, %v728_v23, %v729_v10  ;;  %v712_v27 = vrot.slane %v3897_v56, 5 }
  0x6c   : > { %v2183_v55 = vpack.c.b16 %v2154_v15, %v2153_v53  ;;  %v2161_v36 = vunpack.c.l.b16 %v720_v20  ;;  %v2164_v1 = vunpack.c.l.b16 %v730_v22  ;;  %v715_v2 = vrot.slane %v3902_v62, 5  ;;  %v619_v15 = vld [vmem:[%s3851_s18 + $0x84] sm:$0xe] }
  0x6d   : > { %v723_v63 = vsel %vm4081_vm5, %v721_v37, %v722_v31  ;;  %v3340_v12 = vrot.slane %v618_v18, 9  ;;  %v713_v34 = vsel %vm4081_vm5, %v3335_v43, %v712_v27  ;;  %v714_v39 = vrot.slane %v712_v27, 4 }
  0x6e   : > { %v2162_v32 = vunpack.c.l.b16 %v723_v63  ;;  %v747_v16 = vrot.slane %v4002_v50, 5  ;;  %v2188_v38 = vpack.c.b16 %v2164_v1, %v2163_v19  ;;  %v750_v41 = vrot.slane %v4005_v58, 5  ;;  %v621_v58 = vld [vmem:[%s3851_s18 + $0x9c] sm:$0xe] }
  0x6f   : > { %v3339_v56 = vrot.slane %v617_v30, 9  ;;  %v716_v46 = vsel %vm4081_vm5, %v714_v39, %v715_v2  ;;  %v2159_v48 = vunpack.c.l.b16 %v713_v34  ;;  %v740_v50 = vrot.slane %v4015_v21, 5 }
  0x70   : > { %v2187_v45 = vpack.c.b16 %v2162_v32, %v2161_v36  ;;  %v748_v62 = vsel %vm4081_vm5, %v3340_v12, %v747_v16  ;;  %v749_v47 = vrot.slane %v747_v16, 4  ;;  %2211 = vrot.lane.b32.xlu2 %v2188_v38, %s3808_s20  ;;  %v743_v9 = vrot.slane %v4020_v33, 5  ;;  %v623_v36 = vld [vmem:[%s3851_s18 + $0xb4] sm:$0xe] }
  0x71   : > { %v2169_v49 = vunpack.c.l.b16 %v748_v62  ;;  %v2160_v44 = vunpack.c.l.b16 %v716_v46  ;;  %v3338_v52 = vrot.slane %v616_v42, 9  ;;  %v733_v53 = vrot.slane %v3942_v61, 5 }
  0x72   : > { %2201 = vrot.lane.b32.xlu0 %v2183_v55, %s3808_s20  ;;  %v751_v51 = vsel %vm4081_vm5, %v749_v47, %v750_v41  ;;  %v741_v0 = vsel %vm4081_vm5, %v3339_v56, %v740_v50  ;;  %v742_v21 = vrot.slane %v740_v50, 4  ;;  %v736_v33 = vrot.slane %v3945_v6, 5 }
  0x73   : > { %2209 = vrot.lane.b32.xlu1 %v2187_v45, %s3808_s20  ;;  %v2170_v54 = vunpack.c.l.b16 %v751_v51  ;;  %v2167_v10 = vunpack.c.l.b16 %v741_v0  ;;  %v735_v5 = vrot.slane %v733_v53, 4  ;;  %v3343_v4 = vrot.slane %v621_v58, 9 }
  0x74   : > { %v744_v8 = vsel %vm4081_vm5, %v742_v21, %v743_v9  ;;  %v734_v61 = vsel %vm4081_vm5, %v3338_v52, %v733_v53  ;;  %v768_v14 = vrot.slane %v4045_v24, 5  ;;  %v2186_v17 = vpack.c.b16 %v2160_v44, %v2159_v48  ;;  %v622_v48 = vld [vmem:[%s3851_s18 + $0xa8] sm:$0xe]  ;;  %v3740_v52 = vld [vmem:[%s3851_s18 + $0xc] sm:$0xff] }
  0x75   : > { %v2191_v7 = vpack.c.b16 %v2170_v54, %v2169_v49  ;;  %v2168_v23 = vunpack.c.l.b16 %v744_v8  ;;  %v771_v31 = vrot.slane %v4051_v40, 5  ;;  %v3342_v6 = vrot.slane %v620_v3, 9  ;;  %v3743_v3 = vld [vmem:[%s3851_s18 + $0x30] sm:$0xff]  ;;  %v4244_v8 = vld [vmem:[%s3851_s18 + $0xa0] sm:$0xf] }
  0x76   : > { %v737_v18 = vsel %vm4081_vm5, %v735_v5, %v736_v33  ;;  %v769_v19 = vsel %vm4081_vm5, %v3343_v4, %v768_v14  ;;  %v770_v20 = vrot.slane %v768_v14, 4  ;;  %v761_v37 = vrot.slane %v4062_v11, 5  ;;  %v3742_v5 = vld [vmem:[%s3851_s18 + $0x24] sm:$0xff]  ;;  %v3746_v14 = vld [vmem:[%s3851_s18 + $0x54] sm:$0xff] }
  0x77   : > { %v2190_v43 = vpack.c.b16 %v2168_v23, %v2167_v10  ;;  %v2165_v55 = vunpack.c.l.b16 %v734_v61  ;;  %v764_v22 = vrot.slane %v4065_v13, 5  ;;  %v3341_v24 = vrot.slane %v619_v15, 9  ;;  %v3362_v61 = vld [vmem:[%s3851_s18 + $0x6c] sm:$0xf]  ;;  %v4249_v23 = vld [vmem:[%s3851_s18 + $0x70] sm:$0xf] }
  0x78   : > { %2217 = vrot.lane.b32.xlu2 %v2191_v7, %s3808_s20  ;;  %v772_v40 = vsel %vm4081_vm5, %v770_v20, %v771_v31  ;;  %v2175_v27 = vunpack.c.l.b16 %v769_v19  ;;  %v762_v30 = vsel %vm4081_vm5, %v3342_v6, %v761_v37  ;;  %v763_v1 = vrot.slane %v761_v37, 4  ;;  %v4230_v21 = vpop.permute.xlu2 %2125  ;;  %v3370_v7 = vld [vmem:[%s3851_s18 + $0x9c] sm:$0xf]  ;;  %v3745_v6 = vld [vmem:[%s3851_s18 + $0x48] sm:$0xff] }
  0x79   : > { %v2166_v63 = vunpack.c.l.b16 %v737_v18  ;;  %v2176_v11 = vunpack.c.l.b16 %v772_v40  ;;  %v754_v2 = vrot.slane %v3987_v28, 5  ;;  %v757_v13 = vrot.slane %v3990_v29, 5  ;;  %v3741_v31 = vld [vmem:[%s3851_s18 + $0x18] sm:$0xff]  ;;  %v4259_v40 = vld [vmem:[%s3851_s18 + $0xa4] sm:$0x1] }
  0x7a   : > { %2207 = vrot.lane.b32.xlu0 %v2186_v17, %s3808_s20  ;;  %v765_v12 = vsel %vm4081_vm5, %v763_v1, %v764_v22  ;;  %v2173_v32 = vunpack.c.l.b16 %v762_v30  ;;  %v3345_v34 = vrot.slane %v623_v36, 9  ;;  %v782_v39 = vrot.slane %v4097_v25, 5  ;;  %v3346_v36 = vld [vmem:[%s3851_s18 + $0xc] sm:$0xf]  ;;  %v4262_v1 = vld [vmem:[%s3851_s18 + $0x74] sm:$0x1] }
  0x7b   : > { %2215 = vrot.lane.b32.xlu1 %v2190_v43, %s3808_s20  ;;  %v2174_v16 = vunpack.c.l.b16 %v765_v12  ;;  %v755_v38 = vsel %vm4081_vm5, %v3341_v24, %v754_v2  ;;  %v756_v41 = vrot.slane %v754_v2, 4  ;;  %v785_v56 = vrot.slane %v4105_v35, 5 }
  0x7c   : > { %v2194_v28 = vpack.c.b16 %v2176_v11, %v2175_v27  ;;  %v2171_v42 = vunpack.c.l.b16 %v755_v38  ;;  %v784_v29 = vrot.slane %v782_v39, 4  ;;  %v2189_v45 = vpack.c.b16 %v2166_v63, %v2165_v55 }
  0x7d   : > { %v758_v46 = vsel %vm4081_vm5, %v756_v41, %v757_v13  ;;  %v2193_v62 = vpack.c.b16 %v2174_v16, %v2173_v32  ;;  %v775_v25 = vrot.slane %v4032_v57, 5  ;;  %v783_v49 = vsel %vm4081_vm5, %v3345_v34, %v782_v39  ;;  %v4268_v16 = vld [vmem:[%s3851_s18 + $0x10] sm:$0xf] }
  0x7e   : > { %v2172_v47 = vunpack.c.l.b16 %v758_v46  ;;  %v786_v50 = vsel %vm4081_vm5, %v784_v29, %v785_v56  ;;  %v3344_v9 = vrot.slane %v622_v48, 9  ;;  %v2179_v58 = vunpack.c.l.b16 %v783_v49  ;;  %v3744_v29 = vld [vmem:[%s3851_s18 + $0x3c] sm:$0xff] }
  0x7f   : > { %v2180_v44 = vunpack.c.l.b16 %v786_v50  ;;  %v777_v51 = vrot.slane %v775_v25, 4  ;;  %v778_v57 = vrot.slane %v4035_v59, 5  ;;  %v1125_v15 = vshrl.u32 %v3370_v7, 16  ;;  %v4276_v50 = vld [vmem:[%s3851_s18 + $0x14] sm:$0x1] }
  0x80   : > { %2223 = vrot.lane.b32.xlu2 %v2194_v28, %s3808_s20  ;;  %v2192_v35 = vpack.c.b16 %v2172_v47, %v2171_v42  ;;  %v776_v54 = vsel %vm4081_vm5, %v3344_v9, %v775_v25  ;;  %v1128_v17 = vshll.u32 %v3370_v7, 16  ;;  %v1134_v18 = vshll.u32 %v4244_v8, 16  ;;  %v3728_v42 = vld [vmem:[%s3851_s18 + $0x30] sm:$0xff]  ;;  %v3749_v25 = vld [vmem:[%s3851_s18 + $0x78] sm:$0xff] }
  0x81   : > { %v2196_v53 = vpack.c.b16 %v2180_v44, %v2179_v58  ;;  %v779_v0 = vsel %vm4081_vm5, %v777_v51, %v778_v57  ;;  %v2177_v59 = vunpack.c.l.b16 %v776_v54  ;;  %v1138_v19 = vshrl.u32 %v4244_v8, 16  ;;  %v3729_v58 = vld [vmem:[%s3851_s18 + $0x3c] sm:$0xff] }
  0x82   : > { %2213 = vrot.lane.b32.xlu0 %v2189_v45, %s3808_s20  ;;  %v2178_v33 = vunpack.c.l.b16 %v779_v0  ;;  %v1029_v20 = vshrl.u32 %v3362_v61, 16  ;;  %v1032_v37 = vshll.u32 %v3362_v61, 16  ;;  %v1127_v43 = vrot.slane %v1125_v15, 4  ;;  %v3732_v44 = vld [vmem:[%s3851_s18 + $0x60] sm:$0xff]  ;;  %v3726_v51 = vld [vmem:[%s3851_s18 + $0x18] sm:$0xff] }
  0x83   : > { %2221 = vrot.lane.b32.xlu1 %v2193_v62, %s3808_s20  ;;  %v1130_v55 = vrot.slane %v1128_v17, 5  ;;  %v1038_v22 = vshll.u32 %v4249_v23, 16  ;;  %v1042_v24 = vshrl.u32 %v4249_v23, 16  ;;  %v1136_v27 = vrot.slane %v1134_v18, 5  ;;  %v3724_v15 = vld [vmem:[%s3851_s18] sm:$0xff] }
  0x84   : > { %v2195_v10 = vpack.c.b16 %v2178_v33, %v2177_v59  ;;  %v1140_v30 = vrot.slane %v1138_v19, 4  ;;  %v1144_v11 = vshll.u32 %v4259_v40, 16  ;;  %v1031_v2 = vrot.slane %v1029_v20, 4  ;;  %v3748_v59 = vld [vmem:[%s3851_s18 + $0x6c] sm:$0xff] }
  0x85   : > { %v1131_v63 = vor.u32 %v1130_v55, %v1127_v43  ;;  %v1034_v32 = vrot.slane %v1032_v37, 5  ;;  %v1040_v34 = vrot.slane %v1038_v22, 5  ;;  %v1044_v39 = vrot.slane %v1042_v24, 4  ;;  %v3727_v37 = vld [vmem:[%s3851_s18 + $0x24] sm:$0xff] }
  0x86   : > { %v4239_v4 = vpop.permute.xlu2 %2127  ;;  %v1141_v12 = vor.u32 %v1140_v30, %v1136_v27  ;;  %v1146_v41 = vrot.slane %v1144_v11, 5  ;;  %v1048_v56 = vshll.u32 %v4262_v1, 16  ;;  %v837_v28 = vshrl.u32 %v3346_v36, 16 }
  0x87   : > { %v1132_v38 = vrot.slane %v1131_v63, 4  ;;  %v1035_v62 = vor.u32 %v1034_v32, %v1031_v2  ;;  %v1045_v47 = vor.u32 %v1044_v39, %v1040_v34  ;;  %v840_v48 = vshll.u32 %v3346_v36, 16  ;;  %v3406_v36 = vld [vmem:[%s3851_s18 + $0x9c] sm:$0xe] }
  0x88   : > { %2293 = vrot.lane.b32.xlu2 %v3740_v52, %s3809_s21  ;;  %v1142_v46 = vrot.slane %v1141_v12, 4  ;;  %v1050_v49 = vrot.slane %v1048_v56, 5  ;;  %v846_v9 = vshll.u32 %v4268_v16, 16  ;;  %v856_v61 = vshll.u32 %v4276_v50, 16  ;;  %v3450_v12 = vld [vmem:[%s3851_s18 + $0xa8] sm:$0xf] }
  0x89   : > { %v1137_v52 = vsel %vm3879_vm2, %v1132_v38, %v1136_v27  ;;  %v1036_v54 = vrot.slane %v1035_v62, 4  ;;  %v1046_v0 = vrot.slane %v1045_v47, 4  ;;  %v842_v33 = vrot.slane %v840_v48, 5  ;;  %v3402_v27 = vld [vmem:[%s3851_s18 + $0x6c] sm:$0xe]  ;;  %v3752_v32 = vld [vmem:[%s3851_s18 + $0x9c] sm:$0xff] }
  0x8a   : > { %2219 = vrot.lane.b32.xlu0 %v2192_v35, %s3808_s20  ;;  %v839_v35 = vrot.slane %v837_v28, 4  ;;  %v848_v7 = vrot.slane %v846_v9, 5  ;;  %v4299_v17 = vunpack.c.l.b16 %v1137_v52  ;;  %v4306_v18 = vsel %vm2741_vm6, %v3729_v58, %v4239_v4  ;;  %v3747_v56 = vld [vmem:[%s3851_s18 + $0x60] sm:$0xff]  ;;  %v4353_v48 = vld [vmem:[%s3851_s18 + $0xac] sm:$0xf] }
  0x8b   : > { %2227 = vrot.lane.b32.xlu1 %v2196_v53, %s3808_s20  ;;  %v1147_v53 = vsel %vm3879_vm2, %v1142_v46, %v1146_v41  ;;  %v858_v24 = vrot.slane %v856_v61, 5  ;;  %v3422_v11 = vrot.slane %v3406_v36, 9  ;;  %v1370_v2 = vrot.slane %v4244_v8, 5  ;;  %v3755_v36 = vld [vmem:[%s3851_s18 + $0xc0] sm:$0xff] }
  0x8c   : > { %v3418_v38 = vrot.slane %v3402_v27, 9  ;;  %v1342_v41 = vrot.slane %v4249_v23, 5  ;;  %v3725_v23 = vld [vmem:[%s3851_s18 + $0xc] sm:$0xff] }
  0x8e   : > { %v4350_v47 = vsel %vm4081_vm5, %v3418_v38, %v1342_v41  ;;  %v1344_v52 = vrot.slane %v1342_v41, 4  ;;  %v3754_v41 = vld [vmem:[%s3851_s18 + $0xb4] sm:$0xff] }
  0x90   : > { %2299 = vrot.lane.b32.xlu2 %v3743_v3, %s3809_s21  ;;  %v850_v3 = vshrl.u32 %v4268_v16, 16 }
  0x92   : > { %2225 = vrot.lane.b32.xlu0 %v2195_v10, %s3808_s20  ;;  %v1041_v10 = vsel %vm3879_vm2, %v1036_v54, %v1040_v34  ;;  %v852_v43 = vrot.slane %v850_v3, 4  ;;  %v4367_v54 = vld [vmem:[%s3851_s18 + $0xb0] sm:$0x1] }
  0x93   : > { %2297 = vrot.lane.b32.xlu1 %v3742_v5, %s3809_s21  ;;  %v1051_v5 = vsel %vm3879_vm2, %v1046_v0, %v1050_v49  ;;  %v4317_v55 = vunpack.c.l.b16 %v1041_v10  ;;  %v3442_v0 = vld [vmem:[%s3851_s18 + $0x78] sm:$0xf]  ;;  %v1743_v10 = vshll.u32 %v4353_v48, 16 }
  0x94   : > { %v2122_v13 = vpop.permute.xlu1 %2121  ;;  %v2134_v45 = vpop.permute.xlu2 %2133  ;;  %v4319_v22 = vunpack.c.l.b16 %v1051_v5  ;;  %v853_v63 = vor.u32 %v852_v43, %v848_v7  ;;  %v4374_v5 = vld [vmem:[%s3851_s18 + $0x7c] sm:$0xf]  ;;  %v1753_v43 = vshll.u32 %v4367_v54, 16 }
  0x95   : > { %v4309_v19 = vsel %vm2741_vm6, %v3732_v44, %v2134_v45  ;;  %v4313_v20 = vsel %vm2741_vm6, %v3726_v51, %v2122_v13  ;;  %v1373_v13 = vrot.slane %v4259_v40, 5  ;;  %v4338_v40 = vsel %vm4081_vm5, %v3422_v11, %v1370_v2  ;;  %v3751_v45 = vld [vmem:[%s3851_s18 + $0x90] sm:$0xff] }
  0x96   : > { %v1737_v44 = vshll.u32 %v3450_v12, 16  ;;  %v1647_v11 = vshll.u32 %v4374_v5, 16 }
  0x98   : > { %2305 = vrot.lane.b32.xlu2 %v3746_v14, %s3809_s21  ;;  %v2118_v57 = vpop.permute.xlu0 %2117  ;;  %v4295_v14 = vsel %vm2741_vm6, %v3728_v42, %v4230_v21  ;;  %v3735_v21 = vld [vmem:[%s3851_s18 + $0x84] sm:$0xff]  ;;  %v854_v42 = vrot.slane %v853_v63, 4  ;;  %v1739_v3 = vrot.slane %v1737_v44, 5  ;;  %v1641_v63 = vshll.u32 %v3442_v0, 16  ;;  %v3731_v44 = vld [vmem:[%s3851_s18 + $0x54] sm:$0xff] }
  0x99   : > { %v4328_v34 = vsel %vm2741_vm6, %v3724_v15, %v2118_v57  ;;  %v2429_v57 = vunpack.c.l.b16 %v4338_v40  ;;  %v1747_v15 = vshrl.u32 %v4353_v48, 16 }
  0x9a   : > { %2295 = vrot.lane.b32.xlu0 %v3741_v31, %s3809_s21  ;;  %v4301_v31 = vunpack.c.l.b16 %v1147_v53  ;;  %v859_v9 = vsel %vm3879_vm2, %v854_v42, %v858_v24  ;;  %v1345_v53 = vrot.slane %v4262_v1, 5  ;;  %v3354_v24 = vld [vmem:[%s3851_s18 + $0x3c] sm:$0xf]  ;;  %v4397_v42 = vld [vmem:[%s3851_s18 + $0x40] sm:$0xf] }
  0x9b   : > { %2303 = vrot.lane.b32.xlu1 %v3745_v6, %s3809_s21  ;;  %v843_v6 = vor.u32 %v842_v33, %v839_v35  ;;  %v2365_v35 = vpack.c.b16 %v4319_v22, %v4317_v55  ;;  %v933_v40 = vshrl.u32 %v3354_v24, 16 }
  0x9c   : > { %v2369_v39 = vpack.c.b16 %v4301_v31, %v4299_v17  ;;  %v1346_v27 = vsel %vm4081_vm5, %v1344_v52, %v1345_v53  ;;  %v3398_v17 = vld [vmem:[%s3851_s18 + $0x3c] sm:$0xe]  ;;  %v1314_v31 = vrot.slane %v4397_v42, 5 }
  0x9d   : > { %v844_v4 = vrot.slane %v843_v6, 4  ;;  %v4384_v6 = vld [vmem:[%s3851_s18 + $0x80] sm:$0x1] }
  0x9e   : > { %v1657_v38 = vshll.u32 %v4384_v6, 16 }
  0x9f   : > { %v849_v8 = vsel %vm3879_vm2, %v844_v4, %v848_v7  ;;  %v4380_v7 = vunpack.c.l.b16 %v859_v9  ;;  %v1638_v4 = vshrl.u32 %v3442_v0, 16  ;;  %v936_v9 = vshll.u32 %v3354_v24, 16  ;;  %v3486_v24 = vld [vmem:[%s3851_s18 + $0xa8] sm:$0xe] }
  0xa0   : > { %2311 = vrot.lane.b32.xlu2 %v3749_v25, %s3809_s21  ;;  %v1734_v25 = vshrl.u32 %v3450_v12, 16  ;;  %v4362_v51 = vunpack.c.l.b16 %v849_v8  ;;  %v1649_v8 = vrot.slane %v1647_v11, 5  ;;  %v1659_v0 = vrot.slane %v1657_v38, 5 }
  0xa1   : > { %v1640_v12 = vrot.slane %v1638_v4, 4  ;;  %v942_v4 = vshll.u32 %v4397_v42, 16 }
  0xa2   : > { %2301 = vrot.lane.b32.xlu0 %v3744_v29, %s3809_s21  ;;  %v2124_v30 = vpop.permute.xlu1 %2123  ;;  %v2140_v28 = vpop.permute.xlu2 %2139  ;;  %v1372_v29 = vrot.slane %v1370_v2, 4  ;;  %v1736_v33 = vrot.slane %v1734_v25, 4  ;;  %v3750_v2 = vld [vmem:[%s3851_s18 + $0x84] sm:$0xff] }
  0xa3   : > { %2309 = vrot.lane.b32.xlu1 %v3748_v59, %s3809_s21  ;;  %v4342_v46 = vsel %vm2741_vm6, %v3735_v21, %v2140_v28  ;;  %v4345_v62 = vsel %vm2741_vm6, %v3727_v37, %v2124_v30  ;;  %v2421_v59 = vunpack.c.l.b16 %v4350_v47  ;;  %v1745_v37 = vrot.slane %v1743_v10, 5 }
  0xa4   : > { %v1374_v58 = vsel %vm4081_vm5, %v1372_v29, %v1373_v13  ;;  %v1740_v21 = vor.u32 %v1739_v3, %v1736_v33  ;;  %v1749_v30 = vrot.slane %v1747_v15, 4  ;;  %v1643_v28 = vrot.slane %v1641_v63, 5 }
  0xa5   : > { %v2430_v61 = vunpack.c.l.b16 %v1374_v58  ;;  %v2357_v58 = vpack.c.b16 %v4380_v7, %v4362_v51  ;;  %v935_v15 = vrot.slane %v933_v40, 4 }
  0xa6   : > { %v1741_v13 = vrot.slane %v1740_v21, 4  ;;  %v1644_v3 = vor.u32 %v1643_v28, %v1640_v12  ;;  %v938_v21 = vrot.slane %v936_v9, 5  ;;  %v3482_v12 = vld [vmem:[%s3851_s18 + $0x78] sm:$0xe]  ;;  %v3502_v28 = vrot.slane %v3486_v24, 9 }
  0xa7   : > { %v4408_v52 = vpack.c.b16 %v2430_v61, %v2429_v57  ;;  %v946_v57 = vshrl.u32 %v4397_v42, 16  ;;  %v1982_v9 = vrot.slane %v4367_v54, 5  ;;  %v3414_v24 = vrot.slane %v3398_v17, 9 }
  0xa8   : > { %v2120_v49 = vpop.permute.xlu0 %2119  ;;  %2317 = vrot.lane.b32.xlu2 %v3752_v32, %s3809_s21  ;;  %v1651_v32 = vshrl.u32 %v4374_v5, 16  ;;  %v939_v63 = vor.u32 %v938_v21, %v935_v15 }
  0xa9   : > { %v4378_v1 = vsel %vm2741_vm6, %v3725_v23, %v2120_v49  ;;  %v1755_v23 = vrot.slane %v1753_v43, 5  ;;  %v4402_v49 = vld [vmem:[%s3851_s18 + $0x44] sm:$0x1]  ;;  %v1746_v43 = vsel %vm3879_vm2, %v1741_v13, %v1745_v37  ;;  %v948_v13 = vrot.slane %v946_v57, 4  ;;  %v3734_v57 = vld [vmem:[%s3851_s18 + $0x78] sm:$0xff] }
  0xaa   : > { %2307 = vrot.lane.b32.xlu0 %v3747_v56, %s3809_s21  ;;  %v1750_v56 = vor.u32 %v1749_v30, %v1745_v37  ;;  %v1653_v25 = vrot.slane %v1651_v32, 4  ;;  %v952_v61 = vshll.u32 %v4402_v49, 16  ;;  %v944_v37 = vrot.slane %v942_v4, 5  ;;  %v3753_v32 = vld [vmem:[%s3851_s18 + $0xa8] sm:$0xff] }
  0xab   : > { %2315 = vrot.lane.b32.xlu1 %v3751_v45, %s3809_s21  ;;  %v2422_v45 = vunpack.c.l.b16 %v1346_v27  ;;  %v1645_v27 = vrot.slane %v1644_v3, 4  ;;  %v4433_v40 = vunpack.c.l.b16 %v1746_v43  ;;  %v3394_v43 = vld [vmem:[%s3851_s18 + $0xc] sm:$0xe] }
  0xac   : > { %v1751_v53 = vrot.slane %v1750_v56, 4  ;;  %v1654_v10 = vor.u32 %v1653_v25, %v1649_v8  ;;  %v940_v56 = vrot.slane %v939_v63, 4  ;;  %v949_v25 = vor.u32 %v948_v13, %v944_v37 }
  0xad   : > { %v1650_v38 = vsel %vm3879_vm2, %v1645_v27, %v1649_v8  ;;  %v954_v47 = vrot.slane %v952_v61, 5  ;;  %v3498_v8 = vrot.slane %v3482_v12, 9  ;;  %v1317_v27 = vrot.slane %v4402_v49, 5 }
  0xae   : > { %v1655_v30 = vrot.slane %v1654_v10, 4  ;;  %v1954_v10 = vrot.slane %v4384_v6, 5  ;;  %v3410_v13 = vrot.slane %v3394_v43, 9  ;;  %v1286_v12 = vrot.slane %v4268_v16, 5  ;;  %v4533_v43 = vld [vmem:[%s3851_s18 + $0x20] sm:$0x1] }
  0xaf   : > { %v1315_v16 = vsel %vm4081_vm5, %v3414_v24, %v1314_v31 }
  0xb0   : > { %v4399_v29 = vpop.permute.xlu2 %2145  ;;  %2323 = vrot.lane.b32.xlu2 %v3755_v36, %s3809_s21  ;;  %v2132_v33 = vpop.permute.xlu1 %2131  ;;  %v1756_v36 = vsel %vm3879_vm2, %v1751_v53, %v1755_v23  ;;  %v2413_v17 = vunpack.c.l.b16 %v1315_v16 }
  0xb1   : > { %v4421_v11 = vsel %vm2741_vm6, %v3731_v44, %v2132_v33  ;;  %v4435_v23 = vunpack.c.l.b16 %v1756_v36  ;;  %v4445_v44 = vunpack.c.l.b16 %v1650_v38  ;;  %v1951_v33 = vrot.slane %v4374_v5, 5  ;;  %v3730_v5 = vld [vmem:[%s3851_s18 + $0x48] sm:$0xff] }
  0xb2   : > { %2313 = vrot.lane.b32.xlu0 %v3750_v2, %s3809_s21  ;;  %v4425_v2 = vpack.c.b16 %v2422_v45, %v2421_v59  ;;  %v945_v59 = vsel %vm3879_vm2, %v940_v56, %v944_v37  ;;  %v1979_v45 = vrot.slane %v4353_v48, 5  ;;  %v1316_v36 = vrot.slane %v1314_v31, 4  ;;  %v3434_v56 = vld [vmem:[%s3851_s18 + $0x48] sm:$0xf] }
  0xb3   : > { %2321 = vrot.lane.b32.xlu1 %v3754_v41, %s3809_s21  ;;  %v1660_v41 = vsel %vm3879_vm2, %v1655_v30, %v1659_v0  ;;  %v950_v0 = vrot.slane %v949_v25, 4  ;;  %v4467_v21 = vunpack.c.l.b16 %v945_v59  ;;  %v1952_v22 = vsel %vm4081_vm5, %v3498_v8, %v1951_v33  ;;  %v3426_v59 = vld [vmem:[%s3851_s18 + $0x18] sm:$0xf] }
  0xb4   : > { %v4447_v53 = vunpack.c.l.b16 %v1660_v41  ;;  %v1980_v54 = vsel %vm4081_vm5, %v3502_v28, %v1979_v45  ;;  %v1981_v3 = vrot.slane %v1979_v45, 4  ;;  %v2625_v63 = vpack.c.b16 %v4435_v23, %v4433_v40  ;;  %v4491_v28 = vld [vmem:[%s3851_s18 + $0x4c] sm:$0xf] }
  0xb5   : > { %v955_v15 = vsel %vm3879_vm2, %v950_v0, %v954_v47  ;;  %v2685_v6 = vunpack.c.l.b16 %v1980_v54  ;;  %v2677_v41 = vunpack.c.l.b16 %v1952_v22  ;;  %v4503_v47 = vld [vmem:[%s3851_s18 + $0x50] sm:$0x1]  ;;  %v1318_v45 = vsel %vm4081_vm5, %v1316_v36, %v1317_v27  ;;  %v3364_v22 = vld [vmem:[%s3851_s18 + $0x78] sm:$0xf] }
  0xb6   : > { %v2130_v4 = vpop.permute.xlu0 %2129  ;;  %v4471_v42 = vunpack.c.l.b16 %v955_v15  ;;  %v1983_v55 = vsel %vm4081_vm5, %v1981_v3, %v1982_v9  ;;  %v2621_v38 = vpack.c.b16 %v4447_v53, %v4445_v44  ;;  %v4511_v9 = vsel %vm4081_vm5, %v3410_v13, %v1286_v12 }
  0xb7   : > { %v2686_v61 = vunpack.c.l.b16 %v1983_v55  ;;  %v1288_v8 = vrot.slane %v1286_v12, 4  ;;  %v1289_v0 = vrot.slane %v4276_v50, 5  ;;  %v1551_v54 = vshll.u32 %v4491_v28, 16 }
  0xb8   : > { %2397 = vrot.lane.b32.xlu2 %v2369_v39, %s3810_s22  ;;  %v2361_v40 = vpack.c.b16 %v4471_v42, %v4467_v21  ;;  %v1555_v3 = vshrl.u32 %v4491_v28, 16  ;;  %v1561_v51 = vshll.u32 %v4503_v47, 16  ;;  %v1446_v7 = vshrl.u32 %v3426_v59, 16 }
  0xb9   : > { %v2200_v48 = vpop.permute.xlu2 %2199  ;;  %v4498_v23 = vpack.c.b16 %v2686_v61, %v2685_v6  ;;  %v2414_v31 = vunpack.c.l.b16 %v1318_v45  ;;  %v4530_v6 = vld [vmem:[%s3851_s18 + $0x1c] sm:$0xf]  ;;  %v1449_v61 = vshll.u32 %v3426_v59, 16 }
  0xba   : > { %2319 = vrot.lane.b32.xlu0 %v3753_v32, %s3809_s21  ;;  %v4462_v39 = vsel %vm2790_vm7, %v4378_v1, %v2200_v48  ;;  %v3764_v1 = vld [vmem:[%s3851_s18 + $0x78] sm:$0xff]  ;;  %v4485_v32 = vsel %vm2741_vm6, %v3730_v5, %v2130_v4  ;;  %v1545_v48 = vshll.u32 %v3434_v56, 16  ;;  %v2405_v4 = vunpack.c.l.b16 %v4511_v9 }
  0xbb   : > { %2389 = vrot.lane.b32.xlu1 %v2365_v35, %s3810_s22  ;;  %v1953_v35 = vrot.slane %v1951_v33, 4  ;;  %v1542_v33 = vshrl.u32 %v3434_v56, 16  ;;  %v1557_v55 = vrot.slane %v1555_v3, 4  ;;  %v1455_v36 = vshll.u32 %v4530_v6, 16  ;;  %v4555_v3 = vld [vmem:[%s3851_s18 + $0x80] sm:$0x1] }
  0xbc   : > { %v1547_v15 = vrot.slane %v1545_v48, 5  ;;  %v1459_v27 = vshrl.u32 %v4530_v6, 16  ;;  %v1056_v56 = vshll.u32 %v3364_v22, 16  ;;  %v4546_v16 = vpack.c.b16 %v2414_v31, %v2413_v17 }
  0xbd   : > { %v1955_v37 = vsel %vm4081_vm5, %v1953_v35, %v1954_v10  ;;  %v1544_v5 = vrot.slane %v1542_v33, 4  ;;  %v1457_v45 = vrot.slane %v1455_v36, 5  ;;  %v3474_v36 = vld [vmem:[%s3851_s18 + $0x18] sm:$0xe] }
  0xbe   : > { %v2138_v30 = vpop.permute.xlu1 %2137  ;;  %v2678_v49 = vunpack.c.l.b16 %v1955_v37  ;;  %v3733_v37 = vld [vmem:[%s3851_s18 + $0x6c] sm:$0xff] }
  0xbf   : > { %v4494_v25 = vsel %vm2741_vm6, %v3734_v57, %v2138_v30  ;;  %v1553_v57 = vrot.slane %v1551_v54, 5  ;;  %v1548_v35 = vor.u32 %v1547_v15, %v1544_v5  ;;  %v1465_v30 = vshll.u32 %v4533_v43, 16 }
  0xc0   : > { %2565 = vrot.lane.b32.xlu2 %v3764_v1, %s3811_s23  ;;  %v4522_v50 = vpack.c.b16 %v2678_v49, %v2677_v41  ;;  %v1448_v1 = vrot.slane %v1446_v7, 4  ;;  %v1451_v41 = vrot.slane %v1449_v61, 5  ;;  %v1053_v49 = vshrl.u32 %v3364_v22, 16  ;;  %v3478_v22 = vld [vmem:[%s3851_s18 + $0x48] sm:$0xe] }
  0xc1   : > { %v1558_v24 = vor.u32 %v1557_v55, %v1553_v57  ;;  %v1549_v12 = vrot.slane %v1548_v35, 4  ;;  %v1467_v54 = vrot.slane %v1465_v30, 5  ;;  %v1058_v7 = vrot.slane %v1056_v56, 5  ;;  %v3768_v35 = vld [vmem:[%s3851_s18 + $0xa8] sm:$0xff] }
  0xc2   : > { %2373 = vrot.lane.b32.xlu0 %v2357_v58, %s3810_s22  ;;  %v2206_v10 = vpop.permute.xlu2 %2205  ;;  %v1452_v48 = vor.u32 %v1451_v41, %v1448_v1  ;;  %v1072_v55 = vshll.u32 %v4555_v3, 16  ;;  %v1923_v56 = vrot.slane %v4491_v28, 5 }
  0xc3   : > { %2477 = vrot.lane.b32.xlu1 %v4408_v52, %s3812_s24  ;;  %v4527_v58 = vsel %vm2790_vm7, %v4295_v14, %v2206_v10  ;;  %v4537_v52 = vsel %vm4081_vm5, %v1288_v8, %v1289_v0  ;;  %v1563_v14 = vrot.slane %v1561_v51, 5  ;;  %v1559_v59 = vrot.slane %v1558_v24, 4  ;;  %v4549_v0 = vld [vmem:[%s3851_s18 + $0x7c] sm:$0xf] }
  0xc4   : > { %v2136_v13 = vpop.permute.xlu0 %2135  ;;  %v1461_v8 = vrot.slane %v1459_v27, 4  ;;  %v2406_v33 = vunpack.c.l.b16 %v4537_v52  ;;  %v1055_v10 = vrot.slane %v1053_v49, 4  ;;  %v1554_v17 = vsel %vm3879_vm2, %v1549_v12, %v1553_v57 }
  0xc5   : > { %v4566_v31 = vsel %vm2741_vm6, %v3733_v37, %v2136_v13  ;;  %v1453_v53 = vrot.slane %v1452_v48, 4  ;;  %v1066_v57 = vshrl.u32 %v4549_v0, 16  ;;  %v4578_v1 = vunpack.c.l.b16 %v1554_v17 }
  0xc6   : > { %v1462_v51 = vor.u32 %v1461_v8, %v1457_v45  ;;  %v1059_v52 = vor.u32 %v1058_v7, %v1055_v10  ;;  %v1074_v41 = vrot.slane %v1072_v55, 5  ;;  %v3494_v49 = vrot.slane %v3478_v22, 9 }
  0xc7   : > { %v1068_v13 = vrot.slane %v1066_v57, 4  ;;  %v1926_v8 = vrot.slane %v4503_v47, 5  ;;  %v3490_v48 = vrot.slane %v3474_v36, 9  ;;  %v4603_v28 = vpack.c.b16 %v2406_v33, %v2405_v4  ;;  %v3736_v33 = vld [vmem:[%s3851_s18 + $0x90] sm:$0xff] }
  0xc8   : > { %2653 = vrot.lane.b32.xlu2 %v2625_v63, %s3813_s25  ;;  %v1463_v15 = vrot.slane %v1462_v51, 4  ;;  %v1060_v37 = vrot.slane %v1059_v52, 4  ;;  %v1925_v42 = vrot.slane %v1923_v56, 4  ;;  %v1924_v9 = vsel %vm4081_vm5, %v3494_v49, %v1923_v56 }
  0xc9   : > { %v1895_v4 = vrot.slane %v4530_v6, 5  ;;  %v1898_v7 = vrot.slane %v4533_v43, 5  ;;  %v2669_v22 = vunpack.c.l.b16 %v1924_v9 }
  0xca   : > { %2469 = vrot.lane.b32.xlu0 %v4425_v2, %s3812_s24  ;;  %v2212_v63 = vpop.permute.xlu2 %2211  ;;  %v1564_v2 = vsel %vm3879_vm2, %v1559_v59, %v1563_v14  ;;  %v3737_v14 = vld [vmem:[%s3851_s18 + $0x9c] sm:$0xff]  ;;  %v1468_v27 = vsel %vm3879_vm2, %v1463_v15, %v1467_v54 }
  0xcb   : > { %2645 = vrot.lane.b32.xlu1 %v2621_v38, %s3813_s25  ;;  %v4570_v44 = vsel %vm2790_vm7, %v4421_v11, %v2212_v63  ;;  %v1062_v38 = vshll.u32 %v4549_v0, 16  ;;  %v4580_v61 = vunpack.c.l.b16 %v1564_v2  ;;  %v1458_v11 = vsel %vm3879_vm2, %v1453_v53, %v1457_v45  ;;  %v3403_v53 = vld [vmem:[%s3851_s18 + $0x78] sm:$0xe] }
  0xcc   : > { %v4587_v30 = vunpack.c.l.b16 %v1458_v11  ;;  %v4589_v12 = vunpack.c.l.b16 %v1468_v27  ;;  %v1896_v15 = vsel %vm4081_vm5, %v3490_v48, %v1895_v4  ;;  %v1897_v52 = vrot.slane %v1895_v4, 4  ;;  %v3372_v11 = vld [vmem:[%s3851_s18 + $0xa8] sm:$0xf] }
  0xcd   : > { %v2144_v5 = vpop.permute.xlu1 %2143  ;;  %v1064_v24 = vrot.slane %v1062_v38, 5  ;;  %v2617_v21 = vpack.c.b16 %v4580_v61, %v4578_v1  ;;  %v3739_v61 = vld [vmem:[%s3851_s18 + $0xb4] sm:$0xff] }
  0xce   : > { %v2783_v54 = vsel %vm2741_vm6, %v3737_v14, %v2144_v5  ;;  %v2613_v63 = vpack.c.b16 %v4589_v12, %v4587_v30  ;;  %v3756_v5 = vld [vmem:[%s3851_s18 + $0x18] sm:$0xff]  ;;  %v3391_v14 = vld [vmem:[%s3851_s18 + $0xb0] sm:$0x1]  ;;  %v1899_v36 = vsel %vm4081_vm5, %v1897_v52, %v1898_v7  ;;  %v3444_v7 = vld [vmem:[%s3851_s18 + $0x84] sm:$0xf] }
  0xcf   : > { %v1065_v59 = vsel %vm3879_vm2, %v1060_v37, %v1064_v24  ;;  %v1069_v45 = vor.u32 %v1068_v13, %v1064_v24  ;;  %v1380_v27 = vrot.slane %v3391_v14, 5  ;;  %v3419_v37 = vrot.slane %v3403_v53, 9  ;;  %v4676_v53 = vld [vmem:[%s3851_s18 + $0x88] sm:$0xf] }
  0xd0   : > { %2381 = vrot.lane.b32.xlu2 %v2361_v40, %s3810_s22  ;;  %v3407_v40 = vld [vmem:[%s3851_s18 + $0xa8] sm:$0xe]  ;;  %v4620_v51 = vunpack.c.l.b16 %v1065_v59  ;;  %v2662_v49 = vunpack.c.l.b16 %v1899_v36  ;;  %v1349_v59 = vrot.slane %v4549_v0, 5  ;;  %v1662_v36 = vshrl.u32 %v3444_v7, 16 }
  0xd1   : > { %v1070_v17 = vrot.slane %v1069_v45, 4  ;;  %v3423_v57 = vrot.slane %v3407_v40, 9  ;;  %v1352_v45 = vrot.slane %v4555_v3, 5 }
  0xd2   : > { %2573 = vrot.lane.b32.xlu0 %v3768_v35, %s3811_s23  ;;  %v2142_v10 = vpop.permute.xlu0 %2141  ;;  %v2218_v47 = vpop.permute.xlu2 %2217 }
  0xd3   : > { %2733 = vrot.lane.b32.xlu1 %v4498_v23, %s3814_s26  ;;  %v4618_v2 = vsel %vm2790_vm7, %v4494_v25, %v2218_v47  ;;  %v1927_v23 = vsel %vm4081_vm5, %v1925_v42, %v1926_v8  ;;  %v1075_v6 = vsel %vm3879_vm2, %v1070_v17, %v1074_v41  ;;  %v3373_v25 = vld [vmem:[%s3851_s18 + $0xac] sm:$0xf]  ;;  %v4643_v13 = vsel %vm2741_vm6, %v3736_v33, %v2142_v10 }
  0xd4   : > { %v2670_v35 = vunpack.c.l.b16 %v1927_v23  ;;  %v1377_v43 = vrot.slane %v3373_v25, 5  ;;  %v4638_v24 = vunpack.c.l.b16 %v1075_v6  ;;  %v2661_v41 = vunpack.c.l.b16 %v1896_v15 }
  0xd5   : > { %v2198_v38 = vpop.permute.xlu1 %2197  ;;  %v1149_v8 = vshrl.u32 %v3372_v11, 16  ;;  %v1152_v42 = vshll.u32 %v3372_v11, 16  ;;  %v1158_v40 = vshll.u32 %v3373_v25, 16  ;;  %v1351_v47 = vrot.slane %v1349_v59, 4  ;;  %v4687_v11 = vld [vmem:[%s3851_s18 + $0x8c] sm:$0x1] }
  0xd6   : > { %v4634_v55 = vsel %vm2790_vm7, %v4328_v34, %v2198_v38  ;;  %v1379_v56 = vrot.slane %v1377_v43, 4  ;;  %v4648_v34 = vsel %vm4081_vm5, %v3423_v57, %v1377_v43  ;;  %v4654_v48 = vpack.c.b16 %v2670_v35, %v2669_v22 }
  0xd7   : > { %v2366_v3 = vpack.c.b16 %v4638_v24, %v4620_v51  ;;  %v1151_v17 = vrot.slane %v1149_v8, 4  ;;  %v4671_v33 = vpack.c.b16 %v2662_v49, %v2661_v41  ;;  %v2431_v23 = vunpack.c.l.b16 %v4648_v34  ;;  %v4696_v8 = vld [vmem:[%s3851_s18 + $0xb8] sm:$0xf] }
  0xd8   : > { %2549 = vrot.lane.b32.xlu2 %v3756_v5, %s3811_s23  ;;  %v4658_v10 = vsel %vm4081_vm5, %v1379_v56, %v1380_v27  ;;  %v1353_v6 = vsel %vm4081_vm5, %v1351_v47, %v1352_v45  ;;  %v1160_v15 = vrot.slane %v1158_v40, 5  ;;  %v1162_v52 = vshrl.u32 %v3373_v25, 16 }
  0xd9   : > { %v2432_v5 = vunpack.c.l.b16 %v4658_v10  ;;  %v1168_v35 = vshll.u32 %v3391_v14, 16  ;;  %v1665_v27 = vshll.u32 %v3444_v7, 16  ;;  %v2424_v41 = vunpack.c.l.b16 %v1353_v6 }
  0xda   : > { %2725 = vrot.lane.b32.xlu0 %v4522_v50, %s3814_s26  ;;  %v2224_v0 = vpop.permute.xlu2 %2223  ;;  %v4666_v50 = vsel %vm4081_vm5, %v3419_v37, %v1349_v59  ;;  %v1164_v43 = vrot.slane %v1162_v52, 4  ;;  %v1671_v37 = vshll.u32 %v4676_v53, 16  ;;  %v1664_v56 = vrot.slane %v1662_v36, 4  ;;  %v3483_v52 = vld [vmem:[%s3851_s18 + $0x84] sm:$0xe] }
  0xdb   : > { %2461 = vrot.lane.b32.xlu1 %v4546_v16, %s3812_s24  ;;  %v4669_v4 = vsel %vm2790_vm7, %v2783_v54, %v2224_v0  ;;  %v1154_v16 = vrot.slane %v1152_v42, 5  ;;  %v2423_v57 = vunpack.c.l.b16 %v4666_v50  ;;  %v1170_v49 = vrot.slane %v1168_v35, 5  ;;  %v3487_v0 = vld [vmem:[%s3851_s18 + $0xb4] sm:$0xe]  ;;  %v3471_v35 = vld [vmem:[%s3851_s18 + $0xbc] sm:$0x1] }
  0xdc   : > { %v2148_v9 = vpop.permute.xlu0 %2147  ;;  %v1165_v14 = vor.u32 %v1164_v43, %v1160_v15  ;;  %v1667_v59 = vrot.slane %v1665_v27, 5  ;;  %v1673_v45 = vrot.slane %v1671_v37, 5  ;;  %v1681_v40 = vshll.u32 %v4687_v11, 16 }
  0xdd   : > { %v2204_v38 = vpop.permute.xlu1 %2203  ;;  %v1155_v22 = vor.u32 %v1154_v16, %v1151_v17  ;;  %v1986_v1 = vrot.slane %v4696_v8, 5  ;;  %v3503_v17 = vrot.slane %v3487_v0, 9  ;;  %v1771_v0 = vshrl.u32 %v4696_v8, 16 }
  0xde   : > { %v4683_v54 = vsel %vm2790_vm7, %v4345_v62, %v2204_v38  ;;  %v1675_v62 = vshrl.u32 %v4676_v53, 16  ;;  %v1166_v50 = vrot.slane %v1165_v14, 4  ;;  %v1668_v47 = vor.u32 %v1667_v59, %v1664_v56  ;;  %v3452_v56 = vld [vmem:[%s3851_s18 + $0xb4] sm:$0xf] }
  0xdf   : > { %v1156_v25 = vrot.slane %v1155_v22, 4  ;;  %v1683_v6 = vrot.slane %v1681_v40, 5  ;;  %v4726_v43 = vsel %vm4081_vm5, %v3503_v17, %v1986_v1  ;;  %v1958_v14 = vrot.slane %v4676_v53, 5 }
  0xe0   : > { %2637 = vrot.lane.b32.xlu2 %v2617_v21, %s3813_s25  ;;  %v1677_v42 = vrot.slane %v1675_v62, 4  ;;  %v1669_v22 = vrot.slane %v1668_v47, 4  ;;  %v3499_v62 = vrot.slane %v3483_v52, 9  ;;  %v2450_v59 = vpack.c.b16 %v2432_v5, %v2431_v23 }
  0xe1   : > { %v1161_v10 = vsel %vm3879_vm2, %v1156_v25, %v1160_v15  ;;  %v1988_v15 = vrot.slane %v1986_v1, 4  ;;  %v4736_v25 = vsel %vm2741_vm6, %v3739_v61, %v2148_v9  ;;  %v2687_v34 = vunpack.c.l.b16 %v4726_v43  ;;  %v3395_v1 = vld [vmem:[%s3851_s18 + $0x18] sm:$0xe]  ;;  %v4790_v43 = vld [vmem:[%s3851_s18 + $0x4c] sm:$0xf] }
  0xe2   : > { %2453 = vrot.lane.b32.xlu0 %v4603_v28, %s3812_s24  ;;  %v2294_v21 = vpop.permute.xlu2 %2293  ;;  %v4710_v28 = vunpack.c.l.b16 %v1161_v10  ;;  %v1678_v38 = vor.u32 %v1677_v42, %v1673_v45  ;;  %v2446_v10 = vpack.c.b16 %v2424_v41, %v2423_v57  ;;  %v1960_v23 = vrot.slane %v1958_v14, 4 }
  0xe3   : > { %2629 = vrot.lane.b32.xlu1 %v2613_v63, %s3813_s25  ;;  %v4714_v7 = vsel %vm2823_vm8, %v4634_v55, %v2294_v21  ;;  %v1171_v63 = vsel %vm3879_vm2, %v1166_v50, %v1170_v49  ;;  %v3760_v55 = vld [vmem:[%s3851_s18 + $0x48] sm:$0xff]  ;;  %v1674_v49 = vsel %vm3879_vm2, %v1669_v22, %v1673_v45  ;;  %v1959_v5 = vsel %vm4081_vm5, %v3499_v62, %v1958_v14 }
  0xe4   : > { %v2202_v16 = vpop.permute.xlu0 %2201  ;;  %v4733_v27 = vunpack.c.l.b16 %v1171_v63  ;;  %v1679_v37 = vrot.slane %v1678_v38, 4  ;;  %v4754_v53 = vunpack.c.l.b16 %v1674_v49  ;;  %v1961_v57 = vrot.slane %v4687_v11, 5  ;;  %v4787_v63 = vld [vmem:[%s3851_s18 + $0x20] sm:$0x1] }
  0xe5   : > { %v4719_v30 = vsel %vm2790_vm7, %v4313_v20, %v2202_v16  ;;  %v2210_v12 = vpop.permute.xlu1 %2209  ;;  %v1989_v20 = vrot.slane %v3471_v35, 5  ;;  %v1758_v41 = vshrl.u32 %v3452_v56, 16  ;;  %v1761_v45 = vshll.u32 %v3452_v56, 16 }
  0xe6   : > { %v4731_v36 = vsel %vm2790_vm7, %v4485_v32, %v2210_v12  ;;  %v1684_v32 = vsel %vm3879_vm2, %v1679_v37, %v1683_v6  ;;  %v2370_v9 = vpack.c.b16 %v4733_v27, %v4710_v28  ;;  %v1767_v40 = vshll.u32 %v4696_v8, 16  ;;  %v4779_v6 = vld [vmem:[%s3851_s18 + $0x1c] sm:$0xf] }
  0xe7   : > { %v1990_v42 = vsel %vm4081_vm5, %v1988_v15, %v1989_v20  ;;  %v4763_v24 = vunpack.c.l.b16 %v1684_v32  ;;  %v1760_v21 = vrot.slane %v1758_v41, 4  ;;  %v1763_v50 = vrot.slane %v1761_v45, 5  ;;  %v3356_v15 = vld [vmem:[%s3851_s18 + $0x48] sm:$0xf]  ;;  %v3348_v45 = vld [vmem:[%s3851_s18 + $0x18] sm:$0xf] }
  0xe8   : > { %2391 = vrot.lane.b32.xlu2 %v2366_v3, %s3810_s22  ;;  %v2688_v3 = vunpack.c.l.b16 %v1990_v42  ;;  %v2679_v16 = vunpack.c.l.b16 %v1959_v5  ;;  %v1769_v8 = vrot.slane %v1767_v40, 5  ;;  %v1773_v38 = vrot.slane %v1771_v0, 4 }
  0xe9   : > { %v1764_v52 = vor.u32 %v1763_v50, %v1760_v21  ;;  %v1777_v12 = vshll.u32 %v3471_v35, 16  ;;  %v3411_v22 = vrot.slane %v3395_v1, 9  ;;  %v1293_v37 = vrot.slane %v4779_v6, 5 }
  0xea   : > { %2557 = vrot.lane.b32.xlu0 %v3760_v55, %s3811_s23  ;;  %v2300_v51 = vpop.permute.xlu2 %2299  ;;  %v1774_v55 = vor.u32 %v1773_v38, %v1769_v8  ;;  %v1296_v20 = vrot.slane %v4787_v63, 5  ;;  %v957_v14 = vshrl.u32 %v3356_v15, 16  ;;  %v966_v42 = vshll.u32 %v4790_v43, 16 }
  0xeb   : > { %2717 = vrot.lane.b32.xlu1 %v4654_v48, %s3814_s26  ;;  %v4770_v11 = vsel %vm2823_vm8, %v4683_v54, %v2300_v51  ;;  %v1962_v48 = vsel %vm4081_vm5, %v1960_v23, %v1961_v57  ;;  %v1765_v49 = vrot.slane %v1764_v52, 4  ;;  %v1779_v62 = vrot.slane %v1777_v12, 5  ;;  %v4807_v57 = vld [vmem:[%s3851_s18 + $0x50] sm:$0x1]  ;;  %v3769_v52 = vld [vmem:[%s3851_s18 + $0xb4] sm:$0xff] }
  0xec   : > { %v2208_v61 = vpop.permute.xlu0 %2207  ;;  %v1775_v35 = vrot.slane %v1774_v55, 4  ;;  %v4797_v56 = vsel %vm4081_vm5, %v3411_v22, %v1293_v37  ;;  %v1295_v32 = vrot.slane %v1293_v37, 4  ;;  %v2622_v23 = vpack.c.b16 %v4763_v24, %v4754_v53 }
  0xed   : > { %v4776_v47 = vsel %vm2790_vm7, %v4306_v18, %v2208_v61  ;;  %v2216_v17 = vpop.permute.xlu1 %2215  ;;  %v2680_v18 = vunpack.c.l.b16 %v1962_v48  ;;  %v4804_v5 = vpack.c.b16 %v2688_v3, %v2687_v34  ;;  %v959_v41 = vrot.slane %v957_v14, 4 }
  0xee   : > { %v4784_v54 = vsel %vm2790_vm7, %v4566_v31, %v2216_v17  ;;  %v960_v31 = vshll.u32 %v3356_v15, 16  ;;  %v1770_v0 = vsel %vm3879_vm2, %v1765_v49, %v1769_v8  ;;  %v2407_v53 = vunpack.c.l.b16 %v4797_v56  ;;  %v3399_v15 = vld [vmem:[%s3851_s18 + $0x48] sm:$0xe] }
  0xef   : > { %v4811_v40 = vpack.c.b16 %v2680_v18, %v2679_v16  ;;  %v968_v1 = vrot.slane %v966_v42, 5  ;;  %v970_v21 = vshrl.u32 %v4790_v43, 16  ;;  %v976_v50 = vshll.u32 %v4807_v57, 16 }
  0xf0   : > { %2479 = vrot.lane.b32.xlu2 %v2450_v59, %s3812_s24  ;;  %v962_v59 = vrot.slane %v960_v31, 5  ;;  %v861_v17 = vshrl.u32 %v3348_v45, 16  ;;  %v4836_v16 = vunpack.c.l.b16 %v1770_v0  ;;  %v864_v18 = vshll.u32 %v3348_v45, 16 }
  0xf1   : > { %v972_v12 = vrot.slane %v970_v21, 4  ;;  %v870_v37 = vshll.u32 %v4779_v6, 16  ;;  %v3415_v31 = vrot.slane %v3399_v15, 9  ;;  %v1324_v45 = vrot.slane %v4807_v57, 5 }
  0xf2   : > { %2709 = vrot.lane.b32.xlu0 %v4671_v33, %s3814_s26  ;;  %v2306_v51 = vpop.permute.xlu2 %2305  ;;  %v1780_v33 = vsel %vm3879_vm2, %v1775_v35, %v1779_v62  ;;  %v963_v3 = vor.u32 %v962_v59, %v959_v41  ;;  %v863_v22 = vrot.slane %v861_v17, 4  ;;  %v978_v62 = vrot.slane %v976_v50, 5 }
  0xf3   : > { %2471 = vrot.lane.b32.xlu1 %v2446_v10, %s3812_s24  ;;  %v4820_v24 = vsel %vm2823_vm8, %v4731_v36, %v2306_v51  ;;  %v4824_v10 = vsel %vm4081_vm5, %v1295_v32, %v1296_v20  ;;  %v4838_v8 = vunpack.c.l.b16 %v1780_v33  ;;  %v880_v20 = vshll.u32 %v4787_v63, 16  ;;  %v3738_v51 = vld [vmem:[%s3851_s18 + $0xa8] sm:$0xff]  ;;  %v3475_v33 = vld [vmem:[%s3851_s18 + $0x24] sm:$0xe] }
  0xf4   : > { %v2214_v34 = vpop.permute.xlu0 %2213  ;;  %v964_v38 = vrot.slane %v963_v3, 4  ;;  %v973_v49 = vor.u32 %v972_v12, %v968_v1  ;;  %v866_v14 = vrot.slane %v864_v18, 5  ;;  %v872_v32 = vrot.slane %v870_v37, 5  ;;  %v3436_v18 = vld [vmem:[%s3851_s18 + $0x54] sm:$0xf] }
  0xf5   : > { %v4828_v61 = vsel %vm2790_vm7, %v4309_v19, %v2214_v34  ;;  %v2222_v48 = vpop.permute.xlu1 %2221  ;;  %v2408_v19 = vunpack.c.l.b16 %v4824_v10  ;;  %v882_v59 = vrot.slane %v880_v20, 5  ;;  %v3491_v12 = vrot.slane %v3475_v33, 9  ;;  %v3459_v20 = vld [vmem:[%s3851_s18 + $0x2c] sm:$0x1] }
  0xf6   : > { %v4834_v36 = vsel %vm2790_vm7, %v4643_v13, %v2222_v48  ;;  %v969_v55 = vsel %vm3879_vm2, %v964_v38, %v968_v1  ;;  %v874_v13 = vshrl.u32 %v4779_v6, 16  ;;  %v1321_v6 = vrot.slane %v4790_v43, 5  ;;  %v3429_v38 = vld [vmem:[%s3851_s18 + $0x28] sm:$0xf] }
  0xf7   : > { %v4853_v35 = vunpack.c.l.b16 %v969_v55  ;;  %v867_v41 = vor.u32 %v866_v14, %v863_v22  ;;  %v1902_v22 = vrot.slane %v3429_v38, 5  ;;  %v4886_v55 = vld [vmem:[%s3851_s18 + $0x58] sm:$0xf] }
  0xf8   : > { %2647 = vrot.lane.b32.xlu2 %v2622_v23, %s3813_s25  ;;  %v876_v42 = vrot.slane %v874_v13, 4  ;;  %v974_v23 = vrot.slane %v973_v49, 4  ;;  %v1323_v43 = vrot.slane %v1321_v6, 4 }
  0xf9   : > { %v868_v1 = vrot.slane %v867_v41, 4  ;;  %v1904_v14 = vrot.slane %v1902_v22, 4 }
  0xfa   : > { %2399 = vrot.lane.b32.xlu0 %v2370_v9, %s3810_s22  ;;  %v2312_v63 = vpop.permute.xlu2 %2311  ;;  %v877_v27 = vor.u32 %v876_v42, %v872_v32  ;;  %v1322_v9 = vsel %vm4081_vm5, %v3415_v31, %v1321_v6  ;;  %v979_v3 = vsel %vm3879_vm2, %v974_v23, %v978_v62  ;;  %v4901_v62 = vsel %vm4081_vm5, %v3491_v12, %v1902_v22 }
  0xfb   : > { %2575 = vrot.lane.b32.xlu1 %v3769_v52, %s3811_s23  ;;  %v4861_v28 = vsel %vm2823_vm8, %v4784_v54, %v2312_v63  ;;  %v2415_v48 = vunpack.c.l.b16 %v1322_v9  ;;  %v3765_v54 = vld [vmem:[%s3851_s18 + $0x84] sm:$0xff]  ;;  %v4877_v50 = vunpack.c.l.b16 %v979_v3  ;;  %v873_v15 = vsel %vm3879_vm2, %v868_v1, %v872_v32  ;;  %v3374_v9 = vld [vmem:[%s3851_s18 + $0xb4] sm:$0xf] }
  0xfc   : > { %v2220_v0 = vpop.permute.xlu0 %2219  ;;  %v878_v17 = vrot.slane %v877_v27, 4  ;;  %v4892_v13 = vunpack.c.l.b16 %v873_v15  ;;  %v1905_v31 = vrot.slane %v3459_v20, 5  ;;  %v1566_v32 = vshrl.u32 %v3436_v18, 16 }
  0xfd   : > { %v4868_v34 = vsel %vm2790_vm7, %v4342_v46, %v2220_v0  ;;  %v2228_v57 = vpop.permute.xlu1 %2227  ;;  %v1325_v46 = vsel %vm4081_vm5, %v1323_v43, %v1324_v45  ;;  %v1569_v42 = vshll.u32 %v3436_v18, 16  ;;  %v1575_v6 = vshll.u32 %v4886_v55, 16 }
  0xfe   : > { %v4875_v21 = vsel %vm2790_vm7, %v4736_v25, %v2228_v57  ;;  %v2416_v52 = vunpack.c.l.b16 %v1325_v46  ;;  %v2786_v25 = vsel %vm2741_vm6, %v3738_v51, %v4399_v29  ;;  %v883_v37 = vsel %vm3879_vm2, %v878_v17, %v882_v59  ;;  %v3428_v59 = vld [vmem:[%s3851_s18 + $0x24] sm:$0xf] }
  0xff   : > { %v4897_v49 = vunpack.c.l.b16 %v883_v37  ;;  %v2626_v29 = vpack.c.b16 %v4838_v8, %v4836_v16  ;;  %v2438_v63 = vpack.c.b16 %v2408_v19, %v2407_v53  ;;  %v2362_v23 = vpack.c.b16 %v4877_v50, %v4853_v35  ;;  %v4918_v16 = vld [vmem:[%s3851_s18 + $0x5c] sm:$0x1] }
 0x100   : > { %2735 = vrot.lane.b32.xlu2 %v4804_v5, %s3814_s26  ;;  %v4915_v41 = vpack.c.b16 %v2416_v52, %v2415_v48  ;;  %v1579_v8 = vshrl.u32 %v4886_v55, 16  ;;  %v2663_v56 = vunpack.c.l.b16 %v4901_v62  ;;  %v1568_v51 = vrot.slane %v1566_v32, 4 }
 0x101   : > { %v1571_v10 = vrot.slane %v1569_v42, 5  ;;  %v1906_v35 = vsel %vm4081_vm5, %v1904_v14, %v1905_v31  ;;  %v1577_v0 = vrot.slane %v1575_v6, 5  ;;  %v1585_v57 = vshll.u32 %v4918_v16, 16 }
 0x102   : > { %2567 = vrot.lane.b32.xlu0 %v3765_v54, %s3811_s23  ;;  %v2318_v5 = vpop.permute.xlu2 %2317  ;;  %v1581_v27 = vrot.slane %v1579_v8, 4  ;;  %v1470_v3 = vshrl.u32 %v3428_v59, 16  ;;  %v1473_v48 = vshll.u32 %v3428_v59, 16  ;;  %v1479_v54 = vshll.u32 %v3429_v38, 16 }
 0x103   : > { %2727 = vrot.lane.b32.xlu1 %v4811_v40, %s3814_s26  ;;  %v2358_v40 = vpack.c.b16 %v4897_v49, %v4892_v13  ;;  %v1572_v33 = vor.u32 %v1571_v10, %v1568_v51  ;;  %v1483_v50 = vshrl.u32 %v3429_v38, 16  ;;  %v1489_v15 = vshll.u32 %v3459_v20, 16  ;;  %v3761_v51 = vld [vmem:[%s3851_s18 + $0x54] sm:$0xff] }
 0x104   : > { %v2226_v45 = vpop.permute.xlu0 %2225  ;;  %v1582_v1 = vor.u32 %v1581_v27, %v1577_v0  ;;  %v1472_v46 = vrot.slane %v1470_v3, 4  ;;  %v1173_v52 = vshrl.u32 %v3374_v9, 16  ;;  %v4938_v12 = vsel %vm2823_vm8, %v4834_v36, %v2318_v5 }
 0x105   : > { %v4926_v53 = vsel %vm2790_vm7, %v2786_v25, %v2226_v45  ;;  %v2298_v19 = vpop.permute.xlu1 %2297  ;;  %v1573_v17 = vrot.slane %v1572_v33, 4  ;;  %v1481_v22 = vrot.slane %v1479_v54, 5  ;;  %v1485_v18 = vrot.slane %v1483_v50, 4  ;;  %v4942_v25 = vld [vmem:[%s3851_s18 + $0xb8] sm:$0xf] }
 0x106   : > { %v4933_v43 = vsel %vm2823_vm8, %v4719_v30, %v2298_v19  ;;  %v1475_v30 = vrot.slane %v1473_v48, 5  ;;  %v2664_v37 = vunpack.c.l.b16 %v1906_v35  ;;  %v1587_v38 = vrot.slane %v1585_v57, 5  ;;  %v3366_v35 = vld [vmem:[%s3851_s18 + $0x84] sm:$0xf]  ;;  %v4968_v57 = vld [vmem:[%s3851_s18 + $0x88] sm:$0xf] }
 0x107   : > { %v1175_v62 = vrot.slane %v1173_v52, 4  ;;  %v1176_v20 = vshll.u32 %v3374_v9, 16  ;;  %v1578_v36 = vsel %vm3879_vm2, %v1573_v17, %v1577_v0  ;;  %v1583_v31 = vrot.slane %v1582_v1, 4  ;;  %v4979_v17 = vld [vmem:[%s3851_s18 + $0x8c] sm:$0x1] }
 0x108   : > { %2455 = vrot.lane.b32.xlu2 %v2438_v63, %s3812_s24  ;;  %v1476_v32 = vor.u32 %v1475_v30, %v1472_v46  ;;  %v1486_v42 = vor.u32 %v1485_v18, %v1481_v22  ;;  %v4953_v63 = vld [vmem:[%s3851_s18 + $0xbc] sm:$0x1]  ;;  %v2694_v27 = vpack.c.b16 %v2664_v37, %v2663_v56  ;;  %v2591_v50 = vunpack.c.l.b16 %v1578_v36  ;;  %v3479_v37 = vld [vmem:[%s3851_s18 + $0x54] sm:$0xe] }
 0x109   : > { %v1178_v8 = vrot.slane %v1176_v20, 5  ;;  %v1588_v3 = vsel %vm3879_vm2, %v1583_v31, %v1587_v38  ;;  %v1192_v54 = vshll.u32 %v4953_v63, 16  ;;  %v1077_v46 = vshrl.u32 %v3366_v35, 16 }
 0x10a   : > { %2655 = vrot.lane.b32.xlu0 %v2626_v29, %s3813_s25  ;;  %v2324_v14 = vpop.permute.xlu2 %2323  ;;  %v1491_v29 = vrot.slane %v1489_v15, 5  ;;  %v1477_v10 = vrot.slane %v1476_v32, 4  ;;  %v1487_v19 = vrot.slane %v1486_v42, 4  ;;  %v1080_v30 = vshll.u32 %v3366_v35, 16 }
 0x10b   : > { %2383 = vrot.lane.b32.xlu1 %v2362_v23, %s3810_s22  ;;  %v4950_v5 = vsel %vm2823_vm8, %v4875_v21, %v2324_v14  ;;  %v1182_v23 = vshll.u32 %v4942_v25, 16  ;;  %v1186_v21 = vshrl.u32 %v4942_v25, 16  ;;  %v1179_v9 = vor.u32 %v1178_v8, %v1175_v62 }
 0x10c   : > { %v2296_v6 = vpop.permute.xlu0 %2295  ;;  %v1482_v1 = vsel %vm3879_vm2, %v1477_v10, %v1481_v22  ;;  %v1194_v52 = vrot.slane %v1192_v54, 5  ;;  %v1086_v18 = vshll.u32 %v4968_v57, 16  ;;  %v2592_v22 = vunpack.c.l.b16 %v1588_v3 }
 0x10d   : > { %v4958_v59 = vsel %vm2823_vm8, %v4462_v39, %v2296_v6  ;;  %v2304_v45 = vpop.permute.xlu1 %2303  ;;  %v1184_v33 = vrot.slane %v1182_v23, 5  ;;  %v3757_v39 = vld [vmem:[%s3851_s18 + $0x24] sm:$0xff]  ;;  %v1188_v48 = vrot.slane %v1186_v21, 4  ;;  %v1180_v56 = vrot.slane %v1179_v9, 4 }
 0x10e   : > { %v4965_v0 = vsel %vm2823_vm8, %v4776_v47, %v2304_v45  ;;  %v1492_v47 = vsel %vm3879_vm2, %v1487_v19, %v1491_v29  ;;  %v4988_v38 = vunpack.c.l.b16 %v1482_v1  ;;  %v1079_v62 = vrot.slane %v1077_v46, 4  ;;  %v3408_v19 = vld [vmem:[%s3851_s18 + $0xb4] sm:$0xe] }
 0x10f   : > { %v1189_v15 = vor.u32 %v1188_v48, %v1184_v33  ;;  %v1090_v20 = vshrl.u32 %v4968_v57, 16  ;;  %v1185_v36 = vsel %vm3879_vm2, %v1180_v56, %v1184_v33  ;;  %v1082_v32 = vrot.slane %v1080_v30, 5  ;;  %v3404_v48 = vld [vmem:[%s3851_s18 + $0x84] sm:$0xe] }
 0x110   : > { %2559 = vrot.lane.b32.xlu2 %v3761_v51, %s3811_s23  ;;  %v1088_v42 = vrot.slane %v1086_v18, 5  ;;  %v4996_v13 = vunpack.c.l.b16 %v1492_v47  ;;  %v3495_v29 = vrot.slane %v3479_v37, 9  ;;  %v1930_v10 = vrot.slane %v4886_v55, 5 }
 0x111   : > { %v1190_v31 = vrot.slane %v1189_v15, 4  ;;  %v1092_v49 = vrot.slane %v1090_v20, 4  ;;  %v1083_v51 = vor.u32 %v1082_v32, %v1079_v62  ;;  %v2353_v21 = vunpack.c.l.b16 %v1185_v36  ;;  %v5034_v32 = vld [vmem:[%s3851_s18 + $0xc4] sm:$0xf] }
 0x112   : > { %2375 = vrot.lane.b32.xlu0 %v2358_v40, %s3810_s22  ;;  %v4992_v14 = vpop.permute.xlu2 %2397  ;;  %v1096_v40 = vshll.u32 %v4979_v17, 16  ;;  %v1932_v1 = vrot.slane %v1930_v10, 4  ;;  %v2614_v54 = vpack.c.b16 %v4996_v13, %v4988_v38  ;;  %v1931_v56 = vsel %vm4081_vm5, %v3495_v29, %v1930_v10  ;;  %v5048_v29 = vld [vmem:[%s3851_s18 + $0xc8] sm:$0x1] }
 0x113   : > { %2551 = vrot.lane.b32.xlu1 %v3757_v39, %s3811_s23  ;;  %v1195_v45 = vsel %vm3879_vm2, %v1190_v31, %v1194_v52  ;;  %v1093_v9 = vor.u32 %v1092_v49, %v1088_v42  ;;  %v2618_v39 = vpack.c.b16 %v2592_v22, %v2591_v50  ;;  %v1084_v3 = vrot.slane %v1083_v51, 4  ;;  %v3454_v52 = vld [vmem:[%s3851_s18 + $0xc0] sm:$0xf] }
 0x114   : > { %v2302_v6 = vpop.permute.xlu0 %2301  ;;  %v2354_v35 = vunpack.c.l.b16 %v1195_v45  ;;  %v1098_v33 = vrot.slane %v1096_v40, 5  ;;  %v3424_v55 = vrot.slane %v3408_v19, 9  ;;  %v1384_v15 = vrot.slane %v4942_v25, 5  ;;  %v3446_v45 = vld [vmem:[%s3851_s18 + $0x90] sm:$0xf] }
 0x115   : > { %v5001_v8 = vsel %vm2823_vm8, %v4527_v58, %v2302_v6  ;;  %v5003_v23 = vpop.permute.xlu1 %2309  ;;  %v1933_v58 = vrot.slane %v4918_v16, 5  ;;  %v1094_v47 = vrot.slane %v1093_v9, 4  ;;  %v1089_v46 = vsel %vm3879_vm2, %v1084_v3, %v1088_v42 }
 0x116   : > { %v1387_v16 = vrot.slane %v4953_v63, 5  ;;  %v2371_v30 = vpack.c.b16 %v2354_v35, %v2353_v21  ;;  %v3420_v37 = vrot.slane %v3404_v48, 9  ;;  %v1385_v25 = vsel %vm4081_vm5, %v3424_v55, %v1384_v15  ;;  %v5066_v55 = vld [vmem:[%s3851_s18 + $0x98] sm:$0x1] }
 0x117   : > { %v1934_v50 = vsel %vm4081_vm5, %v1932_v1, %v1933_v58  ;;  %v1099_v18 = vsel %vm3879_vm2, %v1094_v47, %v1098_v33  ;;  %v1386_v63 = vrot.slane %v1384_v15, 4  ;;  %v1356_v62 = vrot.slane %v4968_v57, 5 }
 0x118   : > { %2711 = vrot.lane.b32.xlu2 %v2694_v27, %s3814_s26  ;;  %v2345_v27 = vunpack.c.l.b16 %v1089_v46  ;;  %v2346_v38 = vunpack.c.l.b16 %v1099_v18  ;;  %v2671_v20 = vunpack.c.l.b16 %v1931_v56  ;;  %v2672_v36 = vunpack.c.l.b16 %v1934_v50 }
 0x119   : > { %v2433_v31 = vunpack.c.l.b16 %v1385_v25  ;;  %v1782_v42 = vshrl.u32 %v3454_v52, 16  ;;  %v1388_v49 = vsel %vm4081_vm5, %v1386_v63, %v1387_v16  ;;  %v5044_v40 = vsel %vm4081_vm5, %v3420_v37, %v1356_v62 }
 0x11a   : > { %2463 = vrot.lane.b32.xlu0 %v4915_v41, %s3812_s24  ;;  %v5028_v22 = vpop.permute.xlu2 %2565  ;;  %v1359_v57 = vrot.slane %v4979_v17, 5  ;;  %v2434_v10 = vunpack.c.l.b16 %v1388_v49  ;;  %v1358_v19 = vrot.slane %v1356_v62, 4  ;;  %v1785_v35 = vshll.u32 %v3454_v52, 16 }
 0x11b   : > { %2639 = vrot.lane.b32.xlu1 %v2618_v39, %s3813_s25  ;;  %v1784_v21 = vrot.slane %v1782_v42, 4  ;;  %v1791_v9 = vshll.u32 %v5034_v32, 16  ;;  %v1795_v33 = vshrl.u32 %v5034_v32, 16  ;;  %v5058_v39 = vld [vmem:[%s3851_s18 + $0x94] sm:$0xf]  ;;  %v2698_v17 = vpack.c.b16 %v2672_v36, %v2671_v20 }
 0x11c   : > { %v2308_v41 = vpop.permute.xlu0 %2307  ;;  %v2425_v3 = vunpack.c.l.b16 %v5044_v40  ;;  %v1801_v1 = vshll.u32 %v5048_v29, 16  ;;  %v1360_v58 = vsel %vm4081_vm5, %v1358_v19, %v1359_v57  ;;  %v1787_v48 = vrot.slane %v1785_v35, 5 }
 0x11d   : > { %v5038_v6 = vsel %vm2823_vm8, %v4570_v44, %v2308_v41  ;;  %v2316_v13 = vpop.permute.xlu1 %2315  ;;  %v2367_v44 = vpack.c.b16 %v2346_v38, %v2345_v27  ;;  %v1793_v47 = vrot.slane %v1791_v9, 5  ;;  %v1797_v56 = vrot.slane %v1795_v33, 4  ;;  %v3350_v38 = vld [vmem:[%s3851_s18 + $0x24] sm:$0xf]  ;;  %v5093_v9 = vld [vmem:[%s3851_s18 + $0x2c] sm:$0x1] }
 0x11e   : > { %v5053_v51 = vsel %vm2823_vm8, %v4868_v34, %v2316_v13  ;;  %v1686_v34 = vshrl.u32 %v3446_v45, 16  ;;  %v2451_v46 = vpack.c.b16 %v2434_v10, %v2433_v31  ;;  %v1689_v15 = vshll.u32 %v3446_v45, 16  ;;  %v3766_v31 = vld [vmem:[%s3851_s18 + $0x90] sm:$0xff]  ;;  %v5086_v10 = vld [vmem:[%s3851_s18 + $0x28] sm:$0xf] }
 0x11f   : > { %v1695_v16 = vshll.u32 %v5058_v39, 16  ;;  %v1798_v18 = vor.u32 %v1797_v56, %v1793_v47  ;;  %v1803_v27 = vrot.slane %v1801_v1, 5  ;;  %v1699_v37 = vshrl.u32 %v5058_v39, 16  ;;  %v3488_v1 = vld [vmem:[%s3851_s18 + $0xc0] sm:$0xe] }
 0x120   : > { %2401 = vrot.lane.b32.xlu2 %v2371_v30, %s3810_s22  ;;  %v1688_v50 = vrot.slane %v1686_v34, 4  ;;  %v1788_v30 = vor.u32 %v1787_v48, %v1784_v21  ;;  %v2426_v63 = vunpack.c.l.b16 %v1360_v58  ;;  %v1705_v41 = vshll.u32 %v5066_v55, 16 }
 0x121   : > { %v1697_v62 = vrot.slane %v1695_v16, 5  ;;  %v1799_v13 = vrot.slane %v1798_v18, 4  ;;  %v1701_v49 = vrot.slane %v1699_v37, 4  ;;  %v885_v19 = vshrl.u32 %v3350_v38, 16 }
 0x122   : > { %2631 = vrot.lane.b32.xlu0 %v2614_v54, %s3813_s25  ;;  %v5071_v52 = vpop.permute.xlu2 %2653  ;;  %v1691_v54 = vrot.slane %v1689_v15, 5  ;;  %v1789_v42 = vrot.slane %v1788_v30, 4  ;;  %v888_v33 = vshll.u32 %v3350_v38, 16  ;;  %v894_v15 = vshll.u32 %v5086_v10, 16 }
 0x123   : > { %2393 = vrot.lane.b32.xlu1 %v2367_v44, %s3810_s22  ;;  %v1707_v44 = vrot.slane %v1705_v41, 5  ;;  %v1702_v35 = vor.u32 %v1701_v49, %v1697_v62  ;;  %v887_v48 = vrot.slane %v885_v19, 4  ;;  %v5102_v16 = vsel %vm2856_vm9, %v4938_v12, %v4992_v14 }
 0x124   : > { %v2314_v25 = vpop.permute.xlu0 %2313  ;;  %v1692_v45 = vor.u32 %v1691_v54, %v1688_v50  ;;  %v1794_v21 = vsel %vm3879_vm2, %v1789_v42, %v1793_v47  ;;  %v890_v50 = vrot.slane %v888_v33, 5  ;;  %v898_v47 = vshrl.u32 %v5086_v10, 16 }
 0x125   : > { %v5078_v20 = vsel %vm2823_vm8, %v4618_v2, %v2314_v25  ;;  %v2322_v36 = vpop.permute.xlu1 %2321  ;;  %v1804_v2 = vsel %vm3879_vm2, %v1799_v13, %v1803_v27  ;;  %v2609_v34 = vunpack.c.l.b16 %v1794_v21  ;;  %v1703_v56 = vrot.slane %v1702_v35, 4 }
 0x126   : > { %v5083_v57 = vsel %vm2823_vm8, %v4926_v53, %v2322_v36  ;;  %v2610_v58 = vunpack.c.l.b16 %v1804_v2  ;;  %v1693_v53 = vrot.slane %v1692_v45, 4  ;;  %v904_v18 = vshll.u32 %v5093_v9, 16  ;;  %v3484_v36 = vld [vmem:[%s3851_s18 + $0x90] sm:$0xe] }
 0x127   : > { %v3504_v27 = vrot.slane %v3488_v1, 9  ;;  %v1708_v38 = vsel %vm3879_vm2, %v1703_v56, %v1707_v44  ;;  %v891_v54 = vor.u32 %v890_v50, %v887_v48  ;;  %v896_v41 = vrot.slane %v894_v15, 5  ;;  %v3704_v1 = vld [vmem:[%s5667_s1 + $0x8] sm:$0xf]  ;;  %v3400_v50 = vld [vmem:[%s3851_s18 + $0x54] sm:$0xe] }
 0x128   : > { %2569 = vrot.lane.b32.xlu2 %v3766_v31, %s3811_s23  ;;  %v1698_v30 = vsel %vm3879_vm2, %v1693_v53, %v1697_v62  ;;  %v2447_v14 = vpack.c.b16 %v2426_v63, %v2425_v3  ;;  %v2602_v31 = vunpack.c.l.b16 %v1708_v38  ;;  %v900_v62 = vrot.slane %v898_v47, 4 }
 0x129   : > { %v2601_v25 = vunpack.c.l.b16 %v1698_v30  ;;  %v892_v13 = vrot.slane %v891_v54, 4  ;;  %v1993_v49 = vrot.slane %v5034_v32, 5  ;;  %v1996_v45 = vrot.slane %v5048_v29, 5 }
 0x12a   : > { %2719 = vrot.lane.b32.xlu0 %v2698_v17, %s3814_s26  ;;  %v2382_v37 = vpop.permute.xlu2 %2381  ;;  %v2627_v17 = vpack.c.b16 %v2610_v58, %v2609_v34  ;;  %v901_v19 = vor.u32 %v900_v62, %v896_v41  ;;  %v906_v21 = vrot.slane %v904_v18, 5  ;;  %v3500_v2 = vrot.slane %v3484_v36, 9  ;;  %v3773_v34 = vld [vmem:[%s5667_s1 + $0x8] sm:$0x30]  ;;  %v3770_v62 = vld [vmem:[%s3851_s18 + $0xc0] sm:$0xff] }
 0x12b   : > { %2481 = vrot.lane.b32.xlu1 %v2451_v46, %s3812_s24  ;;  %v2623_v44 = vpack.c.b16 %v2602_v31, %v2601_v25  ;;  %v897_v40 = vsel %vm3879_vm2, %v892_v13, %v896_v41  ;;  %v1994_v3 = vsel %vm4081_vm5, %v3504_v27, %v1993_v49  ;;  %v1995_v63 = vrot.slane %v1993_v49, 4  ;;  %v3384_v49 = vld [vmem:[%s3851_s18 + $0x5c] sm:$0x1] }
 0x12c   : > { %v2320_v12 = vpop.permute.xlu0 %2319  ;;  %v2841_v35 = vsel %vm2823_vm8, %v4828_v61, %v5003_v23  ;;  %v902_v32 = vrot.slane %v901_v19, 4  ;;  %v2329_v29 = vunpack.c.l.b16 %v897_v40  ;;  %v1968_v33 = vrot.slane %v5066_v55, 5 }
 0x12d   : > { %v5116_v42 = vsel %vm2823_vm8, %v4669_v4, %v2320_v12  ;;  %v2390_v46 = vpop.permute.xlu1 %2389  ;;  %v1965_v4 = vrot.slane %v5058_v39, 5  ;;  %v1997_v39 = vsel %vm4081_vm5, %v1995_v63, %v1996_v45  ;;  %v2689_v61 = vunpack.c.l.b16 %v1994_v3  ;;  %v3359_v12 = vld [vmem:[%s3851_s18 + $0x58] sm:$0xf] }
 0x12e   : > { %v5145_v58 = vsel %vm2856_vm9, %v5001_v8, %v2382_v37  ;;  %v5148_v53 = vsel %vm2856_vm9, %v2841_v35, %v2390_v46  ;;  %v907_v48 = vsel %vm3879_vm2, %v902_v32, %v906_v21  ;;  %v2690_v56 = vunpack.c.l.b16 %v1997_v39  ;;  %v3396_v37 = vld [vmem:[%s3851_s18 + $0x24] sm:$0xe] }
 0x12f   : > { %v5140_v23 = vsel %vm4081_vm5, %v3500_v2, %v1965_v4  ;;  %v1967_v55 = vrot.slane %v1965_v4, 4  ;;  %v2330_v15 = vunpack.c.l.b16 %v907_v48  ;;  %v3705_v30 = vor.u32 %v3773_v34, %v3704_v1 }
 0x130   : > { %2657 = vrot.lane.b32.xlu2 %v2627_v17, %s3813_s25  ;;  %v2681_v27 = vunpack.c.l.b16 %v5140_v23  ;;  %v2707_v54 = vpack.c.b16 %v2690_v56, %v2689_v61  ;;  %v3815_v41 = vmov 65535   ;;  %v3358_v17 = vld [vmem:[%s3851_s18 + $0x54] sm:$0xf]  ;;  %v1328_v45 = vrot.slane %v3359_v12, 5 }
 0x131   : > { %v5156_v47 = vsel %vm4081_vm5, %v1967_v55, %v1968_v33  ;;  %v2359_v25 = vpack.c.b16 %v2330_v15, %v2329_v29  ;;  %v3075_v36 = vsel %vm3073_vm11, 4294967295, %v3815_v41  ;;  %v1331_v19 = vrot.slane %v3384_v49, 5 }
 0x132   : > { %2473 = vrot.lane.b32.xlu0 %v2447_v14, %s3812_s24  ;;  %v5158_v18 = vpop.permute.xlu2 %2549  ;;  %v3416_v14 = vrot.slane %v3400_v50, 9  ;;  %v2682_v46 = vunpack.c.l.b16 %v5156_v47  ;;  %v3076_v13 = vsel %vm3074_vm13, %v3075_v36, 0  ;;  %v3412_v21 = vrot.slane %v3396_v37, 9  ;;  %v5193_v36 = vld [vmem:[%s3851_s18 + $0x34] sm:$0xf] }
 0x133   : > { %2649 = vrot.lane.b32.xlu1 %v2623_v44, %s3813_s25  ;;  %v3078_v44 = vand.u32 %v3705_v30, %v3076_v13  ;;  %v1300_v2 = vrot.slane %v5086_v10, 5  ;;  %v1330_v3 = vrot.slane %v1328_v45, 4  ;;  %v1303_v63 = vrot.slane %v5093_v9, 5  ;;  %v3772_v10 = vld [vmem:[%s5667_s1] sm:$0xff]  ;;  %v3430_v30 = vld [vmem:[%s3851_s18 + $0x30] sm:$0xf] }
 0x134   : > { %v2374_v8 = vpop.permute.xlu0 %2373  ;;  %v1329_v40 = vsel %vm4081_vm5, %v3416_v14, %v1328_v45  ;;  %v981_v4 = vshrl.u32 %v3358_v17, 16  ;;  %v984_v29 = vshll.u32 %v3358_v17, 16  ;;  %v990_v34 = vshll.u32 %v3359_v12, 16 }
 0x135   : > { %v2478_v38 = vpop.permute.xlu1 %2477  ;;  %v5166_v31 = vsel %vm2856_vm9, %v4714_v7, %v2374_v8  ;;  %3775 = vmatpush.bf16.msra.mxu2 %v3078_v44  ;;  %v2417_v7 = vunpack.c.l.b16 %v1329_v40  ;;  %v1301_v35 = vsel %vm4081_vm5, %v3412_v21, %v1300_v2  ;;  %v1302_v32 = vrot.slane %v1300_v2, 4  ;;  %3776 = vmatpush.bf16.msra.mxu3 %v3078_v44  ;;  %v5207_v21 = vld [vmem:[%s3851_s18 + $0x64] sm:$0xf] }
 0x136   : > { %v1332_v9 = vsel %vm4081_vm5, %v1330_v3, %v1331_v19  ;;  %v2409_v33 = vunpack.c.l.b16 %v1301_v35  ;;  %v983_v1 = vrot.slane %v981_v4, 4  ;;  %v986_v23 = vrot.slane %v984_v29, 5  ;;  %3086 = vmatpush.bf16.msra.mxu0 %v3078_v44  ;;  %3774 = vmatpush.bf16.msra.mxu1 %v3078_v44  ;;  %v5213_v3 = vld [vmem:[%s3851_s18 + $0x68] sm:$0x1]  ;;  %v3476_v29 = vld [vmem:[%s3851_s18 + $0x30] sm:$0xe] }
 0x137   : > { %v2418_v39 = vunpack.c.l.b16 %v1332_v9  ;;  %v1304_v61 = vsel %vm4081_vm5, %v1302_v32, %v1303_v63  ;;  %v994_v55 = vshrl.u32 %v3359_v12, 16  ;;  %v2915_v48 = vsel %vm2889_vm10, %v5102_v16, %v2478_v38  ;;  %v5196_v12 = vld [vmem:[%s3851_s18 + $0x38] sm:$0x1] }
 0x138   : > { %2377 = vrot.lane.b32.xlu2 %v2359_v25, %s3810_s22  ;;  %v2410_v50 = vunpack.c.l.b16 %v1304_v61  ;;  %v992_v15 = vrot.slane %v990_v34, 5  ;;  %v1000_v47 = vshll.u32 %v3384_v49, 16  ;;  %v2703_v16 = vpack.c.b16 %v2682_v46, %v2681_v27 }
 0x139   : > { %v2443_v25 = vpack.c.b16 %v2418_v39, %v2417_v7  ;;  %v996_v41 = vrot.slane %v994_v55, 4  ;;  %3778 = vmatpush.bf16.msra.mxu2 %v3772_v10  ;;  %3779 = vmatpush.bf16.msra.mxu3 %v3772_v10  ;;  %v1494_v45 = vshrl.u32 %v3430_v30, 16  ;;  %v1497_v44 = vshll.u32 %v3430_v30, 16 }
 0x13a   : > { %2577 = vrot.lane.b32.xlu0 %v3770_v62, %s3811_s23  ;;  %v5198_v38 = vpop.permute.xlu2 %2637  ;;  %v2439_v17 = vpack.c.b16 %v2410_v50, %v2409_v33  ;;  %v1002_v49 = vrot.slane %v1000_v47, 5  ;;  %3087 = vmatpush.bf16.msra.mxu0 %v3772_v10  ;;  %v1503_v19 = vshll.u32 %v5193_v36, 16  ;;  %v1507_v27 = vshrl.u32 %v5193_v36, 16 }
 0x13b   : > { %2737 = vrot.lane.b32.xlu1 %v2707_v54, %s3814_s26  ;;  %v987_v54 = vor.u32 %v986_v23, %v983_v1  ;;  %v997_v13 = vor.u32 %v996_v41, %v992_v15  ;;  %v1513_v46 = vshll.u32 %v5196_v12, 16  ;;  %3777 = vmatpush.bf16.msra.mxu1 %v3772_v10  ;;  %v1496_v40 = vrot.slane %v1494_v45, 4 }
 0x13c   : > { %v2470_v56 = vpop.permute.xlu0 %2469  ;;  %v1499_v7 = vrot.slane %v1497_v44, 5  ;;  %v1505_v35 = vrot.slane %v1503_v19, 5  ;;  %v1509_v32 = vrot.slane %v1507_v27, 4  ;;  %v1937_v9 = vrot.slane %v5207_v21, 5 }
 0x13d   : > { %v2907_v8 = vsel %vm2889_vm10, %v5148_v53, %v2470_v56  ;;  %v2646_v37 = vpop.permute.xlu1 %2645  ;;  %v3480_v53 = vld [vmem:[%s3851_s18 + $0x60] sm:$0xe]  ;;  %v988_v62 = vrot.slane %v987_v54, 4  ;;  %v998_v2 = vrot.slane %v997_v13, 4  ;;  %v1940_v33 = vrot.slane %v5213_v3, 5 }
 0x13e   : > { %v2940_v14 = vsel %vm2922_vm12, %v2907_v8, %v5028_v22  ;;  %v3496_v63 = vrot.slane %v3480_v53, 9  ;;  %v1500_v39 = vor.u32 %v1499_v7, %v1496_v40  ;;  %v1510_v61 = vor.u32 %v1509_v32, %v1505_v35  ;;  %v3405_v40 = vld [vmem:[%s3851_s18 + $0x90] sm:$0xe] }
 0x13f   : > { %v993_v22 = vsel %vm3879_vm2, %v988_v62, %v992_v15  ;;  %v1003_v10 = vsel %vm3879_vm2, %v998_v2, %v1002_v49  ;;  %v1515_v23 = vrot.slane %v1513_v46, 5  ;;  %v1939_v15 = vrot.slane %v1937_v9, 4  ;;  %v3438_v62 = vld [vmem:[%s3851_s18 + $0x60] sm:$0xf] }
 0x140   : > { %2465 = vrot.lane.b32.xlu2 %v2443_v25, %s3812_s24  ;;  %v2337_v4 = vunpack.c.l.b16 %v993_v22  ;;  %v2338_v34 = vunpack.c.l.b16 %v1003_v10  ;;  %v1938_v50 = vsel %vm4081_vm5, %v3496_v63, %v1937_v9  ;;  %v3492_v47 = vrot.slane %v3476_v29, 9 }
 0x141   : > { %v1501_v25 = vrot.slane %v1500_v39, 4  ;;  %v1511_v54 = vrot.slane %v1510_v61, 4  ;;  %v2973_v41 = vsel %vm2955_vm14, %v2940_v14, %v2646_v37  ;;  %v1909_v53 = vrot.slane %v5193_v36, 5 }
 0x142   : > { %2729 = vrot.lane.b32.xlu0 %v2703_v16, %s3814_s26  ;;  %v2363_v30 = vpack.c.b16 %v2338_v34, %v2337_v4  ;;  %v5234_v13 = vpop.permute.xlu2 %2391  ;;  %v2673_v14 = vunpack.c.l.b16 %v1938_v50  ;;  %v1912_v49 = vrot.slane %v5196_v12, 5  ;;  %v1590_v22 = vshrl.u32 %v3438_v62, 16 }
 0x143   : > { %2457 = vrot.lane.b32.xlu1 %v2439_v17, %s3812_s24  ;;  %v3762_v17 = vld [vmem:[%s3851_s18 + $0x60] sm:$0xff]  ;;  %v1516_v37 = vsel %vm3879_vm2, %v1511_v54, %v1515_v23  ;;  %v1910_v36 = vsel %vm4081_vm5, %v3492_v47, %v1909_v53  ;;  %v1911_v19 = vrot.slane %v1909_v53, 4  ;;  %v1593_v2 = vshll.u32 %v3438_v62, 16  ;;  %v3369_v47 = vld [vmem:[%s3851_s18 + $0x94] sm:$0xf] }
 0x144   : > { %v2574_v1 = vpop.permute.xlu0 %2573  ;;  %v2586_v44 = vunpack.c.l.b16 %v1516_v37  ;;  %v2665_v46 = vunpack.c.l.b16 %v1910_v36  ;;  %v1599_v4 = vshll.u32 %v5207_v21, 16  ;;  %v1603_v7 = vshrl.u32 %v5207_v21, 16  ;;  %v3758_v21 = vld [vmem:[%s3851_s18 + $0x30] sm:$0xff] }
 0x145   : > { %v2948_v55 = vsel %vm2922_vm12, %v2915_v48, %v2574_v1  ;;  %v2734_v56 = vpop.permute.xlu1 %2733  ;;  %v1941_v48 = vsel %vm4081_vm5, %v1939_v15, %v1940_v33  ;;  %v1913_v12 = vsel %vm4081_vm5, %v1911_v19, %v1912_v49  ;;  %v1592_v29 = vrot.slane %v1590_v22, 4  ;;  %v3376_v33 = vld [vmem:[%s3851_s18 + $0xc0] sm:$0xf] }
 0x146   : > { %v2981_v8 = vsel %vm2955_vm14, %v2948_v55, %v5071_v52  ;;  %v1506_v52 = vsel %vm3879_vm2, %v1501_v25, %v1505_v35  ;;  %v2674_v27 = vunpack.c.l.b16 %v1941_v48  ;;  %v2666_v32 = vunpack.c.l.b16 %v1913_v12  ;;  %v5256_v55 = vld [vmem:[%s3851_s18 + $0xc4] sm:$0xf] }
 0x147   : > { %v3014_v16 = vsel %vm2988_vm15, %v2981_v8, %v2734_v56  ;;  %v2585_v45 = vunpack.c.l.b16 %v1506_v52  ;;  %v1595_v10 = vrot.slane %v1593_v2, 5  ;;  %v1609_v9 = vshll.u32 %v5213_v3, 16 }
 0x148   : > { %3718 = vmatmul.msk.bf16.vlgmr.msra.gmra.mxu3 %vm3040_vm0, %v3014_v16  ;;  %v1601_v39 = vrot.slane %v1599_v4, 5  ;;  %v1605_v61 = vrot.slane %v1603_v7, 4  ;;  %v3421_v23 = vrot.slane %v3405_v40, 9  ;;  %v2699_v56 = vpack.c.b16 %v2674_v27, %v2673_v14  ;;  %v5267_v14 = vld [vmem:[%s3851_s18 + $0xc8] sm:$0x1] }
 0x149   : > { %v2615_v63 = vpack.c.b16 %v2586_v44, %v2585_v45  ;;  %v2695_v50 = vpack.c.b16 %v2666_v32, %v2665_v46  ;;  %v1596_v15 = vor.u32 %v1595_v10, %v1592_v29  ;;  %v1611_v3 = vrot.slane %v1609_v9, 5  ;;  %v3368_v46 = vld [vmem:[%s3851_s18 + $0x90] sm:$0xf] }
 0x14a   : > { %2385 = vrot.lane.b32.xlu0 %v2363_v30, %s3810_s22  ;;  %v3389_v30 = vld [vmem:[%s3851_s18 + $0x98] sm:$0x1]  ;;  %v1606_v8 = vor.u32 %v1605_v61, %v1601_v39  ;;  %v1363_v25 = vrot.slane %v3369_v47, 5  ;;  %v1206_v48 = vshll.u32 %v5256_v55, 16  ;;  %v1210_v53 = vshrl.u32 %v5256_v55, 16  ;;  %v5270_v45 = vpop.permute.xlu2 %2479 }
 0x14b   : > { %2561 = vrot.lane.b32.xlu1 %v3762_v17, %s3811_s23  ;;  %2633 = vrot.lane.b32.xlu2 %v2615_v63, %s3813_s25  ;;  %v1366_v54 = vrot.slane %v3389_v30, 5  ;;  %v1597_v16 = vrot.slane %v1596_v15, 4  ;;  %v1200_v17 = vshll.u32 %v3376_v33, 16  ;;  %v1216_v32 = vshll.u32 %v5267_v14, 16 }
 0x14c   : > { %v2726_v35 = vpop.permute.xlu0 %2725  ;;  %v1607_v62 = vrot.slane %v1606_v8, 4  ;;  %v1364_v52 = vsel %vm4081_vm5, %v3421_v23, %v1363_v25  ;;  %v1365_v37 = vrot.slane %v1363_v25, 4  ;;  %v1208_v27 = vrot.slane %v1206_v48, 5 }
 0x14d   : > { %v3006_v1 = vsel %vm2988_vm15, %v2973_v41, %v2726_v35  ;;  %v2462_v34 = vpop.permute.xlu1 %2461  ;;  %v1197_v41 = vshrl.u32 %v3376_v33, 16  ;;  %v1602_v44 = vsel %vm3879_vm2, %v1597_v16, %v1601_v39  ;;  %v2427_v36 = vunpack.c.l.b16 %v1364_v52  ;;  %v3485_v16 = vld [vmem:[%s3851_s18 + $0x9c] sm:$0xe] }
 0x14e   : > { %3714 = vmatmul.msk.bf16.vlgmr.msra.gmra.mxu2 %vm3040_vm0, %v3006_v1  ;;  %v1202_v19 = vrot.slane %v1200_v17, 5  ;;  %v1612_v22 = vsel %vm3879_vm2, %v1607_v62, %v1611_v3  ;;  %v2593_v2 = vunpack.c.l.b16 %v1602_v44  ;;  %v1367_v40 = vsel %vm4081_vm5, %v1365_v37, %v1366_v54 }
 0x14f   : > { %v1199_v49 = vrot.slane %v1197_v41, 4  ;;  %v1212_v63 = vrot.slane %v1210_v53, 4  ;;  %v2594_v4 = vunpack.c.l.b16 %v1612_v22  ;;  %v2428_v7 = vunpack.c.l.b16 %v1367_v40 }
 0x150   : > { %v1101_v33 = vshrl.u32 %v3368_v46, 16  ;;  %v1104_v1 = vshll.u32 %v3368_v46, 16  ;;  %v2899_v39 = vsel %vm2889_vm10, %v5145_v58, %v2462_v34  ;;  %v1218_v8 = vrot.slane %v1216_v32, 5 }
 0x151   : > { %v1203_v35 = vor.u32 %v1202_v19, %v1199_v49  ;;  %v1213_v9 = vor.u32 %v1212_v63, %v1208_v27  ;;  %v2619_v61 = vpack.c.b16 %v2594_v4, %v2593_v2  ;;  %v2448_v15 = vpack.c.b16 %v2428_v7, %v2427_v36  ;;  %v5309_v4 = vld [vmem:[%s3851_s18 + $0xa4] sm:$0x1] }
 0x152   : > { %2553 = vrot.lane.b32.xlu0 %v3758_v21, %s3811_s23  ;;  %v1106_v25 = vrot.slane %v1104_v1, 5  ;;  %v1110_v54 = vshll.u32 %v3369_v47, 16  ;;  %v1114_v41 = vshrl.u32 %v3369_v47, 16  ;;  %v1120_v17 = vshll.u32 %v3389_v30, 16  ;;  %v5298_v47 = vld [vmem:[%s3851_s18 + $0xa0] sm:$0xf]  ;;  %v5300_v19 = vpop.permute.xlu2 %2647 }
 0x153   : > { %2713 = vrot.lane.b32.xlu1 %v2695_v50, %s3814_s26  ;;  %2721 = vrot.lane.b32.xlu2 %v2699_v56, %s3814_s26  ;;  %v1204_v21 = vrot.slane %v1203_v35, 4  ;;  %v3409_v50 = vld [vmem:[%s3851_s18 + $0xc0] sm:$0xe]  ;;  %v1214_v3 = vrot.slane %v1213_v9, 4  ;;  %v1391_v49 = vrot.slane %v5256_v55, 5  ;;  %v1394_v44 = vrot.slane %v5267_v14, 5 }
 0x154   : > { %v2454_v12 = vpop.permute.xlu0 %2453  ;;  %v1112_v62 = vrot.slane %v1110_v54, 5  ;;  %v1116_v52 = vrot.slane %v1114_v41, 4  ;;  %v1122_v37 = vrot.slane %v1120_v17, 5  ;;  %v3501_v36 = vrot.slane %v3485_v16, 9  ;;  %v5319_v9 = vld [vmem:[%s3851_s18 + $0xd0] sm:$0xf] }
 0x155   : > { %v2891_v29 = vsel %vm2889_vm10, %v5166_v31, %v2454_v12  ;;  %v2630_v10 = vpop.permute.xlu1 %2629  ;;  %v1103_v31 = vrot.slane %v1101_v33, 4  ;;  %v1209_v56 = vsel %vm3879_vm2, %v1204_v21, %v1208_v27  ;;  %v1219_v58 = vsel %vm3879_vm2, %v1214_v3, %v1218_v8  ;;  %v3771_v8 = vld [vmem:[%s3851_s18 + $0xcc] sm:$0xff]  ;;  %v3448_v54 = vld [vmem:[%s3851_s18 + $0x9c] sm:$0xf] }
 0x156   : > { %v2924_v23 = vsel %vm2922_vm12, %v2891_v29, %v5158_v18  ;;  %v2355_v34 = vunpack.c.l.b16 %v1209_v56  ;;  %v3425_v18 = vrot.slane %v3409_v50, 9  ;;  %v2356_v48 = vunpack.c.l.b16 %v1219_v58  ;;  %v3767_v41 = vld [vmem:[%s3851_s18 + $0x9c] sm:$0xff] }
 0x157   : > { %v1107_v53 = vor.u32 %v1106_v25, %v1103_v31  ;;  %v1117_v22 = vor.u32 %v1116_v52, %v1112_v62  ;;  %v1972_v2 = vrot.slane %v5298_v47, 5  ;;  %v2957_v40 = vsel %vm2955_vm14, %v2924_v23, %v2630_v10  ;;  %v3456_v10 = vld [vmem:[%s3851_s18 + $0xcc] sm:$0xf]  ;;  %v5327_v23 = vld [vmem:[%s3851_s18 + $0xd4] sm:$0x1] }
 0x158   : > { %v2372_v30 = vpack.c.b16 %v2356_v48, %v2355_v34  ;;  %v1392_v63 = vsel %vm4081_vm5, %v3425_v18, %v1391_v49  ;;  %v1393_v12 = vrot.slane %v1391_v49, 4  ;;  %v1975_v29 = vrot.slane %v5309_v4, 5 }
 0x159   : > { %v1108_v46 = vrot.slane %v1107_v53, 4  ;;  %v1118_v35 = vrot.slane %v1117_v22, 4  ;;  %v2435_v21 = vunpack.c.l.b16 %v1392_v63  ;;  %v1806_v31 = vshrl.u32 %v3456_v10, 16 }
 0x15a   : > { %2641 = vrot.lane.b32.xlu0 %v2619_v61, %s3813_s25  ;;  %v1973_v61 = vsel %vm4081_vm5, %v3501_v36, %v1972_v2  ;;  %v1809_v56 = vshll.u32 %v3456_v10, 16  ;;  %v1815_v25 = vshll.u32 %v5319_v9, 16  ;;  %v1819_v34 = vshrl.u32 %v5319_v9, 16 }
 0x15b   : > { %2475 = vrot.lane.b32.xlu2 %v2448_v15, %s3812_s24  ;;  %2403 = vrot.lane.b32.xlu1 %v2372_v30, %s3810_s22  ;;  %v1113_v7 = vsel %vm3879_vm2, %v1108_v46, %v1112_v62  ;;  %v1974_v15 = vrot.slane %v1972_v2, 4  ;;  %v2683_v58 = vunpack.c.l.b16 %v1973_v61  ;;  %v1825_v17 = vshll.u32 %v5327_v23, 16 }
 0x15c   : > { %v2558_v27 = vpop.permute.xlu0 %2557  ;;  %v2347_v33 = vunpack.c.l.b16 %v1113_v7  ;;  %v1808_v53 = vrot.slane %v1806_v31, 4  ;;  %v1811_v62 = vrot.slane %v1809_v56, 5  ;;  %v1817_v49 = vrot.slane %v1815_v25, 5  ;;  %v3352_v31 = vld [vmem:[%s3851_s18 + $0x30] sm:$0xf] }
 0x15d   : > { %v2932_v55 = vsel %vm2922_vm12, %v2899_v39, %v2558_v27  ;;  %v2718_v14 = vpop.permute.xlu1 %2717  ;;  %v1395_v39 = vsel %vm4081_vm5, %v1393_v12, %v1394_v44  ;;  %v1976_v16 = vsel %vm4081_vm5, %v1974_v15, %v1975_v29  ;;  %v1821_v44 = vrot.slane %v1819_v34, 4 }
 0x15e   : > { %v2965_v32 = vsel %vm2955_vm14, %v2932_v55, %v5198_v38  ;;  %v1123_v38 = vsel %vm3879_vm2, %v1118_v35, %v1122_v37  ;;  %v2436_v50 = vunpack.c.l.b16 %v1395_v39  ;;  %v2684_v48 = vunpack.c.l.b16 %v1976_v16  ;;  %v3360_v55 = vld [vmem:[%s3851_s18 + $0x60] sm:$0xf]  ;;  %v5352_v39 = vld [vmem:[%s3851_s18 + $0x64] sm:$0xf] }
 0x15f   : > { %v2998_v1 = vsel %vm2988_vm15, %v2965_v32, %v2718_v14  ;;  %v2348_v3 = vunpack.c.l.b16 %v1123_v38  ;;  %v1710_v36 = vshrl.u32 %v3448_v54, 16  ;;  %v1812_v46 = vor.u32 %v1811_v62, %v1808_v53  ;;  %v5344_v14 = vpop.permute.xlu2 %2735 }
 0x160   : > { %3710 = vmatmul.msk.bf16.vlgmr.msra.gmra.mxu1 %vm3040_vm0, %v2998_v1  ;;  %v2452_v37 = vpack.c.b16 %v2436_v50, %v2435_v21  ;;  %v1827_v22 = vrot.slane %v1825_v17, 5  ;;  %v1713_v2 = vshll.u32 %v3448_v54, 16  ;;  %v2704_v63 = vpack.c.b16 %v2684_v48, %v2683_v58 }
 0x161   : > { %v2368_v18 = vpack.c.b16 %v2348_v3, %v2347_v33  ;;  %v1822_v12 = vor.u32 %v1821_v44, %v1817_v49  ;;  %v1712_v7 = vrot.slane %v1710_v36, 4  ;;  %v1813_v35 = vrot.slane %v1812_v46, 4 }
 0x162   : > { %v1715_v32 = vrot.slane %v1713_v2, 5  ;;  %v1723_v29 = vshrl.u32 %v5298_v47, 16  ;;  %v1729_v10 = vshll.u32 %v5309_v4, 16  ;;  %v1005_v61 = vshrl.u32 %v3360_v55, 16 }
 0x163   : > { %2395 = vrot.lane.b32.xlu0 %v2368_v18, %s3810_s22  ;;  %2579 = vrot.lane.b32.xlu2 %v3771_v8, %s3811_s23  ;;  %v1823_v33 = vrot.slane %v1822_v12, 4  ;;  %v1008_v38 = vshll.u32 %v3360_v55, 16  ;;  %v1818_v21 = vsel %vm3879_vm2, %v1813_v35, %v1817_v49  ;;  %v5357_v8 = vld [vmem:[%s3851_s18 + $0x68] sm:$0x1]  ;;  %v1014_v58 = vshll.u32 %v5352_v39, 16 }
 0x164   : > { %v2710_v52 = vpop.permute.xlu0 %2709  ;;  %2571 = vrot.lane.b32.xlu1 %v3767_v41, %s3811_s23  ;;  %v1716_v50 = vor.u32 %v1715_v32, %v1712_v7  ;;  %v1725_v15 = vrot.slane %v1723_v29, 4  ;;  %v1731_v3 = vrot.slane %v1729_v10, 5  ;;  %v2611_v56 = vunpack.c.l.b16 %v1818_v21  ;;  %v5376_v55 = vld [vmem:[%s3851_s18 + $0x34] sm:$0xf]  ;;  %v5384_v12 = vld [vmem:[%s3851_s18 + $0x38] sm:$0x1] }
 0x165   : > { %v2990_v27 = vsel %vm2988_vm15, %v2957_v40, %v2710_v52  ;;  %v2472_v30 = vpop.permute.xlu1 %2471  ;;  %v1719_v40 = vshll.u32 %v5298_v47, 16  ;;  %v1828_v47 = vsel %vm3879_vm2, %v1823_v33, %v1827_v22  ;;  %v1007_v4 = vrot.slane %v1005_v61, 4  ;;  %v3489_v7 = vld [vmem:[%s3851_s18 + $0xcc] sm:$0xe]  ;;  %v3401_v61 = vld [vmem:[%s3851_s18 + $0x60] sm:$0xe] }
 0x166   : > { %3706 = vmatmul.msk.bf16.vlgmr.msra.gmra.mxu0 %vm3040_vm0, %v2990_v27  ;;  %v1010_v25 = vrot.slane %v1008_v38, 5  ;;  %v2612_v54 = vunpack.c.l.b16 %v1828_v47  ;;  %v1717_v41 = vrot.slane %v1716_v50, 4  ;;  %v1018_v18 = vshrl.u32 %v5352_v39, 16 }
 0x167   : > { %v1721_v1 = vrot.slane %v1719_v40, 5  ;;  %v1024_v48 = vshll.u32 %v5357_v8, 16  ;;  %v909_v53 = vshrl.u32 %v3352_v31, 16  ;;  %v2876_v62 = vsel %vm2856_vm9, %v4861_v28, %v5234_v13 }
 0x168   : > { %v1011_v17 = vor.u32 %v1010_v25, %v1007_v4  ;;  %v2628_v52 = vpack.c.b16 %v2612_v54, %v2611_v56  ;;  %v2909_v27 = vsel %vm2889_vm10, %v2876_v62, %v2472_v30  ;;  %v1016_v2 = vrot.slane %v1014_v58, 5  ;;  %v5387_v30 = vpop.permute.xlu2 %2455 }
 0x169   : > { %v1726_v16 = vor.u32 %v1725_v15, %v1721_v1  ;;  %v1722_v49 = vsel %vm3879_vm2, %v1717_v41, %v1721_v1  ;;  %v911_v32 = vrot.slane %v909_v53, 4  ;;  %v912_v29 = vshll.u32 %v3352_v31, 16 }
 0x16a   : > { %v2603_v46 = vunpack.c.l.b16 %v1722_v49  ;;  %v1012_v22 = vrot.slane %v1011_v17, 4  ;;  %v918_v33 = vshll.u32 %v5376_v55, 16  ;;  %v922_v1 = vshrl.u32 %v5376_v55, 16 }
 0x16b   : > { %2483 = vrot.lane.b32.xlu0 %v2452_v37, %s3812_s24  ;;  %2731 = vrot.lane.b32.xlu2 %v2704_v63, %s3814_s26  ;;  %v1727_v44 = vrot.slane %v1726_v16, 4  ;;  %v1020_v37 = vrot.slane %v1018_v18, 4  ;;  %v1026_v63 = vrot.slane %v1024_v48, 5  ;;  %v914_v21 = vrot.slane %v912_v29, 5 }
 0x16c   : > { %v2400_v34 = vpop.permute.xlu0 %2399  ;;  %2659 = vrot.lane.b32.xlu1 %v2628_v52, %s3813_s25  ;;  %v1017_v35 = vsel %vm3879_vm2, %v1012_v22, %v1016_v2  ;;  %v928_v50 = vshll.u32 %v5384_v12, 16  ;;  %v3505_v15 = vrot.slane %v3489_v7, 9  ;;  %v920_v47 = vrot.slane %v918_v33, 5 }
 0x16d   : > { %v5372_v36 = vpop.permute.xlu1 %2575  ;;  %v2884_v28 = vsel %vm2856_vm9, %v5116_v42, %v2400_v34  ;;  %v1732_v13 = vsel %vm3879_vm2, %v1727_v44, %v1731_v3  ;;  %v1021_v42 = vor.u32 %v1020_v37, %v1016_v2  ;;  %v2339_v10 = vunpack.c.l.b16 %v1017_v35 }
 0x16e   : > { %v2604_v40 = vunpack.c.l.b16 %v1732_v13  ;;  %v924_v56 = vrot.slane %v922_v1, 4  ;;  %v2000_v4 = vrot.slane %v5319_v9, 5  ;;  %v915_v54 = vor.u32 %v914_v21, %v911_v32 }
 0x16f   : > { %v1022_v3 = vrot.slane %v1021_v42, 4  ;;  %v930_v31 = vrot.slane %v928_v50, 5  ;;  %v2003_v41 = vrot.slane %v5327_v23, 5  ;;  %v3417_v16 = vrot.slane %v3401_v61, 9  ;;  %v5431_v50 = vld [vmem:[%s3851_s18 + $0x40] sm:$0xf] }
 0x170   : > { %v2624_v38 = vpack.c.b16 %v2604_v40, %v2603_v46  ;;  %v925_v17 = vor.u32 %v924_v56, %v920_v47  ;;  %v2001_v18 = vsel %vm4081_vm5, %v3505_v15, %v2000_v4  ;;  %v916_v53 = vrot.slane %v915_v54, 4  ;;  %v3397_v46 = vld [vmem:[%s3851_s18 + $0x30] sm:$0xe]  ;;  %v3461_v56 = vld [vmem:[%s3851_s18 + $0x44] sm:$0x1] }
 0x171   : > { %v1027_v34 = vsel %vm3879_vm2, %v1022_v3, %v1026_v63  ;;  %v2002_v62 = vrot.slane %v2000_v4, 4  ;;  %v2691_v52 = vunpack.c.l.b16 %v2001_v18  ;;  %v1335_v44 = vrot.slane %v5352_v39, 5  ;;  %v3432_v63 = vld [vmem:[%s3851_s18 + $0x3c] sm:$0xf] }
 0x172   : > { %v2340_v48 = vunpack.c.l.b16 %v1027_v34  ;;  %v926_v23 = vrot.slane %v925_v17, 4  ;;  %v921_v2 = vsel %vm3879_vm2, %v916_v53, %v920_v47  ;;  %v2917_v7 = vsel %vm2889_vm10, %v2884_v28, %v5270_v45 }
 0x173   : > { %2651 = vrot.lane.b32.xlu0 %v2624_v38, %s3813_s25  ;;  %v2004_v13 = vsel %vm4081_vm5, %v2002_v62, %v2003_v41  ;;  %v2331_v39 = vunpack.c.l.b16 %v921_v2  ;;  %v1336_v32 = vsel %vm4081_vm5, %v3417_v16, %v1335_v44  ;;  %v1337_v29 = vrot.slane %v1335_v44, 4  ;;  %v3759_v41 = vld [vmem:[%s3851_s18 + $0x3c] sm:$0xff]  ;;  %v3440_v62 = vld [vmem:[%s3851_s18 + $0x6c] sm:$0xf] }
 0x174   : > { %v2568_v25 = vpop.permute.xlu0 %2567  ;;  %v2364_v22 = vpack.c.b16 %v2340_v48, %v2339_v10  ;;  %v2692_v40 = vunpack.c.l.b16 %v2004_v13  ;;  %v3413_v42 = vrot.slane %v3397_v46, 9  ;;  %v1307_v45 = vrot.slane %v5376_v55, 5  ;;  %v3441_v48 = vld [vmem:[%s3851_s18 + $0x70] sm:$0xf]  ;;  %v3481_v44 = vld [vmem:[%s3851_s18 + $0x6c] sm:$0xe] }
 0x175   : > { %v2942_v58 = vsel %vm2922_vm12, %v2909_v27, %v2568_v25  ;;  %v2728_v9 = vpop.permute.xlu1 %2727  ;;  %v1338_v27 = vrot.slane %v5357_v8, 5  ;;  %v5419_v8 = vpop.permute.xlu2 %2559  ;;  %v1310_v28 = vrot.slane %v5384_v12, 5  ;;  %v1518_v33 = vshrl.u32 %v3432_v63, 16 }
 0x176   : > { %v2975_v49 = vsel %vm2955_vm14, %v2942_v58, %v5300_v19  ;;  %v931_v19 = vsel %vm3879_vm2, %v926_v23, %v930_v31  ;;  %2387 = vrot.lane.b32.xlu2 %v2364_v22, %s3810_s22  ;;  %v2708_v10 = vpack.c.b16 %v2692_v40, %v2691_v52  ;;  %v2950_v1 = vsel %vm2922_vm12, %v2917_v7, %v5372_v36  ;;  %v3477_v22 = vld [vmem:[%s3851_s18 + $0x3c] sm:$0xe] }
 0x177   : > { %v3008_v37 = vsel %vm2988_vm15, %v2975_v49, %v2728_v9  ;;  %v2332_v35 = vunpack.c.l.b16 %v931_v19  ;;  %v1339_v21 = vsel %vm4081_vm5, %v1337_v29, %v1338_v27  ;;  %v1521_v15 = vshll.u32 %v3432_v63, 16  ;;  %v3465_v19 = vld [vmem:[%s3851_s18 + $0x74] sm:$0x1] }
 0x178   : > { %3715 = vmatmul.msk.bf16.gmra.mxu2 %vm3040_vm0, %v3008_v37  ;;  %v2419_v55 = vunpack.c.l.b16 %v1336_v32  ;;  %v1308_v12 = vsel %vm4081_vm5, %v3413_v42, %v1307_v45  ;;  %v1309_v47 = vrot.slane %v1307_v45, 4  ;;  %v2420_v25 = vunpack.c.l.b16 %v1339_v21 }
 0x179   : > { %v2360_v61 = vpack.c.b16 %v2332_v35, %v2331_v39  ;;  %v2411_v54 = vunpack.c.l.b16 %v1308_v12  ;;  %v1520_v31 = vrot.slane %v1518_v33, 4  ;;  %v1523_v58 = vrot.slane %v1521_v15, 5 }
 0x17a   : > { %v1311_v16 = vsel %vm4081_vm5, %v1309_v47, %v1310_v28  ;;  %v1527_v34 = vshll.u32 %v5431_v50, 16  ;;  %v1531_v18 = vshrl.u32 %v5431_v50, 16  ;;  %v1537_v9 = vshll.u32 %v3461_v56, 16 }
 0x17b   : > { %2739 = vrot.lane.b32.xlu0 %v2708_v10, %s3814_s26  ;;  %2379 = vrot.lane.b32.xlu1 %v2360_v61, %s3810_s22  ;;  %v2412_v17 = vunpack.c.l.b16 %v1311_v16  ;;  %v2444_v52 = vpack.c.b16 %v2420_v25, %v2419_v55  ;;  %v1944_v46 = vrot.slane %v3441_v48, 5  ;;  %v1916_v2 = vrot.slane %v5431_v50, 5 }
 0x17c   : > { %v2656_v38 = vpop.permute.xlu0 %2655  ;;  %v1529_v53 = vrot.slane %v1527_v34, 5  ;;  %v1533_v49 = vrot.slane %v1531_v18, 4  ;;  %v1539_v7 = vrot.slane %v1537_v9, 5  ;;  %v1614_v39 = vshrl.u32 %v3440_v62, 16 }
 0x17d   : > { %v2983_v3 = vsel %vm2955_vm14, %v2950_v1, %v2656_v38  ;;  %v5437_v36 = vpop.permute.xlu1 %2383  ;;  %v2440_v23 = vpack.c.b16 %v2412_v17, %v2411_v54  ;;  %v5455_v13 = vpop.permute.xlu2 %2711  ;;  %v3497_v29 = vrot.slane %v3481_v44, 9  ;;  %v3493_v42 = vrot.slane %v3477_v22, 9 }
 0x17e   : > { %v3016_v4 = vsel %vm2988_vm15, %v2983_v3, %v5344_v14  ;;  %v1524_v14 = vor.u32 %v1523_v58, %v1520_v31  ;;  %2555 = vrot.lane.b32.xlu2 %v3759_v41, %s3811_s23  ;;  %v1534_v63 = vor.u32 %v1533_v49, %v1529_v53  ;;  %v1919_v10 = vrot.slane %v3461_v56, 5  ;;  %v3763_v3 = vld [vmem:[%s3851_s18 + $0x6c] sm:$0xff] }
 0x17f   : > { %3719 = vmatmul.msk.bf16.gmra.mxu3 %vm3040_vm0, %v3016_v4  ;;  %v1946_v28 = vrot.slane %v1944_v46, 4  ;;  %v1947_v33 = vrot.slane %v3465_v19, 5  ;;  %v1918_v1 = vrot.slane %v1916_v2, 4  ;;  %v1616_v38 = vrot.slane %v1614_v39, 4 }
 0x180   : > { %v1525_v27 = vrot.slane %v1524_v14, 4  ;;  %v1535_v32 = vrot.slane %v1534_v63, 4  ;;  %v1617_v21 = vshll.u32 %v3440_v62, 16  ;;  %v1623_v50 = vshll.u32 %v3441_v48, 16 }
 0x181   : > { %v1627_v55 = vshrl.u32 %v3441_v48, 16  ;;  %v1633_v12 = vshll.u32 %v3465_v19, 16  ;;  %v1917_v47 = vsel %vm4081_vm5, %v3493_v42, %v1916_v2  ;;  %v1920_v56 = vsel %vm4081_vm5, %v1918_v1, %v1919_v10 }
 0x182   : > { %v1530_v40 = vsel %vm3879_vm2, %v1525_v27, %v1529_v53  ;;  %v1540_v61 = vsel %vm3879_vm2, %v1535_v32, %v1539_v7  ;;  %v1619_v4 = vrot.slane %v1617_v21, 5  ;;  %v1625_v25 = vrot.slane %v1623_v50, 5 }
 0x183   : > { %2459 = vrot.lane.b32.xlu0 %v2440_v23, %s3812_s24  ;;  %2467 = vrot.lane.b32.xlu1 %v2444_v52, %s3812_s24  ;;  %v2587_v45 = vunpack.c.l.b16 %v1530_v40  ;;  %v2588_v15 = vunpack.c.l.b16 %v1540_v61  ;;  %v1945_v31 = vsel %vm4081_vm5, %v3497_v29, %v1944_v46  ;;  %v1948_v41 = vsel %vm4081_vm5, %v1946_v28, %v1947_v33 }
 0x184   : > { %v2376_v37 = vpop.permute.xlu0 %2375  ;;  %v1629_v16 = vrot.slane %v1627_v55, 4  ;;  %v1620_v34 = vor.u32 %v1619_v4, %v1616_v38  ;;  %v2667_v17 = vunpack.c.l.b16 %v1917_v47  ;;  %v2668_v18 = vunpack.c.l.b16 %v1920_v56 }
 0x185   : > { %v2552_v35 = vpop.permute.xlu1 %2551  ;;  %v2616_v54 = vpack.c.b16 %v2588_v15, %v2587_v45  ;;  %v1635_v14 = vrot.slane %v1633_v12, 5  ;;  %v2402_v53 = vpop.permute.xlu2 %2401  ;;  %v2675_v62 = vunpack.c.l.b16 %v1945_v31  ;;  %v2676_v52 = vunpack.c.l.b16 %v1948_v41 }
 0x186   : > { %v1630_v48 = vor.u32 %v1629_v16, %v1625_v25  ;;  %v1621_v23 = vrot.slane %v1620_v34, 4  ;;  %v2860_v60 = vsel %vm2856_vm9, %v4958_v59, %v2376_v37  ;;  %v2696_v27 = vpack.c.b16 %v2668_v18, %v2667_v17 }
 0x187   : > { %v2700_v2 = vpack.c.b16 %v2676_v52, %v2675_v62  ;;  %v2893_v7 = vsel %vm2889_vm10, %v2860_v60, %v5387_v30  ;;  %v2868_v30 = vsel %vm2856_vm9, %v4965_v0, %v5437_v36  ;;  %v2886_v0 = vsel %vm2856_vm9, %v5083_v57, %v2402_v53 }
 0x188   : > { %v1631_v49 = vrot.slane %v1630_v48, 4  ;;  %v1626_v44 = vsel %vm3879_vm2, %v1621_v23, %v1625_v25  ;;  %v2926_v19 = vsel %vm2922_vm12, %v2893_v7, %v2552_v35 }
 0x189   : > { %v2595_v22 = vunpack.c.l.b16 %v1626_v44 }
 0x18a   : > { %v1636_v46 = vsel %vm3879_vm2, %v1631_v49, %v1635_v14 }
 0x18b   : > { %2563 = vrot.lane.b32.xlu0 %v3763_v3, %s3811_s23  ;;  %2635 = vrot.lane.b32.xlu1 %v2616_v54, %s3813_s25  ;;  %v2596_v63 = vunpack.c.l.b16 %v1636_v46 }
 0x18c   : > { %v2464_v58 = vpop.permute.xlu0 %2463 }
 0x18d   : > { %v2640_v9 = vpop.permute.xlu1 %2639  ;;  %v2620_v40 = vpack.c.b16 %v2596_v63, %v2595_v22  ;;  %v2570_v35 = vpop.permute.xlu2 %2569  ;;  %v2901_v32 = vsel %vm2889_vm10, %v2868_v30, %v2464_v58 }
 0x18e   : > { %v2934_v29 = vsel %vm2922_vm12, %v2901_v32, %v5419_v8 }
 0x18f   : > { %2643 = vrot.lane.b32.xlu2 %v2620_v40, %s3813_s25  ;;  %v2967_v42 = vsel %vm2955_vm14, %v2934_v29, %v2640_v9 }
 0x193   : > { %2715 = vrot.lane.b32.xlu0 %v2696_v27, %s3814_s26  ;;  %2723 = vrot.lane.b32.xlu1 %v2700_v2, %s3814_s26 }
 0x194   : > { %v2632_v39 = vpop.permute.xlu0 %2631 }
 0x195   : > { %v2959_v59 = vsel %vm2955_vm14, %v2926_v19, %v2632_v39  ;;  %v2394_v37 = vpop.permute.xlu1 %2393  ;;  %v2658_v28 = vpop.permute.xlu2 %2657 }
 0x196   : > { %v2992_v26 = vsel %vm2988_vm15, %v2959_v59, %v5455_v13  ;;  %v2878_v15 = vsel %vm2856_vm9, %v5078_v20, %v2394_v37 }
 0x197   : > { %3707 = vmatmul.msk.bf16.gmra.mxu0 %vm3040_vm0, %v2992_v26 }
 0x19c   : > { %v2720_v10 = vpop.permute.xlu0 %2719 }
 0x19d   : > { %v3000_v45 = vsel %vm2988_vm15, %v2967_v42, %v2720_v10  ;;  %v2482_v13 = vpop.permute.xlu1 %2481  ;;  %v2378_v36 = vpop.permute.xlu2 %2377 }
 0x19e   : > { %3711 = vmatmul.msk.bf16.gmra.mxu1 %vm3040_vm0, %v3000_v45  ;;  %v2919_v61 = vsel %vm2889_vm10, %v2886_v0, %v2482_v13  ;;  %v2862_v41 = vsel %vm2856_vm9, %v4933_v43, %v2378_v36  ;;  %v5527_v43 = vld [vmem:[%s5668_s2] ss:$0 sm:$0xff] }
 0x1a4   : > { %v2474_v33 = vpop.permute.xlu0 %2473 }
 0x1a5   : > { %v2650_v1 = vpop.permute.xlu1 %2649  ;;  %v2911_v55 = vsel %vm2889_vm10, %v2878_v15, %v2474_v33  ;;  %v2466_v25 = vpop.permute.xlu2 %2465 }
 0x1a6   : > { %v2944_v57 = vsel %vm2922_vm12, %v2911_v55, %v2570_v35 }
 0x1a7   : > { %v2977_v12 = vsel %vm2955_vm14, %v2944_v57, %v2650_v1 }
 0x1ac   : > { %v2578_v38 = vpop.permute.xlu0 %2577 }
 0x1ad   : > { %v2952_v8 = vsel %vm2922_vm12, %v2919_v61, %v2578_v38  ;;  %v2738_v21 = vpop.permute.xlu1 %2737  ;;  %v2634_v20 = vpop.permute.xlu2 %2633 }
 0x1ae   : > { %v2985_v50 = vsel %vm2955_vm14, %v2952_v8, %v2658_v28 }
 0x1af   : > { %v3018_v3 = vsel %vm2988_vm15, %v2985_v50, %v2738_v21 }
 0x1b0   : > { %3720 = vmatmul.msk.bf16.gmra.mxu3 %vm3040_vm0, %v3018_v3 }
 0x1b4   : > { %v2730_v47 = vpop.permute.xlu0 %2729 }
 0x1b5   : > { %v3010_v56 = vsel %vm2988_vm15, %v2977_v12, %v2730_v47  ;;  %v2458_v4 = vpop.permute.xlu1 %2457  ;;  %v2722_v14 = vpop.permute.xlu2 %2721 }
 0x1b6   : > { %3716 = vmatmul.msk.bf16.gmra.mxu2 %vm3040_vm0, %v3010_v56  ;;  %v2895_v16 = vsel %vm2889_vm10, %v2862_v41, %v2458_v4 }
 0x1bc   : > { %v2386_v54 = vpop.permute.xlu0 %2385 }
 0x1bd   : > { %v2562_v31 = vpop.permute.xlu1 %2561  ;;  %v2870_v48 = vsel %vm2856_vm9, %v4820_v24, %v2386_v54  ;;  %v2476_v7 = vpop.permute.xlu2 %2475 }
 0x1be   : > { %v2903_v53 = vsel %vm2889_vm10, %v2870_v48, %v2466_v25 }
 0x1bf   : > { %v2936_v52 = vsel %vm2922_vm12, %v2903_v53, %v2562_v31 }
 0x1c4   : > { %v2554_v58 = vpop.permute.xlu0 %2553 }
 0x1c5   : > { %v2928_v34 = vsel %vm2922_vm12, %v2895_v16, %v2554_v58  ;;  %v2714_v17 = vpop.permute.xlu1 %2713  ;;  %v2580_v10 = vpop.permute.xlu2 %2579 }
 0x1c6   : > { %v2961_v18 = vsel %vm2955_vm14, %v2928_v34, %v2634_v20 }
 0x1c7   : > { %v2994_v9 = vsel %vm2988_vm15, %v2961_v18, %v2714_v17 }
 0x1c8   : > { %3708 = vmatmul.msk.bf16.gmra.mxu0 %vm3040_vm0, %v2994_v9 }
 0x1cb   : > { %v3149_v62 = vpop.f32.mrf.mxu3 }
 0x1cc   : > { %v2642_v23 = vpop.permute.xlu0 %2641  ;;  %v3150_v49 = vadd.f32 %v5527_v43, %v3149_v62 }
 0x1cd   : > { %v2969_v24 = vsel %vm2955_vm14, %v2936_v52, %v2642_v23  ;;  %v2404_v2 = vpop.permute.xlu1 %2403  ;;  %v2732_v57 = vpop.permute.xlu2 %2731 }
 0x1ce   : > { %v3002_v60 = vsel %vm2988_vm15, %v2969_v24, %v2722_v14  ;;  %v3193_v44 = vmax.f32 %v3150_v49, 0.0  ;;  %v2888_v4 = vsel %vm2856_vm9, %v4950_v5, %v2404_v2 }
 0x1cf   : > { %3712 = vmatmul.msk.bf16.gmra.mxu1 %vm3040_vm0, %v3002_v60 }
 0x1d0   : > { %v3225_v27 = vpack.c.bf16 %v3193_v44, %v3193_v44 }
 0x1d1   : > { %v3129_v46 = vpop.f32.mrf.mxu2 }
 0x1d2   : > { %v3130_v22 = vadd.f32 %v5527_v43, %v3129_v46  ;;  %3258 = vst.msk [vmem:[%s5538_s13 + $0x60] sm:$0xf] %vm3233_vm1, %v3225_v27 }
 0x1d3   : > { %v3151_v63 = vpop.f32.mrf.mxu3 }
 0x1d4   : > { %v3185_v19 = vmax.f32 %v3130_v22, 0.0  ;;  %v3152_v39 = vadd.f32 %v5527_v43, %v3151_v63 }
 0x1d5   : > { %v2396_v37 = vpop.permute.xlu0 %2395  ;;  %v2388_v9 = vpop.permute.xlu2 %2387 }
 0x1d6   : > { %v3217_v40 = vpack.c.bf16 %v3185_v19, %v3185_v19  ;;  %v3194_v59 = vmax.f32 %v3152_v39, 0.0  ;;  %v2572_v29 = vpop.permute.xlu1 %2571  ;;  %v2880_v0 = vsel %vm2856_vm9, %v5053_v51, %v2396_v37  ;;  %v2872_v46 = vsel %vm2856_vm9, %v5038_v6, %v2388_v9 }
 0x1d7   : > { %v2913_v8 = vsel %vm2889_vm10, %v2880_v0, %v2476_v7 }
 0x1d8   : > { %3250 = vst.msk [vmem:[%s5538_s13 + $0x40] sm:$0xf] %vm3233_vm1, %v3217_v40  ;;  %v3226_v26 = vpack.c.bf16 %v3194_v59, %v3194_v59  ;;  %v2946_v3 = vsel %vm2922_vm12, %v2913_v8, %v2572_v29 }
 0x1d9   : > { %v3131_v30 = vpop.f32.mrf.mxu2 }
 0x1da   : > { %v3132_v35 = vadd.f32 %v5527_v43, %v3131_v30  ;;  %3259 = vst.msk [vmem:[%s5538_s13 + $0x64] sm:$0xf] %vm3233_vm1, %v3226_v26 }
 0x1dc   : > { %v3186_v32 = vmax.f32 %v3132_v35, 0.0 }
 0x1dd   : > { %v3109_v42 = vpop.f32.mrf.mxu1  ;;  %v2484_v28 = vpop.permute.xlu0 %2483 }
 0x1de   : > { %v3218_v45 = vpack.c.bf16 %v3186_v32, %v3186_v32  ;;  %v3110_v13 = vadd.f32 %v5527_v43, %v3109_v42  ;;  %v2660_v50 = vpop.permute.xlu1 %2659  ;;  %v2921_v54 = vsel %vm2889_vm10, %v2888_v4, %v2484_v28  ;;  %v2556_v53 = vpop.permute.xlu2 %2555 }
 0x1df   : > { %v2954_v41 = vsel %vm2922_vm12, %v2921_v54, %v2580_v10 }
 0x1e0   : > { %3251 = vst.msk [vmem:[%s5538_s13 + $0x44] sm:$0xf] %vm3233_vm1, %v3218_v45  ;;  %v3177_v33 = vmax.f32 %v3110_v13, 0.0  ;;  %v2987_v58 = vsel %vm2955_vm14, %v2954_v41, %v2660_v50 }
 0x1e2   : > { %v3209_v1 = vpack.c.bf16 %v3177_v33, %v3177_v33 }
 0x1e3   : > { %v3089_v36 = vpop.f32.mrf.mxu0 }
 0x1e4   : > { %v3090_v61 = vadd.f32 %v5527_v43, %v3089_v36  ;;  %3242 = vst.msk [vmem:[%s5538_s13 + $0x20] sm:$0xf] %vm3233_vm1, %v3209_v1 }
 0x1e5   : > { %v3111_v38 = vpop.f32.mrf.mxu1  ;;  %v2652_v55 = vpop.permute.xlu0 %2651 }
 0x1e6   : > { %v3169_v21 = vmax.f32 %v3090_v61, 0.0  ;;  %v3112_v15 = vadd.f32 %v5527_v43, %v3111_v38  ;;  %v2979_v51 = vsel %vm2955_vm14, %v2946_v3, %v2652_v55 }
 0x1e7   : > { %v3012_v56 = vsel %vm2988_vm15, %v2979_v51, %v2732_v57 }
 0x1e8   : > { %v3201_v12 = vpack.c.bf16 %v3169_v21, %v3169_v21  ;;  %v3178_v47 = vmax.f32 %v3112_v15, 0.0  ;;  %3717 = vmatmul.msk.bf16.gmra.mxu2 %vm3040_vm0, %v3012_v56 }
 0x1e9   : > { %v2644_v39 = vpop.permute.xlu2 %2643 }
 0x1ea   : > { %3234 = vst.msk [vmem:[%s5538_s13] sm:$0xf] %vm3233_vm1, %v3201_v12  ;;  %v3210_v25 = vpack.c.bf16 %v3178_v47, %v3178_v47 }
 0x1eb   : > { %v3091_v31 = vpop.f32.mrf.mxu0 }
 0x1ec   : > { %v3092_v20 = vadd.f32 %v5527_v43, %v3091_v31  ;;  %3243 = vst.msk [vmem:[%s5538_s13 + $0x24] sm:$0xf] %vm3233_vm1, %v3210_v25 }
 0x1ed   : > { %v2740_v34 = vpop.permute.xlu0 %2739  ;;  %v2380_v17 = vpop.permute.xlu1 %2379 }
 0x1ee   : > { %v3170_v16 = vmax.f32 %v3092_v20, 0.0  ;;  %v3020_v18 = vsel %vm2988_vm15, %v2987_v58, %v2740_v34  ;;  %v2864_v44 = vsel %vm2856_vm9, %v4770_v11, %v2380_v17 }
 0x1ef   : > { %3721 = vmatmul.msk.bf16.gmra.mxu3 %vm3040_vm0, %v3020_v18 }
 0x1f0   : > { %v3202_v5 = vpack.c.bf16 %v3170_v16, %v3170_v16 }
 0x1f2   : > { %3235 = vst.msk [vmem:[%s5538_s13 + $0x4] sm:$0xf] %vm3233_vm1, %v3202_v5 }
 0x1f5   : > { %v2460_v48 = vpop.permute.xlu0 %2459  ;;  %v2468_v14 = vpop.permute.xlu1 %2467 }
 0x1f6   : > { %v2897_v22 = vsel %vm2889_vm10, %v2864_v44, %v2460_v48  ;;  %v2905_v63 = vsel %vm2889_vm10, %v2872_v46, %v2468_v14 }
 0x1f7   : > { %v2930_v59 = vsel %vm2922_vm12, %v2897_v22, %v2556_v53 }
 0x1fb   : > { %v3134_v62 = vpop.f32.mrf.mxu2 }
 0x1fc   : > { %v3135_v52 = vadd.f32 %v5527_v43, %v3134_v62 }
 0x1fd   : > { %v2564_v23 = vpop.permute.xlu0 %2563  ;;  %v2636_v24 = vpop.permute.xlu1 %2635 }
 0x1fe   : > { %v3187_v49 = vmax.f32 %v3135_v52, 0.0  ;;  %v2938_v19 = vsel %vm2922_vm12, %v2905_v63, %v2564_v23  ;;  %v2963_v6 = vsel %vm2955_vm14, %v2930_v59, %v2636_v24 }
 0x1ff   : > { %v2971_v35 = vsel %vm2955_vm14, %v2938_v19, %v2644_v39 }
 0x200   : > { %v3219_v60 = vpack.c.bf16 %v3187_v49, %v3187_v49 }
 0x202   : > { %v3154_v27 = vpop.f32.mrf.mxu3  ;;  %3252 = vst.msk [vmem:[%s5538_s13 + $0x48] sm:$0xf] %vm3233_vm1, %v3219_v60 }
 0x203   : > { %v3155_v2 = vadd.f32 %v5527_v43, %v3154_v27  ;;  %v3136_v7 = vpop.f32.mrf.mxu2 }
 0x204   : > { %v3137_v11 = vadd.f32 %v5527_v43, %v3136_v7 }
 0x205   : > { %v3195_v40 = vmax.f32 %v3155_v2, 0.0  ;;  %v2716_v26 = vpop.permute.xlu0 %2715  ;;  %v2724_v32 = vpop.permute.xlu1 %2723 }
 0x206   : > { %v3188_v30 = vmax.f32 %v3137_v11, 0.0  ;;  %v2996_v29 = vsel %vm2988_vm15, %v2963_v6, %v2716_v26  ;;  %v3004_v42 = vsel %vm2988_vm15, %v2971_v35, %v2724_v32 }
 0x207   : > { %v3227_v37 = vpack.c.bf16 %v3195_v40, %v3195_v40  ;;  %3709 = vmatmul.msk.bf16.gmra.mxu0 %vm3040_vm0, %v2996_v29  ;;  %3713 = vmatmul.msk.bf16.gmra.mxu1 %vm3040_vm0, %v3004_v42 }
 0x208   : > { %v3220_v10 = vpack.c.bf16 %v3188_v30, %v3188_v30 }
 0x209   : > { %3260 = vst.msk [vmem:[%s5538_s13 + $0x68] sm:$0xf] %vm3233_vm1, %v3227_v37 }
 0x20a   : > { %v3156_v45 = vpop.f32.mrf.mxu3  ;;  %3253 = vst.msk [vmem:[%s5538_s13 + $0x4c] sm:$0xf] %vm3233_vm1, %v3220_v10 }
 0x20b   : > { %v3157_v13 = vadd.f32 %v5527_v43, %v3156_v45 }
 0x20d   : > { %v3196_v28 = vmax.f32 %v3157_v13, 0.0 }
 0x20f   : > { %v3228_v33 = vpack.c.bf16 %v3196_v28, %v3196_v28 }
 0x211   : > { %3261 = vst.msk [vmem:[%s5538_s13 + $0x6c] sm:$0xf] %vm3233_vm1, %v3228_v33 }
 0x214   : > { %v3094_v1 = vpop.f32.mrf.mxu0 }
 0x215   : > { %v3095_v0 = vadd.f32 %v5527_v43, %v3094_v1 }
 0x217   : > { %v3171_v36 = vmax.f32 %v3095_v0, 0.0 }
 0x219   : > { %v3203_v61 = vpack.c.bf16 %v3171_v36, %v3171_v36 }
 0x21b   : > { %3236 = vst.msk [vmem:[%s5538_s13 + $0x8] sm:$0xf] %vm3233_vm1, %v3203_v61  ;;  %v3114_v38 = vpop.f32.mrf.mxu1 }
 0x21c   : > { %v3115_v8 = vadd.f32 %v5527_v43, %v3114_v38  ;;  %v3096_v21 = vpop.f32.mrf.mxu0 }
 0x21d   : > { %v3097_v50 = vadd.f32 %v5527_v43, %v3096_v21 }
 0x21e   : > { %v3179_v15 = vmax.f32 %v3115_v8, 0.0 }
 0x21f   : > { %v3172_v3 = vmax.f32 %v3097_v50, 0.0 }
 0x220   : > { %v3211_v55 = vpack.c.bf16 %v3179_v15, %v3179_v15 }
 0x221   : > { %v3204_v57 = vpack.c.bf16 %v3172_v3, %v3172_v3 }
 0x222   : > { %3244 = vst.msk [vmem:[%s5538_s13 + $0x28] sm:$0xf] %vm3233_vm1, %v3211_v55 }
 0x223   : > { %3237 = vst.msk [vmem:[%s5538_s13 + $0xc] sm:$0xf] %vm3233_vm1, %v3204_v57  ;;  %v3116_v12 = vpop.f32.mrf.mxu1 }
 0x224   : > { %v3117_v51 = vadd.f32 %v5527_v43, %v3116_v12 }
 0x226   : > { %v3180_v47 = vmax.f32 %v3117_v51, 0.0 }
 0x228   : > { %v3212_v56 = vpack.c.bf16 %v3180_v47, %v3180_v47 }
 0x22a   : > { %3245 = vst.msk [vmem:[%s5538_s13 + $0x2c] sm:$0xf] %vm3233_vm1, %v3212_v56 }
 0x233   : > { %v3159_v4 = vpop.f32.mrf.mxu3 }
 0x234   : > { %v3160_v25 = vadd.f32 %v5527_v43, %v3159_v4 }
 0x236   : > { %v3197_v54 = vmax.f32 %v3160_v25, 0.0 }
 0x238   : > { %v3229_v31 = vpack.c.bf16 %v3197_v54, %v3197_v54 }
 0x239   : > { %v3139_v20 = vpop.f32.mrf.mxu2 }
 0x23a   : > { %v3140_v41 = vadd.f32 %v5527_v43, %v3139_v20  ;;  %3262 = vst.msk [vmem:[%s5538_s13 + $0x70] sm:$0xf] %vm3233_vm1, %v3229_v31 }
 0x23b   : > { %v3161_v16 = vpop.f32.mrf.mxu3 }
 0x23c   : > { %v3189_v58 = vmax.f32 %v3140_v41, 0.0  ;;  %v3162_v34 = vadd.f32 %v5527_v43, %v3161_v16 }
 0x23e   : > { %v3221_v5 = vpack.c.bf16 %v3189_v58, %v3189_v58  ;;  %v3198_v17 = vmax.f32 %v3162_v34, 0.0 }
 0x240   : > { %3254 = vst.msk [vmem:[%s5538_s13 + $0x50] sm:$0xf] %vm3233_vm1, %v3221_v5  ;;  %v3230_v18 = vpack.c.bf16 %v3198_v17, %v3198_v17 }
 0x241   : > { %v3141_v9 = vpop.f32.mrf.mxu2 }
 0x242   : > { %v3142_v48 = vadd.f32 %v5527_v43, %v3141_v9  ;;  %3263 = vst.msk [vmem:[%s5538_s13 + $0x74] sm:$0xf] %vm3233_vm1, %v3230_v18 }
 0x244   : > { %v3190_v14 = vmax.f32 %v3142_v48, 0.0 }
 0x245   : > { %v3099_v53 = vpop.f32.mrf.mxu0 }
 0x246   : > { %v3222_v62 = vpack.c.bf16 %v3190_v14, %v3190_v14  ;;  %v3100_v52 = vadd.f32 %v5527_v43, %v3099_v53 }
 0x248   : > { %3255 = vst.msk [vmem:[%s5538_s13 + $0x54] sm:$0xf] %vm3233_vm1, %v3222_v62  ;;  %v3173_v23 = vmax.f32 %v3100_v52, 0.0 }
 0x24a   : > { %v3205_v49 = vpack.c.bf16 %v3173_v23, %v3173_v23 }
 0x24c   : > { %3238 = vst.msk [vmem:[%s5538_s13 + $0x10] sm:$0xf] %vm3233_vm1, %v3205_v49  ;;  %v3119_v24 = vpop.f32.mrf.mxu1 }
 0x24d   : > { %v3120_v60 = vadd.f32 %v5527_v43, %v3119_v24  ;;  %v3101_v44 = vpop.f32.mrf.mxu0 }
 0x24e   : > { %v3102_v27 = vadd.f32 %v5527_v43, %v3101_v44 }
 0x24f   : > { %v3181_v46 = vmax.f32 %v3120_v60, 0.0 }
 0x250   : > { %v3174_v22 = vmax.f32 %v3102_v27, 0.0 }
 0x251   : > { %v3213_v2 = vpack.c.bf16 %v3181_v46, %v3181_v46 }
 0x252   : > { %v3206_v63 = vpack.c.bf16 %v3174_v22, %v3174_v22 }
 0x253   : > { %3246 = vst.msk [vmem:[%s5538_s13 + $0x30] sm:$0xf] %vm3233_vm1, %v3213_v2 }
 0x254   : > { %3239 = vst.msk [vmem:[%s5538_s13 + $0x14] sm:$0xf] %vm3233_vm1, %v3206_v63  ;;  %v3121_v7 = vpop.f32.mrf.mxu1 }
 0x255   : > { %v3122_v19 = vadd.f32 %v5527_v43, %v3121_v7 }
 0x257   : > { %v3182_v39 = vmax.f32 %v3122_v19, 0.0 }
 0x259   : > { %v3214_v40 = vpack.c.bf16 %v3182_v39, %v3182_v39 }
 0x25b   : > { %3247 = vst.msk [vmem:[%s5538_s13 + $0x34] sm:$0xf] %vm3233_vm1, %v3214_v40 }
 0x26b   : > { %v3144_v11 = vpop.f32.mrf.mxu2 }
 0x26c   : > { %v3145_v59 = vadd.f32 %v5527_v43, %v3144_v11 }
 0x26e   : > { %v3191_v6 = vmax.f32 %v3145_v59, 0.0 }
 0x270   : > { %v3223_v37 = vpack.c.bf16 %v3191_v6, %v3191_v6 }
 0x272   : > { %3256 = vst.msk [vmem:[%s5538_s13 + $0x58] sm:$0xf] %vm3233_vm1, %v3223_v37  ;;  %v3164_v26 = vpop.f32.mrf.mxu3 }
 0x273   : > { %v3165_v30 = vadd.f32 %v5527_v43, %v3164_v26  ;;  %v3146_v35 = vpop.f32.mrf.mxu2 }
 0x274   : > { %v3147_v32 = vadd.f32 %v5527_v43, %v3146_v35 }
 0x275   : > { %v3199_v29 = vmax.f32 %v3165_v30, 0.0 }
 0x276   : > { %v3192_v42 = vmax.f32 %v3147_v32, 0.0 }
 0x277   : > { %v3231_v10 = vpack.c.bf16 %v3199_v29, %v3199_v29 }
 0x278   : > { %v3224_v45 = vpack.c.bf16 %v3192_v42, %v3192_v42 }
 0x279   : > { %3264 = vst.msk [vmem:[%s5538_s13 + $0x78] sm:$0xf] %vm3233_vm1, %v3231_v10 }
 0x27a   : > { %3257 = vst.msk [vmem:[%s5538_s13 + $0x5c] sm:$0xf] %vm3233_vm1, %v3224_v45  ;;  %v3166_v13 = vpop.f32.mrf.mxu3 }
 0x27b   : > { %v3167_v28 = vadd.f32 %v5527_v43, %v3166_v13 }
 0x27d   : > { %v3200_v33 = vmax.f32 %v3167_v28, 0.0 }
 0x27f   : > { %v3232_v1 = vpack.c.bf16 %v3200_v33, %v3200_v33 }
 0x281   : > { %3265 = vst.msk [vmem:[%s5538_s13 + $0x7c] sm:$0xf] %vm3233_vm1, %v3232_v1 }
 0x284   : > { %v3104_v0 = vpop.f32.mrf.mxu0  ;;  %v3124_v61 = vpop.f32.mrf.mxu1 }
 0x285   : > { %v3105_v36 = vadd.f32 %v5527_v43, %v3104_v0  ;;  %v3125_v38 = vadd.f32 %v5527_v43, %v3124_v61 }
 0x287   : > { %v3175_v8 = vmax.f32 %v3105_v36, 0.0  ;;  %v3183_v21 = vmax.f32 %v3125_v38, 0.0 }
 0x289   : > { %v3207_v50 = vpack.c.bf16 %v3175_v8, %v3175_v8  ;;  %v3215_v15 = vpack.c.bf16 %v3183_v21, %v3183_v21 }
 0x28b   : > { %3240 = vst.msk [vmem:[%s5538_s13 + $0x18] sm:$0xf] %vm3233_vm1, %v3207_v50 }
 0x28c   : > { %3248 = vst.msk [vmem:[%s5538_s13 + $0x38] sm:$0xf] %vm3233_vm1, %v3215_v15  ;;  %v3106_v3 = vpop.f32.mrf.mxu0  ;;  %v3126_v57 = vpop.f32.mrf.mxu1 }
 0x28d   : > { %v3107_v55 = vadd.f32 %v5527_v43, %v3106_v3  ;;  %v3127_v12 = vadd.f32 %v5527_v43, %v3126_v57 }
 0x28f   : > { %v3176_v51 = vmax.f32 %v3107_v55, 0.0  ;;  %v3184_v47 = vmax.f32 %v3127_v12, 0.0 }
 0x291   : > { %v3208_v56 = vpack.c.bf16 %v3176_v51, %v3176_v51  ;;  %v3216_v4 = vpack.c.bf16 %v3184_v47, %v3184_v47 }
 0x293   : > { %3241 = vst.msk [vmem:[%s5538_s13 + $0x1c] sm:$0xf] %vm3233_vm1, %v3208_v56 }
 0x294   : > { %3249 = vst.msk [vmem:[%s5538_s13 + $0x3c] sm:$0xf] %vm3233_vm1, %v3216_v4 }
 0x295 PF: > { %s13_s12 = sadd.s32 1, %s3805_s12  }
 0x296   : > { %p10_p5 = scmp.ge.s32.totalorder %s13_s12, 4  }
 0x298   :  { %12 = sbr.rel (!%p10_p5) target bundleno = 1 (0x1), region = 64 }

</bundles_post_ra>
